<compile_context>
chip_gen: v5e
topology: v5e:2x2
jax: 0.10.0
libtpu: 0.0.40
codegen_flags: <defaults>
</compile_context>

<pallas_src>
import jax
import jax.numpy as jnp
from jax.experimental import pallas as pl
from jax.experimental.pallas import tpu as pltpu

KSIZE = 7
PAD = 3
WOFF = 8              # sublane-aligned column offset of the image interior
COL0 = WOFF - PAD     # first column read by the taps (= 5)


def _pick_chunk_rows(H, W, C):
    """Chunk height: target ~16 f32 vregs for the per-chunk accumulator so the
    49-term sum stays register-resident; must divide H (keeps scratch reads
    in-bounds without masking)."""
    vregs_per_row = -(-W // 8) * -(-C // 128)
    cap = max(1, 16 // vregs_per_row)
    for t in (8, 4, 2, 1):
        if t <= cap and H % t == 0:
            return t
    return 1


def _vmem_capacity_bytes():
    try:
        return int(pltpu.get_tpu_info().vmem_capacity_bytes)
    except Exception:
        return 64 << 20   # conservative fallback (v7x per-TensorCore VMEM)


def _make_kernel(H, W, C, TH):
    def kernel(x_ref, ca_ref, wdw_ref, bns_ref, bnb_ref, out_ref, xpad_s):
        # x_ref   : (1, H, W, C)   channel-shuffled input (NHWC), whole image
        # ca_ref  : (1, 1, 1, C)   per-batch channel attention (sigmoid'ed)
        # wdw_ref : (49, 1, 1, C)  depthwise 7x7 weights, tap-major, f32
        # bns/bnb : (1, 1, C)      folded BatchNorm scale / shift (eval mode)
        # out_ref : (1, TH, W, C)  row chunk of the output
        # xpad_s  : VMEM scratch (H+6, WOFF+W+PAD, C), input dtype
        r = pl.program_id(1)

        @pl.when(r == 0)
        def _build_padded():
            # Zero only the 3-wide border frame the taps actually read.
            # Invariant: nothing else ever writes these border regions, and the
            # interior is fully overwritten below, so per-batch zeroing of the
            # frame alone is sufficient.
            xpad_s[0:PAD, COL0:COL0 + W + 2 * PAD, :] = jnp.zeros(
                (PAD, W + 2 * PAD, C), xpad_s.dtype)
            xpad_s[PAD + H:2 * PAD + H, COL0:COL0 + W + 2 * PAD, :] = jnp.zeros(
                (PAD, W + 2 * PAD, C), xpad_s.dtype)
            xpad_s[PAD:PAD + H, COL0:WOFF, :] = jnp.zeros(
                (H, PAD, C), xpad_s.dtype)
            xpad_s[PAD:PAD + H, WOFF + W:WOFF + W + PAD, :] = jnp.zeros(
                (H, PAD, C), xpad_s.dtype)
            # Interior at column offset 8: sublane-aligned store (plain vst
            # when W % 8 == 0), unlike the old offset-3 masked store.
            xpad_s[PAD:PAD + H, WOFF:WOFF + W, :] = x_ref[0]

        h0 = pl.multiple_of(r * TH, TH)

        # Depthwise 7x7 conv on this TH-row chunk: one sublane-shifted window
        # load per dx (7 per chunk); dy indexes the free (untiled) leading dim;
        # the 49-term sum is a single expression, stored exactly once.
        acc = None
        for dx in range(KSIZE):
            slab = xpad_s[pl.ds(h0, TH + 2 * PAD),
                          COL0 + dx:COL0 + dx + W, :].astype(jnp.float32)
            for dy in range(KSIZE):
                term = slab[dy:dy + TH] * wdw_ref[dy * KSIZE + dx]
                acc = term if acc is None else acc + term

        # Folded BatchNorm (eval) + sigmoid as exp + reciprocal.
        z = acc * bns_ref[...] + bnb_ref[...]
        sa = pl.reciprocal(1.0 + jnp.exp(-z), approx=False)
        # TODO(synk): approx=True pushes the divide fully onto the EUP but
        # loosens accuracy to ~1e-3; kept exact to preserve 1e-4 parity.

        x_chunk = xpad_s[pl.ds(h0 + PAD, TH),
                         WOFF:WOFF + W, :].astype(jnp.float32)
        out_ref[0] = (x_chunk * ca_ref[0] * sa).astype(out_ref.dtype)

    return kernel


def shuffle_attention(x_nchw, w_ca, w_dw, gamma, beta, run_mean, run_var,
                      groups=2, eps=1e-5):
    """Pallas implementation of ShuffleAttention.forward (NCHW in / NCHW out)."""
    B, C, H, W = x_nchw.shape
    dt = x_nchw.dtype
    TH = _pick_chunk_rows(H, W, C)

    # --- glue: channel shuffle fused into ONE NCHW -> NHWC transpose ---
    xs_nhwc = jnp.transpose(
        x_nchw.reshape(B, groups, C // groups, H, W),
        (0, 3, 4, 2, 1)).reshape(B, H, W, C)                          # (B,H,W,C)

    # --- channel attention in XLA (tiny B*C^2; keeps the kernel row-tileable) ---
    # NOTE: pooled in f32 (negligible divergence vs PyTorch for bf16 inputs).
    pooled = jnp.mean(xs_nhwc.astype(jnp.float32), axis=(1, 2))       # (B, C)
    ca = jax.nn.sigmoid(pooled @ w_ca.reshape(C, C).T)                # (B, C)
    ca = ca.reshape(B, 1, 1, C).astype(jnp.float32)

    # --- depthwise weights (tap-major) + folded BatchNorm parameters ---
    # TODO(synk): BatchNorm is implemented in inference mode (folded running
    # stats); PyTorch train-mode per-batch statistics are not reproduced.
    wdw = jnp.transpose(w_dw.reshape(C, KSIZE * KSIZE), (1, 0))
    wdw = wdw.reshape(KSIZE * KSIZE, 1, 1, C).astype(jnp.float32)     # (49,1,1,C)
    inv_std = 1.0 / jnp.sqrt(run_var + eps)
    bn_scale = (gamma * inv_std).reshape(1, 1, C).astype(jnp.float32)
    bn_shift = (beta - run_mean * gamma * inv_std).reshape(1, 1, C).astype(jnp.float32)

    # --- generation-aware VMEM budget ---
    elem = jnp.dtype(dt).itemsize
    img_bytes = H * W * C * elem
    pad_bytes = (H + 2 * PAD) * (WOFF + W + PAD) * C * elem
    chunk_f32 = TH * W * C * 4
    vmem_need = (2 * img_bytes              # double-buffered whole-image input
                 + 2 * TH * W * C * elem    # double-buffered output chunk
                 + pad_bytes                # padded-image scratch (input dtype)
                 + 8 * chunk_f32            # slab / acc / sa working set
                 + (2 << 20))               # weights, ca, bn + headroom
    cap = max(_vmem_capacity_bytes(), 48 << 20)
    vmem_limit = int(min(cap - (8 << 20), max(32 << 20, vmem_need)))

    kernel = _make_kernel(H, W, C, TH)
    out_nhwc = pl.pallas_call(
        kernel,
        out_shape=jax.ShapeDtypeStruct((B, H, W, C), dt),
        grid_spec=pltpu.PrefetchScalarGridSpec(
            num_scalar_prefetch=0,
            grid=(B, H // TH),
            in_specs=[
                # whole image per batch; block index constant over r, so it is
                # only DMA'd when b changes
                pl.BlockSpec((1, H, W, C), lambda b, r: (b, 0, 0, 0)),
                pl.BlockSpec((1, 1, 1, C), lambda b, r: (b, 0, 0, 0)),          # ca
                pl.BlockSpec((KSIZE * KSIZE, 1, 1, C), lambda b, r: (0, 0, 0, 0)),  # wdw
                pl.BlockSpec((1, 1, C), lambda b, r: (0, 0, 0)),                # bn scale
                pl.BlockSpec((1, 1, C), lambda b, r: (0, 0, 0)),                # bn shift
            ],
            out_specs=pl.BlockSpec((1, TH, W, C), lambda b, r: (b, r, 0, 0)),
            scratch_shapes=[
                pltpu.VMEM((H + 2 * PAD, WOFF + W + PAD, C), dt)],
        ),
        compiler_params=pltpu.CompilerParams(
            dimension_semantics=("parallel", "arbitrary"),
            vmem_limit_bytes=vmem_limit),
    )(xs_nhwc, ca, wdw, bn_scale, bn_shift)

    # TODO(synk): for very large feature maps (e.g. 320x320x64) also row-tile
    # the INPUT with a 3-row halo via manual DMA (pl.ANY + make_async_copy) so
    # the whole-image input block / padded scratch fit v7x's 64 MiB VMEM.
    # TODO(synk): for production channel counts < 128 (e.g. 32/64), fold (W, C)
    # onto the lane axis for lane-dense stores.
    return jnp.transpose(out_nhwc, (0, 3, 1, 2))                      # back to NCHW


def shuffle_attention_ref(x, w_ca, w_dw, gamma, beta, rm, rv,
                          groups=2, eps=1e-5):
    """Pure-JAX reference mirroring the PyTorch forward (BN eval mode)."""
    B, C, H, W = x.shape
    xs = x.reshape(B, groups, C // groups, H, W)
    xs = jnp.transpose(xs, (0, 2, 1, 3, 4)).reshape(B, C, H, W)
    pooled = jnp.mean(xs, axis=(2, 3))                                # (B, C)
    ca = jax.nn.sigmoid(pooled @ w_ca.reshape(C, C).T)                # (B, C)
    conv = jax.lax.conv_general_dilated(
        xs, w_dw, window_strides=(1, 1), padding=((PAD, PAD), (PAD, PAD)),
        dimension_numbers=("NCHW", "OIHW", "NCHW"), feature_group_count=C)
    scale = gamma / jnp.sqrt(rv + eps)
    shift = beta - rm * scale
    sa = jax.nn.sigmoid(conv * scale[None, :, None, None]
                        + shift[None, :, None, None])
    return xs * ca[:, :, None, None] * sa


if __name__ == "__main__":
    B, C, H, W = 2, 4, 16, 16
    groups = 2

    key = jax.random.PRNGKey(0)
    k1, k2, k3, k4, k5, k6, k7 = jax.random.split(key, 7)
    x = jax.random.normal(k1, (B, C, H, W), jnp.float32)
    # parameters (deterministic, shapes from nn.Module __init__)
    w_ca = 0.1 * jax.random.normal(k2, (C, C, 1, 1), jnp.float32)   # Conv2d(C,C,1,bias=False)
    w_dw = 0.1 * jax.random.normal(k3, (C, 1, 7, 7), jnp.float32)   # depthwise Conv2d(C,C,7,groups=C)
    gamma = 1.0 + 0.1 * jax.random.normal(k4, (C,), jnp.float32)    # BatchNorm2d weight
    beta = 0.1 * jax.random.normal(k5, (C,), jnp.float32)           # BatchNorm2d bias
    run_mean = 0.1 * jax.random.normal(k6, (C,), jnp.float32)       # running_mean
    run_var = 1.0 + 0.5 * jax.random.uniform(k7, (C,), jnp.float32) # running_var

    out = shuffle_attention(x, w_ca, w_dw, gamma, beta, run_mean, run_var,
                            groups=groups)
    out = jax.block_until_ready(out)

    ref = shuffle_attention_ref(x, w_ca, w_dw, gamma, beta, run_mean, run_var,
                                groups=groups)
    assert out.shape == (B, C, H, W)
    assert bool(jnp.allclose(out, ref, atol=1e-4, rtol=1e-4)), "mismatch vs reference"
    print("KERNEL_OK")
</pallas_src>

<mosaic_0001>
module attributes {stable_mosaic.version = 11 : i64} {
  func.func @kernel(%arg0: i32, %arg1: i32, %arg2: memref<1x16x16x4xf32, #tpu.memory_space<vmem>>, %arg3: memref<1x1x1x4xf32, #tpu.memory_space<vmem>>, %arg4: memref<49x1x1x4xf32, #tpu.memory_space<vmem>>, %arg5: memref<1x1x4xf32, #tpu.memory_space<vmem>>, %arg6: memref<1x1x4xf32, #tpu.memory_space<vmem>>, %arg7: memref<1x8x16x4xf32, #tpu.memory_space<vmem>>, %arg8: memref<22x27x4xf32, #tpu.memory_space<vmem>>) attributes {dimension_semantics = [#tpu.dimension_semantics<parallel>, #tpu.dimension_semantics<arbitrary>], iteration_bounds = array<i64: 2, 2>, scalar_prefetch = 0 : i64, scratch_operands = 1 : i64, tpu.core_type = #tpu.core_type<tc>, window_params = [{transform_indices = @transform_0, window_bounds = array<i64: 1, 16, 16, 4>}, {transform_indices = @transform_1, window_bounds = array<i64: 1, 1, 1, 4>}, {pipeline_mode = #tpu.pipeline_mode<synchronous>, transform_indices = @transform_2, window_bounds = array<i64: 49, 1, 1, 4>}, {pipeline_mode = #tpu.pipeline_mode<synchronous>, transform_indices = @transform_3, window_bounds = array<i64: 1, 1, 4>}, {pipeline_mode = #tpu.pipeline_mode<synchronous>, transform_indices = @transform_4, window_bounds = array<i64: 1, 1, 4>}, {transform_indices = @transform_5, window_bounds = array<i64: 1, 8, 16, 4>}]} {
    %c0_i32 = arith.constant 0 : i32
    %0 = arith.cmpi eq, %arg1, %c0_i32 : i32
    %1 = arith.extui %0 : i1 to i32
    %c0_i32_0 = arith.constant 0 : i32
    %2 = arith.cmpi ne, %1, %c0_i32_0 : i32
    scf.if %2 {
      %cst_179 = arith.constant 0.000000e+00 : f32
      %335 = vector.broadcast %cst_179 : f32 to vector<3x22x4xf32>
      %c0_180 = arith.constant 0 : index
      %c5_181 = arith.constant 5 : index
      %c0_182 = arith.constant 0 : index
      %336 = vector.load %arg8[%c0_180, %c5_181, %c0_182] : memref<22x27x4xf32, #tpu.memory_space<vmem>>, vector<3x22x4xf32>
      tpu.vector_store %arg8[%c0_180, %c5_181, %c0_182], %335 {strides = array<i32>} : memref<22x27x4xf32, #tpu.memory_space<vmem>>, vector<3x22x4xf32>,
      %cst_183 = arith.constant 0.000000e+00 : f32
      %337 = vector.broadcast %cst_183 : f32 to vector<3x22x4xf32>
      %c19_184 = arith.constant 19 : index
      %c5_185 = arith.constant 5 : index
      %c0_186 = arith.constant 0 : index
      %338 = vector.load %arg8[%c19_184, %c5_185, %c0_186] : memref<22x27x4xf32, #tpu.memory_space<vmem>>, vector<3x22x4xf32>
      tpu.vector_store %arg8[%c19_184, %c5_185, %c0_186], %337 {strides = array<i32>} : memref<22x27x4xf32, #tpu.memory_space<vmem>>, vector<3x22x4xf32>,
      %cst_187 = arith.constant 0.000000e+00 : f32
      %339 = vector.broadcast %cst_187 : f32 to vector<16x3x4xf32>
      %c3_188 = arith.constant 3 : index
      %c5_189 = arith.constant 5 : index
      %c0_190 = arith.constant 0 : index
      %340 = vector.load %arg8[%c3_188, %c5_189, %c0_190] : memref<22x27x4xf32, #tpu.memory_space<vmem>>, vector<16x3x4xf32>
      tpu.vector_store %arg8[%c3_188, %c5_189, %c0_190], %339 {strides = array<i32>} : memref<22x27x4xf32, #tpu.memory_space<vmem>>, vector<16x3x4xf32>,
      %cst_191 = arith.constant 0.000000e+00 : f32
      %341 = vector.broadcast %cst_191 : f32 to vector<16x3x4xf32>
      %c3_192 = arith.constant 3 : index
      %c24_193 = arith.constant 24 : index
      %c0_194 = arith.constant 0 : index
      %342 = vector.load %arg8[%c3_192, %c24_193, %c0_194] : memref<22x27x4xf32, #tpu.memory_space<vmem>>, vector<16x3x4xf32>
      tpu.vector_store %arg8[%c3_192, %c24_193, %c0_194], %341 {strides = array<i32>} : memref<22x27x4xf32, #tpu.memory_space<vmem>>, vector<16x3x4xf32>,
      %c0_195 = arith.constant 0 : index
      %c0_196 = arith.constant 0 : index
      %c0_197 = arith.constant 0 : index
      %c0_198 = arith.constant 0 : index
      %343 = vector.load %arg2[%c0_195, %c0_196, %c0_197, %c0_198] : memref<1x16x16x4xf32, #tpu.memory_space<vmem>>, vector<1x16x16x4xf32>
      %344 = vector.shape_cast %343 : vector<1x16x16x4xf32> to vector<16x16x4xf32>
      %c3_199 = arith.constant 3 : index
      %c8_200 = arith.constant 8 : index
      %c0_201 = arith.constant 0 : index
      %345 = vector.load %arg8[%c3_199, %c8_200, %c0_201] : memref<22x27x4xf32, #tpu.memory_space<vmem>>, vector<16x16x4xf32>
      tpu.vector_store %arg8[%c3_199, %c8_200, %c0_201], %344 {strides = array<i32>} : memref<22x27x4xf32, #tpu.memory_space<vmem>>, vector<16x16x4xf32>,
    } else {
    }
    %c8_i32 = arith.constant 8 : i32
    %3 = arith.muli %arg1, %c8_i32 : i32
    %4 = tpu.assume_multiple %3, 8 : i32
    %5 = arith.index_cast %4 : i32 to index
    %c5 = arith.constant 5 : index
    %c0 = arith.constant 0 : index
    %6 = vector.load %arg8[%5, %c5, %c0] : memref<22x27x4xf32, #tpu.memory_space<vmem>>, vector<14x16x4xf32>
    %7 = vector.extract_strided_slice %6 {offsets = [0, 0, 0], sizes = [8, 16, 4], strides = [1, 1, 1]} : vector<14x16x4xf32> to vector<8x16x4xf32>
    %c0_1 = arith.constant 0 : index
    %c0_2 = arith.constant 0 : index
    %c0_3 = arith.constant 0 : index
    %c0_4 = arith.constant 0 : index
    %8 = vector.load %arg4[%c0_1, %c0_2, %c0_3, %c0_4] : memref<49x1x1x4xf32, #tpu.memory_space<vmem>>, vector<1x1x1x4xf32>
    %9 = vector.shape_cast %8 : vector<1x1x1x4xf32> to vector<1x1x4xf32>
    %10 = vector.broadcast %9 : vector<1x1x4xf32> to vector<8x16x4xf32>
    %11 = arith.mulf %7, %10 : vector<8x16x4xf32>
    %12 = vector.extract_strided_slice %6 {offsets = [1, 0, 0], sizes = [8, 16, 4], strides = [1, 1, 1]} : vector<14x16x4xf32> to vector<8x16x4xf32>
    %c7 = arith.constant 7 : index
    %c0_5 = arith.constant 0 : index
    %c0_6 = arith.constant 0 : index
    %c0_7 = arith.constant 0 : index
    %13 = vector.load %arg4[%c7, %c0_5, %c0_6, %c0_7] : memref<49x1x1x4xf32, #tpu.memory_space<vmem>>, vector<1x1x1x4xf32>
    %14 = vector.shape_cast %13 : vector<1x1x1x4xf32> to vector<1x1x4xf32>
    %15 = vector.broadcast %14 : vector<1x1x4xf32> to vector<8x16x4xf32>
    %16 = arith.mulf %12, %15 : vector<8x16x4xf32>
    %17 = arith.addf %11, %16 : vector<8x16x4xf32>
    %18 = vector.extract_strided_slice %6 {offsets = [2, 0, 0], sizes = [8, 16, 4], strides = [1, 1, 1]} : vector<14x16x4xf32> to vector<8x16x4xf32>
    %c14 = arith.constant 14 : index
    %c0_8 = arith.constant 0 : index
    %c0_9 = arith.constant 0 : index
    %c0_10 = arith.constant 0 : index
    %19 = vector.load %arg4[%c14, %c0_8, %c0_9, %c0_10] : memref<49x1x1x4xf32, #tpu.memory_space<vmem>>, vector<1x1x1x4xf32>
    %20 = vector.shape_cast %19 : vector<1x1x1x4xf32> to vector<1x1x4xf32>
    %21 = vector.broadcast %20 : vector<1x1x4xf32> to vector<8x16x4xf32>
    %22 = arith.mulf %18, %21 : vector<8x16x4xf32>
    %23 = arith.addf %17, %22 : vector<8x16x4xf32>
    %24 = vector.extract_strided_slice %6 {offsets = [3, 0, 0], sizes = [8, 16, 4], strides = [1, 1, 1]} : vector<14x16x4xf32> to vector<8x16x4xf32>
    %c21 = arith.constant 21 : index
    %c0_11 = arith.constant 0 : index
    %c0_12 = arith.constant 0 : index
    %c0_13 = arith.constant 0 : index
    %25 = vector.load %arg4[%c21, %c0_11, %c0_12, %c0_13] : memref<49x1x1x4xf32, #tpu.memory_space<vmem>>, vector<1x1x1x4xf32>
    %26 = vector.shape_cast %25 : vector<1x1x1x4xf32> to vector<1x1x4xf32>
    %27 = vector.broadcast %26 : vector<1x1x4xf32> to vector<8x16x4xf32>
    %28 = arith.mulf %24, %27 : vector<8x16x4xf32>
    %29 = arith.addf %23, %28 : vector<8x16x4xf32>
    %30 = vector.extract_strided_slice %6 {offsets = [4, 0, 0], sizes = [8, 16, 4], strides = [1, 1, 1]} : vector<14x16x4xf32> to vector<8x16x4xf32>
    %c28 = arith.constant 28 : index
    %c0_14 = arith.constant 0 : index
    %c0_15 = arith.constant 0 : index
    %c0_16 = arith.constant 0 : index
    %31 = vector.load %arg4[%c28, %c0_14, %c0_15, %c0_16] : memref<49x1x1x4xf32, #tpu.memory_space<vmem>>, vector<1x1x1x4xf32>
    %32 = vector.shape_cast %31 : vector<1x1x1x4xf32> to vector<1x1x4xf32>
    %33 = vector.broadcast %32 : vector<1x1x4xf32> to vector<8x16x4xf32>
    %34 = arith.mulf %30, %33 : vector<8x16x4xf32>
    %35 = arith.addf %29, %34 : vector<8x16x4xf32>
    %36 = vector.extract_strided_slice %6 {offsets = [5, 0, 0], sizes = [8, 16, 4], strides = [1, 1, 1]} : vector<14x16x4xf32> to vector<8x16x4xf32>
    %c35 = arith.constant 35 : index
    %c0_17 = arith.constant 0 : index
    %c0_18 = arith.constant 0 : index
    %c0_19 = arith.constant 0 : index
    %37 = vector.load %arg4[%c35, %c0_17, %c0_18, %c0_19] : memref<49x1x1x4xf32, #tpu.memory_space<vmem>>, vector<1x1x1x4xf32>
    %38 = vector.shape_cast %37 : vector<1x1x1x4xf32> to vector<1x1x4xf32>
    %39 = vector.broadcast %38 : vector<1x1x4xf32> to vector<8x16x4xf32>
    %40 = arith.mulf %36, %39 : vector<8x16x4xf32>
    %41 = arith.addf %35, %40 : vector<8x16x4xf32>
    %42 = vector.extract_strided_slice %6 {offsets = [6, 0, 0], sizes = [8, 16, 4], strides = [1, 1, 1]} : vector<14x16x4xf32> to vector<8x16x4xf32>
    %c42 = arith.constant 42 : index
    %c0_20 = arith.constant 0 : index
    %c0_21 = arith.constant 0 : index
    %c0_22 = arith.constant 0 : index
    %43 = vector.load %arg4[%c42, %c0_20, %c0_21, %c0_22] : memref<49x1x1x4xf32, #tpu.memory_space<vmem>>, vector<1x1x1x4xf32>
    %44 = vector.shape_cast %43 : vector<1x1x1x4xf32> to vector<1x1x4xf32>
    %45 = vector.broadcast %44 : vector<1x1x4xf32> to vector<8x16x4xf32>
    %46 = arith.mulf %42, %45 : vector<8x16x4xf32>
    %47 = arith.addf %41, %46 : vector<8x16x4xf32>
    %48 = arith.index_cast %4 : i32 to index
    %c6 = arith.constant 6 : index
    %c0_23 = arith.constant 0 : index
    %49 = vector.load %arg8[%48, %c6, %c0_23] : memref<22x27x4xf32, #tpu.memory_space<vmem>>, vector<14x16x4xf32>
    %50 = vector.extract_strided_slice %49 {offsets = [0, 0, 0], sizes = [8, 16, 4], strides = [1, 1, 1]} : vector<14x16x4xf32> to vector<8x16x4xf32>
    %c1 = arith.constant 1 : index
    %c0_24 = arith.constant 0 : index
    %c0_25 = arith.constant 0 : index
    %c0_26 = arith.constant 0 : index
    %51 = vector.load %arg4[%c1, %c0_24, %c0_25, %c0_26] : memref<49x1x1x4xf32, #tpu.memory_space<vmem>>, vector<1x1x1x4xf32>
    %52 = vector.shape_cast %51 : vector<1x1x1x4xf32> to vector<1x1x4xf32>
    %53 = vector.broadcast %52 : vector<1x1x4xf32> to vector<8x16x4xf32>
    %54 = arith.mulf %50, %53 : vector<8x16x4xf32>
    %55 = arith.addf %47, %54 : vector<8x16x4xf32>
    %56 = vector.extract_strided_slice %49 {offsets = [1, 0, 0], sizes = [8, 16, 4], strides = [1, 1, 1]} : vector<14x16x4xf32> to vector<8x16x4xf32>
    %c8 = arith.constant 8 : index
    %c0_27 = arith.constant 0 : index
    %c0_28 = arith.constant 0 : index
    %c0_29 = arith.constant 0 : index
    %57 = vector.load %arg4[%c8, %c0_27, %c0_28, %c0_29] : memref<49x1x1x4xf32, #tpu.memory_space<vmem>>, vector<1x1x1x4xf32>
    %58 = vector.shape_cast %57 : vector<1x1x1x4xf32> to vector<1x1x4xf32>
    %59 = vector.broadcast %58 : vector<1x1x4xf32> to vector<8x16x4xf32>
    %60 = arith.mulf %56, %59 : vector<8x16x4xf32>
    %61 = arith.addf %55, %60 : vector<8x16x4xf32>
    %62 = vector.extract_strided_slice %49 {offsets = [2, 0, 0], sizes = [8, 16, 4], strides = [1, 1, 1]} : vector<14x16x4xf32> to vector<8x16x4xf32>
    %c15 = arith.constant 15 : index
    %c0_30 = arith.constant 0 : index
    %c0_31 = arith.constant 0 : index
    %c0_32 = arith.constant 0 : index
    %63 = vector.load %arg4[%c15, %c0_30, %c0_31, %c0_32] : memref<49x1x1x4xf32, #tpu.memory_space<vmem>>, vector<1x1x1x4xf32>
    %64 = vector.shape_cast %63 : vector<1x1x1x4xf32> to vector<1x1x4xf32>
    %65 = vector.broadcast %64 : vector<1x1x4xf32> to vector<8x16x4xf32>
    %66 = arith.mulf %62, %65 : vector<8x16x4xf32>
    %67 = arith.addf %61, %66 : vector<8x16x4xf32>
    %68 = vector.extract_strided_slice %49 {offsets = [3, 0, 0], sizes = [8, 16, 4], strides = [1, 1, 1]} : vector<14x16x4xf32> to vector<8x16x4xf32>
    %c22 = arith.constant 22 : index
    %c0_33 = arith.constant 0 : index
    %c0_34 = arith.constant 0 : index
    %c0_35 = arith.constant 0 : index
    %69 = vector.load %arg4[%c22, %c0_33, %c0_34, %c0_35] : memref<49x1x1x4xf32, #tpu.memory_space<vmem>>, vector<1x1x1x4xf32>
    %70 = vector.shape_cast %69 : vector<1x1x1x4xf32> to vector<1x1x4xf32>
    %71 = vector.broadcast %70 : vector<1x1x4xf32> to vector<8x16x4xf32>
    %72 = arith.mulf %68, %71 : vector<8x16x4xf32>
    %73 = arith.addf %67, %72 : vector<8x16x4xf32>
    %74 = vector.extract_strided_slice %49 {offsets = [4, 0, 0], sizes = [8, 16, 4], strides = [1, 1, 1]} : vector<14x16x4xf32> to vector<8x16x4xf32>
    %c29 = arith.constant 29 : index
    %c0_36 = arith.constant 0 : index
    %c0_37 = arith.constant 0 : index
    %c0_38 = arith.constant 0 : index
    %75 = vector.load %arg4[%c29, %c0_36, %c0_37, %c0_38] : memref<49x1x1x4xf32, #tpu.memory_space<vmem>>, vector<1x1x1x4xf32>
    %76 = vector.shape_cast %75 : vector<1x1x1x4xf32> to vector<1x1x4xf32>
    %77 = vector.broadcast %76 : vector<1x1x4xf32> to vector<8x16x4xf32>
    %78 = arith.mulf %74, %77 : vector<8x16x4xf32>
    %79 = arith.addf %73, %78 : vector<8x16x4xf32>
    %80 = vector.extract_strided_slice %49 {offsets = [5, 0, 0], sizes = [8, 16, 4], strides = [1, 1, 1]} : vector<14x16x4xf32> to vector<8x16x4xf32>
    %c36 = arith.constant 36 : index
    %c0_39 = arith.constant 0 : index
    %c0_40 = arith.constant 0 : index
    %c0_41 = arith.constant 0 : index
    %81 = vector.load %arg4[%c36, %c0_39, %c0_40, %c0_41] : memref<49x1x1x4xf32, #tpu.memory_space<vmem>>, vector<1x1x1x4xf32>
    %82 = vector.shape_cast %81 : vector<1x1x1x4xf32> to vector<1x1x4xf32>
    %83 = vector.broadcast %82 : vector<1x1x4xf32> to vector<8x16x4xf32>
    %84 = arith.mulf %80, %83 : vector<8x16x4xf32>
    %85 = arith.addf %79, %84 : vector<8x16x4xf32>
    %86 = vector.extract_strided_slice %49 {offsets = [6, 0, 0], sizes = [8, 16, 4], strides = [1, 1, 1]} : vector<14x16x4xf32> to vector<8x16x4xf32>
    %c43 = arith.constant 43 : index
    %c0_42 = arith.constant 0 : index
    %c0_43 = arith.constant 0 : index
    %c0_44 = arith.constant 0 : index
    %87 = vector.load %arg4[%c43, %c0_42, %c0_43, %c0_44] : memref<49x1x1x4xf32, #tpu.memory_space<vmem>>, vector<1x1x1x4xf32>
    %88 = vector.shape_cast %87 : vector<1x1x1x4xf32> to vector<1x1x4xf32>
    %89 = vector.broadcast %88 : vector<1x1x4xf32> to vector<8x16x4xf32>
    %90 = arith.mulf %86, %89 : vector<8x16x4xf32>
    %91 = arith.addf %85, %90 : vector<8x16x4xf32>
    %92 = arith.index_cast %4 : i32 to index
    %c7_45 = arith.constant 7 : index
    %c0_46 = arith.constant 0 : index
    %93 = vector.load %arg8[%92, %c7_45, %c0_46] : memref<22x27x4xf32, #tpu.memory_space<vmem>>, vector<14x16x4xf32>
    %94 = vector.extract_strided_slice %93 {offsets = [0, 0, 0], sizes = [8, 16, 4], strides = [1, 1, 1]} : vector<14x16x4xf32> to vector<8x16x4xf32>
    %c2 = arith.constant 2 : index
    %c0_47 = arith.constant 0 : index
    %c0_48 = arith.constant 0 : index
    %c0_49 = arith.constant 0 : index
    %95 = vector.load %arg4[%c2, %c0_47, %c0_48, %c0_49] : memref<49x1x1x4xf32, #tpu.memory_space<vmem>>, vector<1x1x1x4xf32>
    %96 = vector.shape_cast %95 : vector<1x1x1x4xf32> to vector<1x1x4xf32>
    %97 = vector.broadcast %96 : vector<1x1x4xf32> to vector<8x16x4xf32>
    %98 = arith.mulf %94, %97 : vector<8x16x4xf32>
    %99 = arith.addf %91, %98 : vector<8x16x4xf32>
    %100 = vector.extract_strided_slice %93 {offsets = [1, 0, 0], sizes = [8, 16, 4], strides = [1, 1, 1]} : vector<14x16x4xf32> to vector<8x16x4xf32>
    %c9 = arith.constant 9 : index
    %c0_50 = arith.constant 0 : index
    %c0_51 = arith.constant 0 : index
    %c0_52 = arith.constant 0 : index
    %101 = vector.load %arg4[%c9, %c0_50, %c0_51, %c0_52] : memref<49x1x1x4xf32, #tpu.memory_space<vmem>>, vector<1x1x1x4xf32>
    %102 = vector.shape_cast %101 : vector<1x1x1x4xf32> to vector<1x1x4xf32>
    %103 = vector.broadcast %102 : vector<1x1x4xf32> to vector<8x16x4xf32>
    %104 = arith.mulf %100, %103 : vector<8x16x4xf32>
    %105 = arith.addf %99, %104 : vector<8x16x4xf32>
    %106 = vector.extract_strided_slice %93 {offsets = [2, 0, 0], sizes = [8, 16, 4], strides = [1, 1, 1]} : vector<14x16x4xf32> to vector<8x16x4xf32>
    %c16 = arith.constant 16 : index
    %c0_53 = arith.constant 0 : index
    %c0_54 = arith.constant 0 : index
    %c0_55 = arith.constant 0 : index
    %107 = vector.load %arg4[%c16, %c0_53, %c0_54, %c0_55] : memref<49x1x1x4xf32, #tpu.memory_space<vmem>>, vector<1x1x1x4xf32>
    %108 = vector.shape_cast %107 : vector<1x1x1x4xf32> to vector<1x1x4xf32>
    %109 = vector.broadcast %108 : vector<1x1x4xf32> to vector<8x16x4xf32>
    %110 = arith.mulf %106, %109 : vector<8x16x4xf32>
    %111 = arith.addf %105, %110 : vector<8x16x4xf32>
    %112 = vector.extract_strided_slice %93 {offsets = [3, 0, 0], sizes = [8, 16, 4], strides = [1, 1, 1]} : vector<14x16x4xf32> to vector<8x16x4xf32>
    %c23 = arith.constant 23 : index
    %c0_56 = arith.constant 0 : index
    %c0_57 = arith.constant 0 : index
    %c0_58 = arith.constant 0 : index
    %113 = vector.load %arg4[%c23, %c0_56, %c0_57, %c0_58] : memref<49x1x1x4xf32, #tpu.memory_space<vmem>>, vector<1x1x1x4xf32>
    %114 = vector.shape_cast %113 : vector<1x1x1x4xf32> to vector<1x1x4xf32>
    %115 = vector.broadcast %114 : vector<1x1x4xf32> to vector<8x16x4xf32>
    %116 = arith.mulf %112, %115 : vector<8x16x4xf32>
    %117 = arith.addf %111, %116 : vector<8x16x4xf32>
    %118 = vector.extract_strided_slice %93 {offsets = [4, 0, 0], sizes = [8, 16, 4], strides = [1, 1, 1]} : vector<14x16x4xf32> to vector<8x16x4xf32>
    %c30 = arith.constant 30 : index
    %c0_59 = arith.constant 0 : index
    %c0_60 = arith.constant 0 : index
    %c0_61 = arith.constant 0 : index
    %119 = vector.load %arg4[%c30, %c0_59, %c0_60, %c0_61] : memref<49x1x1x4xf32, #tpu.memory_space<vmem>>, vector<1x1x1x4xf32>
    %120 = vector.shape_cast %119 : vector<1x1x1x4xf32> to vector<1x1x4xf32>
    %121 = vector.broadcast %120 : vector<1x1x4xf32> to vector<8x16x4xf32>
    %122 = arith.mulf %118, %121 : vector<8x16x4xf32>
    %123 = arith.addf %117, %122 : vector<8x16x4xf32>
    %124 = vector.extract_strided_slice %93 {offsets = [5, 0, 0], sizes = [8, 16, 4], strides = [1, 1, 1]} : vector<14x16x4xf32> to vector<8x16x4xf32>
    %c37 = arith.constant 37 : index
    %c0_62 = arith.constant 0 : index
    %c0_63 = arith.constant 0 : index
    %c0_64 = arith.constant 0 : index
    %125 = vector.load %arg4[%c37, %c0_62, %c0_63, %c0_64] : memref<49x1x1x4xf32, #tpu.memory_space<vmem>>, vector<1x1x1x4xf32>
    %126 = vector.shape_cast %125 : vector<1x1x1x4xf32> to vector<1x1x4xf32>
    %127 = vector.broadcast %126 : vector<1x1x4xf32> to vector<8x16x4xf32>
    %128 = arith.mulf %124, %127 : vector<8x16x4xf32>
    %129 = arith.addf %123, %128 : vector<8x16x4xf32>
    %130 = vector.extract_strided_slice %93 {offsets = [6, 0, 0], sizes = [8, 16, 4], strides = [1, 1, 1]} : vector<14x16x4xf32> to vector<8x16x4xf32>
    %c44 = arith.constant 44 : index
    %c0_65 = arith.constant 0 : index
    %c0_66 = arith.constant 0 : index
    %c0_67 = arith.constant 0 : index
    %131 = vector.load %arg4[%c44, %c0_65, %c0_66, %c0_67] : memref<49x1x1x4xf32, #tpu.memory_space<vmem>>, vector<1x1x1x4xf32>
    %132 = vector.shape_cast %131 : vector<1x1x1x4xf32> to vector<1x1x4xf32>
    %133 = vector.broadcast %132 : vector<1x1x4xf32> to vector<8x16x4xf32>
    %134 = arith.mulf %130, %133 : vector<8x16x4xf32>
    %135 = arith.addf %129, %134 : vector<8x16x4xf32>
    %136 = arith.index_cast %4 : i32 to index
    %c8_68 = arith.constant 8 : index
    %c0_69 = arith.constant 0 : index
    %137 = vector.load %arg8[%136, %c8_68, %c0_69] : memref<22x27x4xf32, #tpu.memory_space<vmem>>, vector<14x16x4xf32>
    %138 = vector.extract_strided_slice %137 {offsets = [0, 0, 0], sizes = [8, 16, 4], strides = [1, 1, 1]} : vector<14x16x4xf32> to vector<8x16x4xf32>
    %c3 = arith.constant 3 : index
    %c0_70 = arith.constant 0 : index
    %c0_71 = arith.constant 0 : index
    %c0_72 = arith.constant 0 : index
    %139 = vector.load %arg4[%c3, %c0_70, %c0_71, %c0_72] : memref<49x1x1x4xf32, #tpu.memory_space<vmem>>, vector<1x1x1x4xf32>
    %140 = vector.shape_cast %139 : vector<1x1x1x4xf32> to vector<1x1x4xf32>
    %141 = vector.broadcast %140 : vector<1x1x4xf32> to vector<8x16x4xf32>
    %142 = arith.mulf %138, %141 : vector<8x16x4xf32>
    %143 = arith.addf %135, %142 : vector<8x16x4xf32>
    %144 = vector.extract_strided_slice %137 {offsets = [1, 0, 0], sizes = [8, 16, 4], strides = [1, 1, 1]} : vector<14x16x4xf32> to vector<8x16x4xf32>
    %c10 = arith.constant 10 : index
    %c0_73 = arith.constant 0 : index
    %c0_74 = arith.constant 0 : index
    %c0_75 = arith.constant 0 : index
    %145 = vector.load %arg4[%c10, %c0_73, %c0_74, %c0_75] : memref<49x1x1x4xf32, #tpu.memory_space<vmem>>, vector<1x1x1x4xf32>
    %146 = vector.shape_cast %145 : vector<1x1x1x4xf32> to vector<1x1x4xf32>
    %147 = vector.broadcast %146 : vector<1x1x4xf32> to vector<8x16x4xf32>
    %148 = arith.mulf %144, %147 : vector<8x16x4xf32>
    %149 = arith.addf %143, %148 : vector<8x16x4xf32>
    %150 = vector.extract_strided_slice %137 {offsets = [2, 0, 0], sizes = [8, 16, 4], strides = [1, 1, 1]} : vector<14x16x4xf32> to vector<8x16x4xf32>
    %c17 = arith.constant 17 : index
    %c0_76 = arith.constant 0 : index
    %c0_77 = arith.constant 0 : index
    %c0_78 = arith.constant 0 : index
    %151 = vector.load %arg4[%c17, %c0_76, %c0_77, %c0_78] : memref<49x1x1x4xf32, #tpu.memory_space<vmem>>, vector<1x1x1x4xf32>
    %152 = vector.shape_cast %151 : vector<1x1x1x4xf32> to vector<1x1x4xf32>
    %153 = vector.broadcast %152 : vector<1x1x4xf32> to vector<8x16x4xf32>
    %154 = arith.mulf %150, %153 : vector<8x16x4xf32>
    %155 = arith.addf %149, %154 : vector<8x16x4xf32>
    %156 = vector.extract_strided_slice %137 {offsets = [3, 0, 0], sizes = [8, 16, 4], strides = [1, 1, 1]} : vector<14x16x4xf32> to vector<8x16x4xf32>
    %c24 = arith.constant 24 : index
    %c0_79 = arith.constant 0 : index
    %c0_80 = arith.constant 0 : index
    %c0_81 = arith.constant 0 : index
    %157 = vector.load %arg4[%c24, %c0_79, %c0_80, %c0_81] : memref<49x1x1x4xf32, #tpu.memory_space<vmem>>, vector<1x1x1x4xf32>
    %158 = vector.shape_cast %157 : vector<1x1x1x4xf32> to vector<1x1x4xf32>
    %159 = vector.broadcast %158 : vector<1x1x4xf32> to vector<8x16x4xf32>
    %160 = arith.mulf %156, %159 : vector<8x16x4xf32>
    %161 = arith.addf %155, %160 : vector<8x16x4xf32>
    %162 = vector.extract_strided_slice %137 {offsets = [4, 0, 0], sizes = [8, 16, 4], strides = [1, 1, 1]} : vector<14x16x4xf32> to vector<8x16x4xf32>
    %c31 = arith.constant 31 : index
    %c0_82 = arith.constant 0 : index
    %c0_83 = arith.constant 0 : index
    %c0_84 = arith.constant 0 : index
    %163 = vector.load %arg4[%c31, %c0_82, %c0_83, %c0_84] : memref<49x1x1x4xf32, #tpu.memory_space<vmem>>, vector<1x1x1x4xf32>
    %164 = vector.shape_cast %163 : vector<1x1x1x4xf32> to vector<1x1x4xf32>
    %165 = vector.broadcast %164 : vector<1x1x4xf32> to vector<8x16x4xf32>
    %166 = arith.mulf %162, %165 : vector<8x16x4xf32>
    %167 = arith.addf %161, %166 : vector<8x16x4xf32>
    %168 = vector.extract_strided_slice %137 {offsets = [5, 0, 0], sizes = [8, 16, 4], strides = [1, 1, 1]} : vector<14x16x4xf32> to vector<8x16x4xf32>
    %c38 = arith.constant 38 : index
    %c0_85 = arith.constant 0 : index
    %c0_86 = arith.constant 0 : index
    %c0_87 = arith.constant 0 : index
    %169 = vector.load %arg4[%c38, %c0_85, %c0_86, %c0_87] : memref<49x1x1x4xf32, #tpu.memory_space<vmem>>, vector<1x1x1x4xf32>
    %170 = vector.shape_cast %169 : vector<1x1x1x4xf32> to vector<1x1x4xf32>
    %171 = vector.broadcast %170 : vector<1x1x4xf32> to vector<8x16x4xf32>
    %172 = arith.mulf %168, %171 : vector<8x16x4xf32>
    %173 = arith.addf %167, %172 : vector<8x16x4xf32>
    %174 = vector.extract_strided_slice %137 {offsets = [6, 0, 0], sizes = [8, 16, 4], strides = [1, 1, 1]} : vector<14x16x4xf32> to vector<8x16x4xf32>
    %c45 = arith.constant 45 : index
    %c0_88 = arith.constant 0 : index
    %c0_89 = arith.constant 0 : index
    %c0_90 = arith.constant 0 : index
    %175 = vector.load %arg4[%c45, %c0_88, %c0_89, %c0_90] : memref<49x1x1x4xf32, #tpu.memory_space<vmem>>, vector<1x1x1x4xf32>
    %176 = vector.shape_cast %175 : vector<1x1x1x4xf32> to vector<1x1x4xf32>
    %177 = vector.broadcast %176 : vector<1x1x4xf32> to vector<8x16x4xf32>
    %178 = arith.mulf %174, %177 : vector<8x16x4xf32>
    %179 = arith.addf %173, %178 : vector<8x16x4xf32>
    %180 = arith.index_cast %4 : i32 to index
    %c9_91 = arith.constant 9 : index
    %c0_92 = arith.constant 0 : index
    %181 = vector.load %arg8[%180, %c9_91, %c0_92] : memref<22x27x4xf32, #tpu.memory_space<vmem>>, vector<14x16x4xf32>
    %182 = vector.extract_strided_slice %181 {offsets = [0, 0, 0], sizes = [8, 16, 4], strides = [1, 1, 1]} : vector<14x16x4xf32> to vector<8x16x4xf32>
    %c4 = arith.constant 4 : index
    %c0_93 = arith.constant 0 : index
    %c0_94 = arith.constant 0 : index
    %c0_95 = arith.constant 0 : index
    %183 = vector.load %arg4[%c4, %c0_93, %c0_94, %c0_95] : memref<49x1x1x4xf32, #tpu.memory_space<vmem>>, vector<1x1x1x4xf32>
    %184 = vector.shape_cast %183 : vector<1x1x1x4xf32> to vector<1x1x4xf32>
    %185 = vector.broadcast %184 : vector<1x1x4xf32> to vector<8x16x4xf32>
    %186 = arith.mulf %182, %185 : vector<8x16x4xf32>
    %187 = arith.addf %179, %186 : vector<8x16x4xf32>
    %188 = vector.extract_strided_slice %181 {offsets = [1, 0, 0], sizes = [8, 16, 4], strides = [1, 1, 1]} : vector<14x16x4xf32> to vector<8x16x4xf32>
    %c11 = arith.constant 11 : index
    %c0_96 = arith.constant 0 : index
    %c0_97 = arith.constant 0 : index
    %c0_98 = arith.constant 0 : index
    %189 = vector.load %arg4[%c11, %c0_96, %c0_97, %c0_98] : memref<49x1x1x4xf32, #tpu.memory_space<vmem>>, vector<1x1x1x4xf32>
    %190 = vector.shape_cast %189 : vector<1x1x1x4xf32> to vector<1x1x4xf32>
    %191 = vector.broadcast %190 : vector<1x1x4xf32> to vector<8x16x4xf32>
    %192 = arith.mulf %188, %191 : vector<8x16x4xf32>
    %193 = arith.addf %187, %192 : vector<8x16x4xf32>
    %194 = vector.extract_strided_slice %181 {offsets = [2, 0, 0], sizes = [8, 16, 4], strides = [1, 1, 1]} : vector<14x16x4xf32> to vector<8x16x4xf32>
    %c18 = arith.constant 18 : index
    %c0_99 = arith.constant 0 : index
    %c0_100 = arith.constant 0 : index
    %c0_101 = arith.constant 0 : index
    %195 = vector.load %arg4[%c18, %c0_99, %c0_100, %c0_101] : memref<49x1x1x4xf32, #tpu.memory_space<vmem>>, vector<1x1x1x4xf32>
    %196 = vector.shape_cast %195 : vector<1x1x1x4xf32> to vector<1x1x4xf32>
    %197 = vector.broadcast %196 : vector<1x1x4xf32> to vector<8x16x4xf32>
    %198 = arith.mulf %194, %197 : vector<8x16x4xf32>
    %199 = arith.addf %193, %198 : vector<8x16x4xf32>
    %200 = vector.extract_strided_slice %181 {offsets = [3, 0, 0], sizes = [8, 16, 4], strides = [1, 1, 1]} : vector<14x16x4xf32> to vector<8x16x4xf32>
    %c25 = arith.constant 25 : index
    %c0_102 = arith.constant 0 : index
    %c0_103 = arith.constant 0 : index
    %c0_104 = arith.constant 0 : index
    %201 = vector.load %arg4[%c25, %c0_102, %c0_103, %c0_104] : memref<49x1x1x4xf32, #tpu.memory_space<vmem>>, vector<1x1x1x4xf32>
    %202 = vector.shape_cast %201 : vector<1x1x1x4xf32> to vector<1x1x4xf32>
    %203 = vector.broadcast %202 : vector<1x1x4xf32> to vector<8x16x4xf32>
    %204 = arith.mulf %200, %203 : vector<8x16x4xf32>
    %205 = arith.addf %199, %204 : vector<8x16x4xf32>
    %206 = vector.extract_strided_slice %181 {offsets = [4, 0, 0], sizes = [8, 16, 4], strides = [1, 1, 1]} : vector<14x16x4xf32> to vector<8x16x4xf32>
    %c32 = arith.constant 32 : index
    %c0_105 = arith.constant 0 : index
    %c0_106 = arith.constant 0 : index
    %c0_107 = arith.constant 0 : index
    %207 = vector.load %arg4[%c32, %c0_105, %c0_106, %c0_107] : memref<49x1x1x4xf32, #tpu.memory_space<vmem>>, vector<1x1x1x4xf32>
    %208 = vector.shape_cast %207 : vector<1x1x1x4xf32> to vector<1x1x4xf32>
    %209 = vector.broadcast %208 : vector<1x1x4xf32> to vector<8x16x4xf32>
    %210 = arith.mulf %206, %209 : vector<8x16x4xf32>
    %211 = arith.addf %205, %210 : vector<8x16x4xf32>
    %212 = vector.extract_strided_slice %181 {offsets = [5, 0, 0], sizes = [8, 16, 4], strides = [1, 1, 1]} : vector<14x16x4xf32> to vector<8x16x4xf32>
    %c39 = arith.constant 39 : index
    %c0_108 = arith.constant 0 : index
    %c0_109 = arith.constant 0 : index
    %c0_110 = arith.constant 0 : index
    %213 = vector.load %arg4[%c39, %c0_108, %c0_109, %c0_110] : memref<49x1x1x4xf32, #tpu.memory_space<vmem>>, vector<1x1x1x4xf32>
    %214 = vector.shape_cast %213 : vector<1x1x1x4xf32> to vector<1x1x4xf32>
    %215 = vector.broadcast %214 : vector<1x1x4xf32> to vector<8x16x4xf32>
    %216 = arith.mulf %212, %215 : vector<8x16x4xf32>
    %217 = arith.addf %211, %216 : vector<8x16x4xf32>
    %218 = vector.extract_strided_slice %181 {offsets = [6, 0, 0], sizes = [8, 16, 4], strides = [1, 1, 1]} : vector<14x16x4xf32> to vector<8x16x4xf32>
    %c46 = arith.constant 46 : index
    %c0_111 = arith.constant 0 : index
    %c0_112 = arith.constant 0 : index
    %c0_113 = arith.constant 0 : index
    %219 = vector.load %arg4[%c46, %c0_111, %c0_112, %c0_113] : memref<49x1x1x4xf32, #tpu.memory_space<vmem>>, vector<1x1x1x4xf32>
    %220 = vector.shape_cast %219 : vector<1x1x1x4xf32> to vector<1x1x4xf32>
    %221 = vector.broadcast %220 : vector<1x1x4xf32> to vector<8x16x4xf32>
    %222 = arith.mulf %218, %221 : vector<8x16x4xf32>
    %223 = arith.addf %217, %222 : vector<8x16x4xf32>
    %224 = arith.index_cast %4 : i32 to index
    %c10_114 = arith.constant 10 : index
    %c0_115 = arith.constant 0 : index
    %225 = vector.load %arg8[%224, %c10_114, %c0_115] : memref<22x27x4xf32, #tpu.memory_space<vmem>>, vector<14x16x4xf32>
    %226 = vector.extract_strided_slice %225 {offsets = [0, 0, 0], sizes = [8, 16, 4], strides = [1, 1, 1]} : vector<14x16x4xf32> to vector<8x16x4xf32>
    %c5_116 = arith.constant 5 : index
    %c0_117 = arith.constant 0 : index
    %c0_118 = arith.constant 0 : index
    %c0_119 = arith.constant 0 : index
    %227 = vector.load %arg4[%c5_116, %c0_117, %c0_118, %c0_119] : memref<49x1x1x4xf32, #tpu.memory_space<vmem>>, vector<1x1x1x4xf32>
    %228 = vector.shape_cast %227 : vector<1x1x1x4xf32> to vector<1x1x4xf32>
    %229 = vector.broadcast %228 : vector<1x1x4xf32> to vector<8x16x4xf32>
    %230 = arith.mulf %226, %229 : vector<8x16x4xf32>
    %231 = arith.addf %223, %230 : vector<8x16x4xf32>
    %232 = vector.extract_strided_slice %225 {offsets = [1, 0, 0], sizes = [8, 16, 4], strides = [1, 1, 1]} : vector<14x16x4xf32> to vector<8x16x4xf32>
    %c12 = arith.constant 12 : index
    %c0_120 = arith.constant 0 : index
    %c0_121 = arith.constant 0 : index
    %c0_122 = arith.constant 0 : index
    %233 = vector.load %arg4[%c12, %c0_120, %c0_121, %c0_122] : memref<49x1x1x4xf32, #tpu.memory_space<vmem>>, vector<1x1x1x4xf32>
    %234 = vector.shape_cast %233 : vector<1x1x1x4xf32> to vector<1x1x4xf32>
    %235 = vector.broadcast %234 : vector<1x1x4xf32> to vector<8x16x4xf32>
    %236 = arith.mulf %232, %235 : vector<8x16x4xf32>
    %237 = arith.addf %231, %236 : vector<8x16x4xf32>
    %238 = vector.extract_strided_slice %225 {offsets = [2, 0, 0], sizes = [8, 16, 4], strides = [1, 1, 1]} : vector<14x16x4xf32> to vector<8x16x4xf32>
    %c19 = arith.constant 19 : index
    %c0_123 = arith.constant 0 : index
    %c0_124 = arith.constant 0 : index
    %c0_125 = arith.constant 0 : index
    %239 = vector.load %arg4[%c19, %c0_123, %c0_124, %c0_125] : memref<49x1x1x4xf32, #tpu.memory_space<vmem>>, vector<1x1x1x4xf32>
    %240 = vector.shape_cast %239 : vector<1x1x1x4xf32> to vector<1x1x4xf32>
    %241 = vector.broadcast %240 : vector<1x1x4xf32> to vector<8x16x4xf32>
    %242 = arith.mulf %238, %241 : vector<8x16x4xf32>
    %243 = arith.addf %237, %242 : vector<8x16x4xf32>
    %244 = vector.extract_strided_slice %225 {offsets = [3, 0, 0], sizes = [8, 16, 4], strides = [1, 1, 1]} : vector<14x16x4xf32> to vector<8x16x4xf32>
    %c26 = arith.constant 26 : index
    %c0_126 = arith.constant 0 : index
    %c0_127 = arith.constant 0 : index
    %c0_128 = arith.constant 0 : index
    %245 = vector.load %arg4[%c26, %c0_126, %c0_127, %c0_128] : memref<49x1x1x4xf32, #tpu.memory_space<vmem>>, vector<1x1x1x4xf32>
    %246 = vector.shape_cast %245 : vector<1x1x1x4xf32> to vector<1x1x4xf32>
    %247 = vector.broadcast %246 : vector<1x1x4xf32> to vector<8x16x4xf32>
    %248 = arith.mulf %244, %247 : vector<8x16x4xf32>
    %249 = arith.addf %243, %248 : vector<8x16x4xf32>
    %250 = vector.extract_strided_slice %225 {offsets = [4, 0, 0], sizes = [8, 16, 4], strides = [1, 1, 1]} : vector<14x16x4xf32> to vector<8x16x4xf32>
    %c33 = arith.constant 33 : index
    %c0_129 = arith.constant 0 : index
    %c0_130 = arith.constant 0 : index
    %c0_131 = arith.constant 0 : index
    %251 = vector.load %arg4[%c33, %c0_129, %c0_130, %c0_131] : memref<49x1x1x4xf32, #tpu.memory_space<vmem>>, vector<1x1x1x4xf32>
    %252 = vector.shape_cast %251 : vector<1x1x1x4xf32> to vector<1x1x4xf32>
    %253 = vector.broadcast %252 : vector<1x1x4xf32> to vector<8x16x4xf32>
    %254 = arith.mulf %250, %253 : vector<8x16x4xf32>
    %255 = arith.addf %249, %254 : vector<8x16x4xf32>
    %256 = vector.extract_strided_slice %225 {offsets = [5, 0, 0], sizes = [8, 16, 4], strides = [1, 1, 1]} : vector<14x16x4xf32> to vector<8x16x4xf32>
    %c40 = arith.constant 40 : index
    %c0_132 = arith.constant 0 : index
    %c0_133 = arith.constant 0 : index
    %c0_134 = arith.constant 0 : index
    %257 = vector.load %arg4[%c40, %c0_132, %c0_133, %c0_134] : memref<49x1x1x4xf32, #tpu.memory_space<vmem>>, vector<1x1x1x4xf32>
    %258 = vector.shape_cast %257 : vector<1x1x1x4xf32> to vector<1x1x4xf32>
    %259 = vector.broadcast %258 : vector<1x1x4xf32> to vector<8x16x4xf32>
    %260 = arith.mulf %256, %259 : vector<8x16x4xf32>
    %261 = arith.addf %255, %260 : vector<8x16x4xf32>
    %262 = vector.extract_strided_slice %225 {offsets = [6, 0, 0], sizes = [8, 16, 4], strides = [1, 1, 1]} : vector<14x16x4xf32> to vector<8x16x4xf32>
    %c47 = arith.constant 47 : index
    %c0_135 = arith.constant 0 : index
    %c0_136 = arith.constant 0 : index
    %c0_137 = arith.constant 0 : index
    %263 = vector.load %arg4[%c47, %c0_135, %c0_136, %c0_137] : memref<49x1x1x4xf32, #tpu.memory_space<vmem>>, vector<1x1x1x4xf32>
    %264 = vector.shape_cast %263 : vector<1x1x1x4xf32> to vector<1x1x4xf32>
    %265 = vector.broadcast %264 : vector<1x1x4xf32> to vector<8x16x4xf32>
    %266 = arith.mulf %262, %265 : vector<8x16x4xf32>
    %267 = arith.addf %261, %266 : vector<8x16x4xf32>
    %268 = arith.index_cast %4 : i32 to index
    %c11_138 = arith.constant 11 : index
    %c0_139 = arith.constant 0 : index
    %269 = vector.load %arg8[%268, %c11_138, %c0_139] : memref<22x27x4xf32, #tpu.memory_space<vmem>>, vector<14x16x4xf32>
    %270 = vector.extract_strided_slice %269 {offsets = [0, 0, 0], sizes = [8, 16, 4], strides = [1, 1, 1]} : vector<14x16x4xf32> to vector<8x16x4xf32>
    %c6_140 = arith.constant 6 : index
    %c0_141 = arith.constant 0 : index
    %c0_142 = arith.constant 0 : index
    %c0_143 = arith.constant 0 : index
    %271 = vector.load %arg4[%c6_140, %c0_141, %c0_142, %c0_143] : memref<49x1x1x4xf32, #tpu.memory_space<vmem>>, vector<1x1x1x4xf32>
    %272 = vector.shape_cast %271 : vector<1x1x1x4xf32> to vector<1x1x4xf32>
    %273 = vector.broadcast %272 : vector<1x1x4xf32> to vector<8x16x4xf32>
    %274 = arith.mulf %270, %273 : vector<8x16x4xf32>
    %275 = arith.addf %267, %274 : vector<8x16x4xf32>
    %276 = vector.extract_strided_slice %269 {offsets = [1, 0, 0], sizes = [8, 16, 4], strides = [1, 1, 1]} : vector<14x16x4xf32> to vector<8x16x4xf32>
    %c13 = arith.constant 13 : index
    %c0_144 = arith.constant 0 : index
    %c0_145 = arith.constant 0 : index
    %c0_146 = arith.constant 0 : index
    %277 = vector.load %arg4[%c13, %c0_144, %c0_145, %c0_146] : memref<49x1x1x4xf32, #tpu.memory_space<vmem>>, vector<1x1x1x4xf32>
    %278 = vector.shape_cast %277 : vector<1x1x1x4xf32> to vector<1x1x4xf32>
    %279 = vector.broadcast %278 : vector<1x1x4xf32> to vector<8x16x4xf32>
    %280 = arith.mulf %276, %279 : vector<8x16x4xf32>
    %281 = arith.addf %275, %280 : vector<8x16x4xf32>
    %282 = vector.extract_strided_slice %269 {offsets = [2, 0, 0], sizes = [8, 16, 4], strides = [1, 1, 1]} : vector<14x16x4xf32> to vector<8x16x4xf32>
    %c20 = arith.constant 20 : index
    %c0_147 = arith.constant 0 : index
    %c0_148 = arith.constant 0 : index
    %c0_149 = arith.constant 0 : index
    %283 = vector.load %arg4[%c20, %c0_147, %c0_148, %c0_149] : memref<49x1x1x4xf32, #tpu.memory_space<vmem>>, vector<1x1x1x4xf32>
    %284 = vector.shape_cast %283 : vector<1x1x1x4xf32> to vector<1x1x4xf32>
    %285 = vector.broadcast %284 : vector<1x1x4xf32> to vector<8x16x4xf32>
    %286 = arith.mulf %282, %285 : vector<8x16x4xf32>
    %287 = arith.addf %281, %286 : vector<8x16x4xf32>
    %288 = vector.extract_strided_slice %269 {offsets = [3, 0, 0], sizes = [8, 16, 4], strides = [1, 1, 1]} : vector<14x16x4xf32> to vector<8x16x4xf32>
    %c27 = arith.constant 27 : index
    %c0_150 = arith.constant 0 : index
    %c0_151 = arith.constant 0 : index
    %c0_152 = arith.constant 0 : index
    %289 = vector.load %arg4[%c27, %c0_150, %c0_151, %c0_152] : memref<49x1x1x4xf32, #tpu.memory_space<vmem>>, vector<1x1x1x4xf32>
    %290 = vector.shape_cast %289 : vector<1x1x1x4xf32> to vector<1x1x4xf32>
    %291 = vector.broadcast %290 : vector<1x1x4xf32> to vector<8x16x4xf32>
    %292 = arith.mulf %288, %291 : vector<8x16x4xf32>
    %293 = arith.addf %287, %292 : vector<8x16x4xf32>
    %294 = vector.extract_strided_slice %269 {offsets = [4, 0, 0], sizes = [8, 16, 4], strides = [1, 1, 1]} : vector<14x16x4xf32> to vector<8x16x4xf32>
    %c34 = arith.constant 34 : index
    %c0_153 = arith.constant 0 : index
    %c0_154 = arith.constant 0 : index
    %c0_155 = arith.constant 0 : index
    %295 = vector.load %arg4[%c34, %c0_153, %c0_154, %c0_155] : memref<49x1x1x4xf32, #tpu.memory_space<vmem>>, vector<1x1x1x4xf32>
    %296 = vector.shape_cast %295 : vector<1x1x1x4xf32> to vector<1x1x4xf32>
    %297 = vector.broadcast %296 : vector<1x1x4xf32> to vector<8x16x4xf32>
    %298 = arith.mulf %294, %297 : vector<8x16x4xf32>
    %299 = arith.addf %293, %298 : vector<8x16x4xf32>
    %300 = vector.extract_strided_slice %269 {offsets = [5, 0, 0], sizes = [8, 16, 4], strides = [1, 1, 1]} : vector<14x16x4xf32> to vector<8x16x4xf32>
    %c41 = arith.constant 41 : index
    %c0_156 = arith.constant 0 : index
    %c0_157 = arith.constant 0 : index
    %c0_158 = arith.constant 0 : index
    %301 = vector.load %arg4[%c41, %c0_156, %c0_157, %c0_158] : memref<49x1x1x4xf32, #tpu.memory_space<vmem>>, vector<1x1x1x4xf32>
    %302 = vector.shape_cast %301 : vector<1x1x1x4xf32> to vector<1x1x4xf32>
    %303 = vector.broadcast %302 : vector<1x1x4xf32> to vector<8x16x4xf32>
    %304 = arith.mulf %300, %303 : vector<8x16x4xf32>
    %305 = arith.addf %299, %304 : vector<8x16x4xf32>
    %306 = vector.extract_strided_slice %269 {offsets = [6, 0, 0], sizes = [8, 16, 4], strides = [1, 1, 1]} : vector<14x16x4xf32> to vector<8x16x4xf32>
    %c48 = arith.constant 48 : index
    %c0_159 = arith.constant 0 : index
    %c0_160 = arith.constant 0 : index
    %c0_161 = arith.constant 0 : index
    %307 = vector.load %arg4[%c48, %c0_159, %c0_160, %c0_161] : memref<49x1x1x4xf32, #tpu.memory_space<vmem>>, vector<1x1x1x4xf32>
    %308 = vector.shape_cast %307 : vector<1x1x1x4xf32> to vector<1x1x4xf32>
    %309 = vector.broadcast %308 : vector<1x1x4xf32> to vector<8x16x4xf32>
    %310 = arith.mulf %306, %309 : vector<8x16x4xf32>
    %311 = arith.addf %305, %310 : vector<8x16x4xf32>
    %c0_162 = arith.constant 0 : index
    %c0_163 = arith.constant 0 : index
    %c0_164 = arith.constant 0 : index
    %312 = vector.load %arg5[%c0_162, %c0_163, %c0_164] : memref<1x1x4xf32, #tpu.memory_space<vmem>>, vector<1x1x4xf32>
    %313 = vector.broadcast %312 : vector<1x1x4xf32> to vector<8x16x4xf32>
    %314 = arith.mulf %311, %313 : vector<8x16x4xf32>
    %c0_165 = arith.constant 0 : index
    %c0_166 = arith.constant 0 : index
    %c0_167 = arith.constant 0 : index
    %315 = vector.load %arg6[%c0_165, %c0_166, %c0_167] : memref<1x1x4xf32, #tpu.memory_space<vmem>>, vector<1x1x4xf32>
    %316 = vector.broadcast %315 : vector<1x1x4xf32> to vector<8x16x4xf32>
    %317 = arith.addf %314, %316 : vector<8x16x4xf32>
    %cst = arith.constant 0.000000e+00 : f32
    %318 = vector.broadcast %cst : f32 to vector<8x16x4xf32>
    %319 = arith.subf %318, %317 : vector<8x16x4xf32>
    %320 = math.exp %319 : vector<8x16x4xf32>
    %cst_168 = arith.constant 1.000000e+00 : f32
    %321 = vector.broadcast %cst_168 : f32 to vector<8x16x4xf32>
    %322 = arith.addf %321, %320 : vector<8x16x4xf32>
    %323 = tpu.reciprocal %322 : vector<8x16x4xf32> -> vector<8x16x4xf32>
    %c3_i32 = arith.constant 3 : i32
    %324 = arith.addi %4, %c3_i32 : i32
    %325 = arith.index_cast %324 : i32 to index
    %c8_169 = arith.constant 8 : index
    %c0_170 = arith.constant 0 : index
    %326 = vector.load %arg8[%325, %c8_169, %c0_170] : memref<22x27x4xf32, #tpu.memory_space<vmem>>, vector<8x16x4xf32>
    %c0_171 = arith.constant 0 : index
    %c0_172 = arith.constant 0 : index
    %c0_173 = arith.constant 0 : index
    %c0_174 = arith.constant 0 : index
    %327 = vector.load %arg3[%c0_171, %c0_172, %c0_173, %c0_174] : memref<1x1x1x4xf32, #tpu.memory_space<vmem>>, vector<1x1x1x4xf32>
    %328 = vector.shape_cast %327 : vector<1x1x1x4xf32> to vector<1x1x4xf32>
    %329 = vector.broadcast %328 : vector<1x1x4xf32> to vector<8x16x4xf32>
    %330 = arith.mulf %326, %329 : vector<8x16x4xf32>
    %331 = arith.mulf %330, %323 : vector<8x16x4xf32>
    %c0_175 = arith.constant 0 : index
    %c0_176 = arith.constant 0 : index
    %c0_177 = arith.constant 0 : index
    %c0_178 = arith.constant 0 : index
    %332 = vector.load %arg7[%c0_175, %c0_176, %c0_177, %c0_178] : memref<1x8x16x4xf32, #tpu.memory_space<vmem>>, vector<1x8x16x4xf32>
    %333 = vector.shape_cast %332 : vector<1x8x16x4xf32> to vector<8x16x4xf32>
    %334 = vector.shape_cast %331 : vector<8x16x4xf32> to vector<1x8x16x4xf32>
    tpu.vector_store %arg7[%c0_175, %c0_176, %c0_177, %c0_178], %334 {strides = array<i32>} : memref<1x8x16x4xf32, #tpu.memory_space<vmem>>, vector<1x8x16x4xf32>,
    return
  }
  func.func @transform_0(%arg0: i32, %arg1: i32) -> (i32, i32, i32, i32) {
    %c0_i32 = arith.constant 0 : i32
    %c0_i32_0 = arith.constant 0 : i32
    %c0_i32_1 = arith.constant 0 : i32
    %c0_i32_2 = arith.constant 0 : i32
    return %arg0, %c0_i32, %c0_i32_0, %c0_i32_1 : i32, i32, i32, i32
  }
  func.func @transform_1(%arg0: i32, %arg1: i32) -> (i32, i32, i32, i32) {
    %c0_i32 = arith.constant 0 : i32
    %c0_i32_0 = arith.constant 0 : i32
    %c0_i32_1 = arith.constant 0 : i32
    %c0_i32_2 = arith.constant 0 : i32
    return %arg0, %c0_i32, %c0_i32_0, %c0_i32_1 : i32, i32, i32, i32
  }
  func.func @transform_2(%arg0: i32, %arg1: i32) -> (i32, i32, i32, i32) {
    %c0_i32 = arith.constant 0 : i32
    %c0_i32_0 = arith.constant 0 : i32
    %c0_i32_1 = arith.constant 0 : i32
    %c0_i32_2 = arith.constant 0 : i32
    %c0_i32_3 = arith.constant 0 : i32
    return %c0_i32, %c0_i32_0, %c0_i32_1, %c0_i32_2 : i32, i32, i32, i32
  }
  func.func @transform_3(%arg0: i32, %arg1: i32) -> (i32, i32, i32) {
    %c0_i32 = arith.constant 0 : i32
    %c0_i32_0 = arith.constant 0 : i32
    %c0_i32_1 = arith.constant 0 : i32
    %c0_i32_2 = arith.constant 0 : i32
    return %c0_i32, %c0_i32_0, %c0_i32_1 : i32, i32, i32
  }
  func.func @transform_4(%arg0: i32, %arg1: i32) -> (i32, i32, i32) {
    %c0_i32 = arith.constant 0 : i32
    %c0_i32_0 = arith.constant 0 : i32
    %c0_i32_1 = arith.constant 0 : i32
    %c0_i32_2 = arith.constant 0 : i32
    return %c0_i32, %c0_i32_0, %c0_i32_1 : i32, i32, i32
  }
  func.func @transform_5(%arg0: i32, %arg1: i32) -> (i32, i32, i32, i32) {
    %c0_i32 = arith.constant 0 : i32
    %c0_i32_0 = arith.constant 0 : i32
    %c0_i32_1 = arith.constant 0 : i32
    return %arg0, %arg1, %c0_i32, %c0_i32_0 : i32, i32, i32, i32
  }
}

</mosaic_0001>

<bundles_post_ra>
// kernel: tpu_custom_call.1
= control target key start
LH: loop header
LB: loop body
LE: loop exit
PB: predicated region body
PF: predicated region fallthrough
CT: control target
= control target key end

     0   :  { %s3200_s18 = smov 0   ;;  %s3202_s19 = smov 0   ;;  %s5378_s0 = inlined_call_operand.vmem [shape: f32[2,16,16,4], index: 0, kind: input, shape index: {}]   ;;  %s5379_s1 = inlined_call_operand.vmem [shape: f32[2,1,1,4], index: 1, kind: input, shape index: {}]   ;;  %s5380_s2 = inlined_call_operand.vmem [shape: f32[49,1,1,4], index: 2, kind: input, shape index: {}]   ;;  %s5381_s3 = inlined_call_operand.vmem [shape: f32[1,1,4], index: 3, kind: input, shape index: {}]   ;;  %s5382_s4 = inlined_call_operand.vmem [shape: f32[1,1,4], index: 4, kind: input, shape index: {}]   ;;  %s5383_s5 = inlined_call_operand.vmem [shape: f32[2,16,16,4], index: 5, kind: output, shape index: {}]  }
   0x1   :  { %s3204_s20 = smov 0   ;;  %s3206_s21 = smov 0  }
   0x2   :  { %s3208_s22 = smov 0  }
   0x3 LB: > { %s24_s23 = sadd.s32 1, %s3159_s20  ;;  %s27_s24 = sadd.s32 1, %s3163_s21  ;;  %s3167_s22 = sphi %s3208_s22, %s15_s22   ;;  %s3163_s21 = sphi %s3206_s21, %s5451_s21   ;;  %s3159_s20 = sphi %s3204_s20, %s5450_s20   ;;  %s3155_s19 = sphi %s3202_s19, %s5449_s19   ;;  %s3151_s18 = sphi %s3200_s18, %s5448_s18  }
   0x4   : > { %p25_p0 = scmp.ge.s32.totalorder %s24_s23, 2  ;;  %p2891_p1 = scmp.ge.s32.totalorder %s3167_s22, 1 }
   0x5   : > { %p209_p2 = scmp.lt.s32.totalorder %s3167_s22, 5 }
   0x6   : > { %s5453_s23 = smov (%p25_p0, %s24_s23), 0  ;;  %s5455_s24 = smov (!%p25_p0, %s27_s24), %s3163_s21 }
   0x7   : > { %p210_p3 = pnand %p2891_p1, %p209_p2  ;;  %p29_p4 = scmp.ge.s32.totalorder %s5455_s24, 2 }
   0x8   : > { %p245_p5 = scmp.lt.s32.totalorder (!%p210_p3), %s3155_s19, 1  ;;  %s2894_s25 = sshll.u32 (!%p210_p3), %s3151_s18, 3 }
   0x9   : > { %s5457_s24 = smov (%p29_p4, %s5455_s24), 0  ;;  %213 = sbr.rel (%p210_p3) target bundleno = 593 (0x251), region = 40 }
   0xa   : > { %p256_p6 = scmp.lt.s32.totalorder (!%p210_p3), %s2894_s25, 15  ;;  %p2898_p7 = scmp.ne.s32.totalorder (!%p210_p3), %s3151_s18, 0 }
   0xe   : > { %s5459_s19 = smov (!%p245_p5, %s3155_s19), 1  ;;  %s5461_s25 = smov (!%p256_p6, %s2894_s25), 15 }
   0xf   : > { %s2969_s26 = sshll.u32 %s5459_s19, 8  ;;  %s252_s29 = scalar_lea.vmem %s5379_s1, %s5459_s19 }
  0x10   : > { %s3243_s7 = scalar_lea.vmem %s5378_s0, %s2969_s26  ;;  %s2895_s8 = sshll.u32 %s5461_s25, 1 }
  0x11   : > { %s2896_s9 = sshll.u32 %s5459_s19, 5  ;;  %267 = sbr.rel (%p2898_p7) target bundleno = 105 (0x69), region = 44 }
  0x12   : > { %s260_s10 = sadd.s32 %s2896_s9, %s2895_s8 }
  0x13   : > { %s2897_s11 = sshll.u32 %s260_s10, 3 }
  0x14   : > { %s3249_s14 = scalar_lea.vmem %s5383_s5, %s2897_s11 }
  0x16   : > { %vm268_vm0 = vcmask 31744   ;;  %v3169_v0 = vmov 0.0   ;;  %vm271_vm1 = vcmask 29696   ;;  %vm290_vm2 = vcmask 26624   ;;  %v323_v1 = vld [vmem:[%s3243_s7] sm:$0xff]  ;;  %v324_v2 = vld [vmem:[%s3243_s7 + $0x8] sm:$0xff] }
  0x17   : > { %269 = vst.msk [vmem:[#allocation2 + $0x5] sm:$0xff] %vm268_vm0, %v3169_v0  ;;  %v325_v3 = vld [vmem:[%s3243_s7 + $0x10] sm:$0xff]  ;;  %v326_v4 = vld [vmem:[%s3243_s7 + $0x18] sm:$0xff]  ;;  %v327_v5 = vld [vmem:[%s3243_s7 + $0x20] sm:$0xff] }
  0x18   : > { %270 = vst.msk [vmem:[#allocation2 + $0xd] sm:$0xff] %vm268_vm0, %v3169_v0  ;;  %v328_v6 = vld [vmem:[%s3243_s7 + $0x28] sm:$0xff]  ;;  %v329_v7 = vld [vmem:[%s3243_s7 + $0x30] sm:$0xff]  ;;  %v330_v8 = vld [vmem:[%s3243_s7 + $0x38] sm:$0xff] }
  0x19   : > { %273 = vst.msk [vmem:[#allocation2 + $0x25] sm:$0xff] %vm268_vm0, %v3169_v0  ;;  %v331_v9 = vld [vmem:[%s3243_s7 + $0x40] sm:$0xff]  ;;  %v332_v10 = vld [vmem:[%s3243_s7 + $0x48] sm:$0xff]  ;;  %v333_v11 = vld [vmem:[%s3243_s7 + $0x50] sm:$0xff] }
  0x1a   : > { %274 = vst.msk [vmem:[#allocation2 + $0x2d] sm:$0xff] %vm268_vm0, %v3169_v0  ;;  %v334_v12 = vld [vmem:[%s3243_s7 + $0x58] sm:$0xff]  ;;  %v335_v13 = vld [vmem:[%s3243_s7 + $0x60] sm:$0xff]  ;;  %v336_v14 = vld [vmem:[%s3243_s7 + $0x68] sm:$0xff] }
  0x1b   : > { %276 = vst.msk [vmem:[#allocation2 + $0x45] sm:$0xff] %vm268_vm0, %v3169_v0  ;;  %v337_v15 = vld [vmem:[%s3243_s7 + $0x70] sm:$0xff]  ;;  %v338_v16 = vld [vmem:[%s3243_s7 + $0x78] sm:$0xff]  ;;  %v339_v17 = vld [vmem:[%s3243_s7 + $0x80] sm:$0xff] }
  0x1c   : > { %277 = vst.msk [vmem:[#allocation2 + $0x4d] sm:$0xff] %vm268_vm0, %v3169_v0  ;;  %v340_v18 = vld [vmem:[%s3243_s7 + $0x88] sm:$0xff]  ;;  %v341_v19 = vld [vmem:[%s3243_s7 + $0x90] sm:$0xff]  ;;  %v342_v20 = vld [vmem:[%s3243_s7 + $0x98] sm:$0xff] }
  0x1d   : > { %280 = vst.msk [vmem:[#allocation2 + $0x265] sm:$0xff] %vm268_vm0, %v3169_v0  ;;  %v343_v21 = vld [vmem:[%s3243_s7 + $0xa0] sm:$0xff]  ;;  %v344_v22 = vld [vmem:[%s3243_s7 + $0xa8] sm:$0xff]  ;;  %v345_v23 = vld [vmem:[%s3243_s7 + $0xb0] sm:$0xff] }
  0x1e   : > { %281 = vst.msk [vmem:[#allocation2 + $0x26d] sm:$0xff] %vm268_vm0, %v3169_v0  ;;  %v346_v24 = vld [vmem:[%s3243_s7 + $0xb8] sm:$0xff]  ;;  %v347_v25 = vld [vmem:[%s3243_s7 + $0xc0] sm:$0xff]  ;;  %v348_v26 = vld [vmem:[%s3243_s7 + $0xc8] sm:$0xff] }
  0x1f   : > { %283 = vst.msk [vmem:[#allocation2 + $0x285] sm:$0xff] %vm268_vm0, %v3169_v0  ;;  %v349_v27 = vld [vmem:[%s3243_s7 + $0xd0] sm:$0xff]  ;;  %v350_v28 = vld [vmem:[%s3243_s7 + $0xd8] sm:$0xff]  ;;  %v351_v29 = vld [vmem:[%s3243_s7 + $0xe0] sm:$0xff] }
  0x20   : > { %284 = vst.msk [vmem:[#allocation2 + $0x28d] sm:$0xff] %vm268_vm0, %v3169_v0  ;;  %v352_v30 = vld [vmem:[%s3243_s7 + $0xe8] sm:$0xff]  ;;  %v353_v31 = vld [vmem:[%s3243_s7 + $0xf0] sm:$0xff]  ;;  %v354_v32 = vld [vmem:[%s3243_s7 + $0xf8] sm:$0xff] }
  0x21   : > { %286 = vst.msk [vmem:[#allocation2 + $0x2a5] sm:$0xff] %vm268_vm0, %v3169_v0 }
  0x22   : > { %287 = vst.msk [vmem:[#allocation2 + $0x2ad] sm:$0xff] %vm268_vm0, %v3169_v0 }
  0x23   : > { %272 = vst.msk [vmem:[#allocation2 + $0x15] sm:$0x3f] %vm271_vm1, %v3169_v0 }
  0x24   : > { %275 = vst.msk [vmem:[#allocation2 + $0x35] sm:$0x3f] %vm271_vm1, %v3169_v0 }
  0x25   : > { %278 = vst.msk [vmem:[#allocation2 + $0x55] sm:$0x3f] %vm271_vm1, %v3169_v0 }
  0x26   : > { %282 = vst.msk [vmem:[#allocation2 + $0x275] sm:$0x3f] %vm271_vm1, %v3169_v0 }
  0x27   : > { %285 = vst.msk [vmem:[#allocation2 + $0x295] sm:$0x3f] %vm271_vm1, %v3169_v0 }
  0x28   : > { %288 = vst.msk [vmem:[#allocation2 + $0x2b5] sm:$0x3f] %vm271_vm1, %v3169_v0 }
  0x29   : > { %291 = vst.msk [vmem:[#allocation2 + $0x65] sm:$0x7] %vm290_vm2, %v3169_v0 }
  0x2a   : > { %292 = vst.msk [vmem:[#allocation2 + $0x85] sm:$0x7] %vm290_vm2, %v3169_v0 }
  0x2b   : > { %293 = vst.msk [vmem:[#allocation2 + $0xa5] sm:$0x7] %vm290_vm2, %v3169_v0 }
  0x2c   : > { %294 = vst.msk [vmem:[#allocation2 + $0xc5] sm:$0x7] %vm290_vm2, %v3169_v0 }
  0x2d   : > { %295 = vst.msk [vmem:[#allocation2 + $0xe5] sm:$0x7] %vm290_vm2, %v3169_v0 }
  0x2e   : > { %296 = vst.msk [vmem:[#allocation2 + $0x105] sm:$0x7] %vm290_vm2, %v3169_v0 }
  0x2f   : > { %297 = vst.msk [vmem:[#allocation2 + $0x125] sm:$0x7] %vm290_vm2, %v3169_v0 }
  0x30   : > { %298 = vst.msk [vmem:[#allocation2 + $0x145] sm:$0x7] %vm290_vm2, %v3169_v0 }
  0x31   : > { %299 = vst.msk [vmem:[#allocation2 + $0x165] sm:$0x7] %vm290_vm2, %v3169_v0 }
  0x32   : > { %300 = vst.msk [vmem:[#allocation2 + $0x185] sm:$0x7] %vm290_vm2, %v3169_v0 }
  0x33   : > { %301 = vst.msk [vmem:[#allocation2 + $0x1a5] sm:$0x7] %vm290_vm2, %v3169_v0 }
  0x34   : > { %302 = vst.msk [vmem:[#allocation2 + $0x1c5] sm:$0x7] %vm290_vm2, %v3169_v0 }
  0x35   : > { %303 = vst.msk [vmem:[#allocation2 + $0x1e5] sm:$0x7] %vm290_vm2, %v3169_v0 }
  0x36   : > { %304 = vst.msk [vmem:[#allocation2 + $0x205] sm:$0x7] %vm290_vm2, %v3169_v0 }
  0x37   : > { %305 = vst.msk [vmem:[#allocation2 + $0x225] sm:$0x7] %vm290_vm2, %v3169_v0 }
  0x38   : > { %306 = vst.msk [vmem:[#allocation2 + $0x245] sm:$0x7] %vm290_vm2, %v3169_v0 }
  0x39   : > { %307 = vst.msk [vmem:[#allocation2 + $0x78] sm:$0x7] %vm290_vm2, %v3169_v0 }
  0x3a   : > { %308 = vst.msk [vmem:[#allocation2 + $0x98] sm:$0x7] %vm290_vm2, %v3169_v0 }
  0x3b   : > { %309 = vst.msk [vmem:[#allocation2 + $0xb8] sm:$0x7] %vm290_vm2, %v3169_v0 }
  0x3c   : > { %310 = vst.msk [vmem:[#allocation2 + $0xd8] sm:$0x7] %vm290_vm2, %v3169_v0 }
  0x3d   : > { %311 = vst.msk [vmem:[#allocation2 + $0xf8] sm:$0x7] %vm290_vm2, %v3169_v0 }
  0x3e   : > { %312 = vst.msk [vmem:[#allocation2 + $0x118] sm:$0x7] %vm290_vm2, %v3169_v0 }
  0x3f   : > { %313 = vst.msk [vmem:[#allocation2 + $0x138] sm:$0x7] %vm290_vm2, %v3169_v0 }
  0x40   : > { %314 = vst.msk [vmem:[#allocation2 + $0x158] sm:$0x7] %vm290_vm2, %v3169_v0 }
  0x41   : > { %315 = vst.msk [vmem:[#allocation2 + $0x178] sm:$0x7] %vm290_vm2, %v3169_v0 }
  0x42   : > { %316 = vst.msk [vmem:[#allocation2 + $0x198] sm:$0x7] %vm290_vm2, %v3169_v0 }
  0x43   : > { %317 = vst.msk [vmem:[#allocation2 + $0x1b8] sm:$0x7] %vm290_vm2, %v3169_v0 }
  0x44   : > { %318 = vst.msk [vmem:[#allocation2 + $0x1d8] sm:$0x7] %vm290_vm2, %v3169_v0 }
  0x45   : > { %319 = vst.msk [vmem:[#allocation2 + $0x1f8] sm:$0x7] %vm290_vm2, %v3169_v0 }
  0x46   : > { %320 = vst.msk [vmem:[#allocation2 + $0x218] sm:$0x7] %vm290_vm2, %v3169_v0 }
  0x47   : > { %321 = vst.msk [vmem:[#allocation2 + $0x238] sm:$0x7] %vm290_vm2, %v3169_v0 }
  0x48   : > { %322 = vst.msk [vmem:[#allocation2 + $0x258] sm:$0x7] %vm290_vm2, %v3169_v0 }
  0x49   : > { %355 = vst.msk [vmem:[#allocation2 + $0x68] sm:$0xff] %vm268_vm0, %v323_v1 }
  0x4a   : > { %356 = vst.msk [vmem:[#allocation2 + $0x70] sm:$0xff] %vm268_vm0, %v324_v2 }
  0x4b   : > { %357 = vst.msk [vmem:[#allocation2 + $0x88] sm:$0xff] %vm268_vm0, %v325_v3 }
  0x4c   : > { %358 = vst.msk [vmem:[#allocation2 + $0x90] sm:$0xff] %vm268_vm0, %v326_v4 }
  0x4d   : > { %359 = vst.msk [vmem:[#allocation2 + $0xa8] sm:$0xff] %vm268_vm0, %v327_v5 }
  0x4e   : > { %360 = vst.msk [vmem:[#allocation2 + $0xb0] sm:$0xff] %vm268_vm0, %v328_v6 }
  0x4f   : > { %361 = vst.msk [vmem:[#allocation2 + $0xc8] sm:$0xff] %vm268_vm0, %v329_v7 }
  0x50   : > { %362 = vst.msk [vmem:[#allocation2 + $0xd0] sm:$0xff] %vm268_vm0, %v330_v8 }
  0x51   : > { %363 = vst.msk [vmem:[#allocation2 + $0xe8] sm:$0xff] %vm268_vm0, %v331_v9 }
  0x52   : > { %364 = vst.msk [vmem:[#allocation2 + $0xf0] sm:$0xff] %vm268_vm0, %v332_v10 }
  0x53   : > { %365 = vst.msk [vmem:[#allocation2 + $0x108] sm:$0xff] %vm268_vm0, %v333_v11 }
  0x54   : > { %366 = vst.msk [vmem:[#allocation2 + $0x110] sm:$0xff] %vm268_vm0, %v334_v12 }
  0x55   : > { %367 = vst.msk [vmem:[#allocation2 + $0x128] sm:$0xff] %vm268_vm0, %v335_v13 }
  0x56   : > { %368 = vst.msk [vmem:[#allocation2 + $0x130] sm:$0xff] %vm268_vm0, %v336_v14 }
  0x57   : > { %369 = vst.msk [vmem:[#allocation2 + $0x148] sm:$0xff] %vm268_vm0, %v337_v15 }
  0x58   : > { %370 = vst.msk [vmem:[#allocation2 + $0x150] sm:$0xff] %vm268_vm0, %v338_v16 }
  0x59   : > { %371 = vst.msk [vmem:[#allocation2 + $0x168] sm:$0xff] %vm268_vm0, %v339_v17 }
  0x5a   : > { %372 = vst.msk [vmem:[#allocation2 + $0x170] sm:$0xff] %vm268_vm0, %v340_v18 }
  0x5b   : > { %373 = vst.msk [vmem:[#allocation2 + $0x188] sm:$0xff] %vm268_vm0, %v341_v19 }
  0x5c   : > { %374 = vst.msk [vmem:[#allocation2 + $0x190] sm:$0xff] %vm268_vm0, %v342_v20 }
  0x5d   : > { %375 = vst.msk [vmem:[#allocation2 + $0x1a8] sm:$0xff] %vm268_vm0, %v343_v21 }
  0x5e   : > { %376 = vst.msk [vmem:[#allocation2 + $0x1b0] sm:$0xff] %vm268_vm0, %v344_v22 }
  0x5f   : > { %377 = vst.msk [vmem:[#allocation2 + $0x1c8] sm:$0xff] %vm268_vm0, %v345_v23 }
  0x60   : > { %378 = vst.msk [vmem:[#allocation2 + $0x1d0] sm:$0xff] %vm268_vm0, %v346_v24 }
  0x61   : > { %379 = vst.msk [vmem:[#allocation2 + $0x1e8] sm:$0xff] %vm268_vm0, %v347_v25 }
  0x62   : > { %380 = vst.msk [vmem:[#allocation2 + $0x1f0] sm:$0xff] %vm268_vm0, %v348_v26 }
  0x63   : > { %381 = vst.msk [vmem:[#allocation2 + $0x208] sm:$0xff] %vm268_vm0, %v349_v27 }
  0x64   : > { %382 = vst.msk [vmem:[#allocation2 + $0x210] sm:$0xff] %vm268_vm0, %v350_v28 }
  0x65   : > { %383 = vst.msk [vmem:[#allocation2 + $0x228] sm:$0xff] %vm268_vm0, %v351_v29 }
  0x66   : > { %384 = vst.msk [vmem:[#allocation2 + $0x230] sm:$0xff] %vm268_vm0, %v352_v30 }
  0x67   : > { %385 = vst.msk [vmem:[#allocation2 + $0x248] sm:$0xff] %vm268_vm0, %v353_v31 }
  0x68   : > { %386 = vst.msk [vmem:[#allocation2 + $0x250] sm:$0xff] %vm268_vm0, %v354_v32 }
  0x69 PF: > { %s2970_s15 = sshll.u32 %s3151_s18, 8  ;;  %v3013_v33 = vld [vmem:[%s5380_s2] ss:$0 sm:$0xff]  ;;  %v3014_v36 = vld [vmem:[%s5380_s2 + $0x7] ss:$0 sm:$0xff] }
  0x6a   : > { %s3364_s25 = scalar_lea.vmem [#allocation2], %s2970_s15  ;;  %v3015_v15 = vld [vmem:[%s5380_s2 + $0xe] ss:$0 sm:$0xff] }
  0x6f   : > { %v390_v34 = vld [vmem:[%s3364_s25 + $0x5] sm:$0xff]  ;;  %v391_v35 = vld [vmem:[%s3364_s25 + $0xd] sm:$0xff] }
  0x70   : > { %v392_v37 = vld [vmem:[%s3364_s25 + $0x25] sm:$0xff]  ;;  %v393_v38 = vld [vmem:[%s3364_s25 + $0x2d] sm:$0xff]  ;;  %v422_v48 = vmul.f32 %v3013_v33, %v390_v34  ;;  %v423_v49 = vmul.f32 %v3013_v33, %v391_v35 }
  0x71   : > { %v3374_v39 = vld [vmem:[%s3364_s25 + $0x45] sm:$0xff]  ;;  %v3377_v40 = vld [vmem:[%s3364_s25 + $0x4d] sm:$0xff]  ;;  %v424_v51 = vmul.f32 %v3013_v33, %v392_v37  ;;  %v425_v52 = vmul.f32 %v3013_v33, %v393_v38  ;;  %v443_v54 = vmul.f32 %v3014_v36, %v392_v37  ;;  %v444_v60 = vmul.f32 %v3014_v36, %v393_v38 }
  0x72   : > { %v3380_v41 = vld [vmem:[%s3364_s25 + $0x65] sm:$0xff]  ;;  %v3383_v42 = vld [vmem:[%s3364_s25 + $0x6d] sm:$0xff]  ;;  %v426_v53 = vmul.f32 %v3013_v33, %v3374_v39  ;;  %v427_v57 = vmul.f32 %v3013_v33, %v3377_v40  ;;  %v445_v2 = vmul.f32 %v3014_v36, %v3374_v39  ;;  %v446_v6 = vmul.f32 %v3014_v36, %v3377_v40 }
  0x73   : > { %v3386_v43 = vld [vmem:[%s3364_s25 + $0x85] sm:$0xff]  ;;  %v3389_v44 = vld [vmem:[%s3364_s25 + $0x8d] sm:$0xff]  ;;  %v428_v58 = vmul.f32 %v3013_v33, %v3380_v41  ;;  %v429_v59 = vmul.f32 %v3013_v33, %v3383_v42  ;;  %v447_v9 = vmul.f32 %v3014_v36, %v3380_v41  ;;  %v448_v10 = vmul.f32 %v3014_v36, %v3383_v42 }
  0x74   : > { %v3392_v45 = vld [vmem:[%s3364_s25 + $0xa5] sm:$0xff]  ;;  %v3395_v46 = vld [vmem:[%s3364_s25 + $0xad] sm:$0xff]  ;;  %v430_v63 = vmul.f32 %v3013_v33, %v3386_v43  ;;  %v431_v0 = vmul.f32 %v3013_v33, %v3389_v44  ;;  %v449_v11 = vmul.f32 %v3014_v36, %v3386_v43  ;;  %v450_v12 = vmul.f32 %v3014_v36, %v3389_v44 }
  0x75   : > { %v3398_v47 = vld [vmem:[%s3364_s25 + $0xc5] sm:$0xff]  ;;  %v3401_v50 = vld [vmem:[%s3364_s25 + $0xcd] sm:$0xff]  ;;  %v432_v1 = vmul.f32 %v3013_v33, %v3392_v45  ;;  %v433_v3 = vmul.f32 %v3013_v33, %v3395_v46  ;;  %v451_v13 = vmul.f32 %v3014_v36, %v3392_v45  ;;  %v452_v14 = vmul.f32 %v3014_v36, %v3395_v46 }
  0x76   : > { %v3405_v55 = vld [vmem:[%s3364_s25 + $0xe5] sm:$0xff]  ;;  %v3408_v56 = vld [vmem:[%s3364_s25 + $0xed] sm:$0xff]  ;;  %v434_v4 = vmul.f32 %v3013_v33, %v3398_v47  ;;  %v435_v5 = vmul.f32 %v3013_v33, %v3401_v50  ;;  %v453_v16 = vmul.f32 %v3014_v36, %v3398_v47  ;;  %v454_v17 = vmul.f32 %v3014_v36, %v3401_v50 }
  0x77   : > { %v3414_v61 = vld [vmem:[%s3364_s25 + $0x105] sm:$0xff]  ;;  %v3417_v62 = vld [vmem:[%s3364_s25 + $0x10d] sm:$0xff]  ;;  %v436_v7 = vmul.f32 %v3013_v33, %v3405_v55  ;;  %v437_v8 = vmul.f32 %v3013_v33, %v3408_v56  ;;  %v455_v18 = vmul.f32 %v3014_v36, %v3405_v55  ;;  %v456_v19 = vmul.f32 %v3014_v36, %v3408_v56 }
  0x78   : > { %v457_v20 = vmul.f32 %v3014_v36, %v3414_v61  ;;  %v458_v21 = vmul.f32 %v3014_v36, %v3417_v62  ;;  %v459_v22 = vadd.f32 %v443_v54, %v422_v48  ;;  %v460_v23 = vadd.f32 %v444_v60, %v423_v49  ;;  %v3447_v49 = vld [vmem:[%s3364_s25 + $0x125] sm:$0xff] }
  0x79   : > { %v461_v24 = vadd.f32 %v445_v2, %v424_v51  ;;  %v462_v25 = vadd.f32 %v446_v6, %v425_v52  ;;  %v463_v26 = vadd.f32 %v447_v9, %v426_v53  ;;  %v464_v27 = vadd.f32 %v448_v10, %v427_v57  ;;  %v3450_v51 = vld [vmem:[%s3364_s25 + $0x12d] sm:$0xff]  ;;  %v3016_v6 = vld [vmem:[%s5380_s2 + $0x15] ss:$0 sm:$0xff] }
  0x7a   : > { %v465_v28 = vadd.f32 %v449_v11, %v428_v58  ;;  %v466_v29 = vadd.f32 %v450_v12, %v429_v59  ;;  %v467_v30 = vadd.f32 %v451_v13, %v430_v63  ;;  %v468_v31 = vadd.f32 %v452_v14, %v431_v0 }
  0x7b   : > { %v469_v32 = vadd.f32 %v453_v16, %v432_v1  ;;  %v470_v33 = vadd.f32 %v454_v17, %v433_v3  ;;  %v471_v34 = vadd.f32 %v455_v18, %v434_v4  ;;  %v472_v35 = vadd.f32 %v456_v19, %v435_v5  ;;  %v3470_v16 = vld [vmem:[%s3364_s25 + $0x145] sm:$0xff]  ;;  %v3473_v17 = vld [vmem:[%s3364_s25 + $0x14d] sm:$0xff] }
  0x7c   : > { %v473_v37 = vadd.f32 %v457_v20, %v436_v7  ;;  %v474_v38 = vadd.f32 %v458_v21, %v437_v8  ;;  %v480_v36 = vmul.f32 %v3015_v15, %v3374_v39  ;;  %v481_v48 = vmul.f32 %v3015_v15, %v3377_v40 }
  0x7d   : > { %v482_v52 = vmul.f32 %v3015_v15, %v3380_v41  ;;  %v483_v53 = vmul.f32 %v3015_v15, %v3383_v42  ;;  %v484_v54 = vmul.f32 %v3015_v15, %v3386_v43  ;;  %v485_v57 = vmul.f32 %v3015_v15, %v3389_v44 }
  0x7e   : > { %v486_v58 = vmul.f32 %v3015_v15, %v3392_v45  ;;  %v487_v59 = vmul.f32 %v3015_v15, %v3395_v46  ;;  %v488_v39 = vmul.f32 %v3015_v15, %v3398_v47  ;;  %v489_v40 = vmul.f32 %v3015_v15, %v3401_v50 }
  0x7f   : > { %v490_v60 = vmul.f32 %v3015_v15, %v3405_v55  ;;  %v491_v63 = vmul.f32 %v3015_v15, %v3408_v56  ;;  %v492_v0 = vmul.f32 %v3015_v15, %v3414_v61  ;;  %v493_v1 = vmul.f32 %v3015_v15, %v3417_v62 }
  0x80   : > { %v494_v2 = vmul.f32 %v3015_v15, %v3447_v49  ;;  %v495_v3 = vmul.f32 %v3015_v15, %v3450_v51  ;;  %v496_v4 = vadd.f32 %v480_v36, %v459_v22  ;;  %v497_v5 = vadd.f32 %v481_v48, %v460_v23 }
  0x81   : > { %v498_v7 = vadd.f32 %v482_v52, %v461_v24  ;;  %v499_v8 = vadd.f32 %v483_v53, %v462_v25  ;;  %v500_v9 = vadd.f32 %v484_v54, %v463_v26  ;;  %v501_v10 = vadd.f32 %v485_v57, %v464_v27 }
  0x82   : > { %v502_v11 = vadd.f32 %v486_v58, %v465_v28  ;;  %v503_v12 = vadd.f32 %v487_v59, %v466_v29  ;;  %v504_v13 = vadd.f32 %v488_v39, %v467_v30  ;;  %v505_v14 = vadd.f32 %v489_v40, %v468_v31 }
  0x83   : > { %v506_v18 = vadd.f32 %v490_v60, %v469_v32  ;;  %v507_v15 = vadd.f32 %v491_v63, %v470_v33  ;;  %v508_v19 = vadd.f32 %v492_v0, %v471_v34  ;;  %v509_v20 = vadd.f32 %v493_v1, %v472_v35 }
  0x84   : > { %v510_v21 = vadd.f32 %v494_v2, %v473_v37  ;;  %v511_v22 = vadd.f32 %v495_v3, %v474_v38  ;;  %v517_v23 = vmul.f32 %v3016_v6, %v3380_v41  ;;  %v518_v24 = vmul.f32 %v3016_v6, %v3383_v42  ;;  %v3017_v41 = vld [vmem:[%s5380_s2 + $0x1c] ss:$0 sm:$0xff] }
  0x85   : > { %v519_v25 = vmul.f32 %v3016_v6, %v3386_v43  ;;  %v520_v26 = vmul.f32 %v3016_v6, %v3389_v44  ;;  %v521_v27 = vmul.f32 %v3016_v6, %v3392_v45  ;;  %v522_v28 = vmul.f32 %v3016_v6, %v3395_v46 }
  0x86   : > { %v523_v29 = vmul.f32 %v3016_v6, %v3398_v47  ;;  %v524_v30 = vmul.f32 %v3016_v6, %v3401_v50  ;;  %v525_v31 = vmul.f32 %v3016_v6, %v3405_v55  ;;  %v526_v32 = vmul.f32 %v3016_v6, %v3408_v56 }
  0x87   : > { %v527_v42 = vmul.f32 %v3016_v6, %v3414_v61  ;;  %v528_v33 = vmul.f32 %v3016_v6, %v3417_v62  ;;  %v529_v34 = vmul.f32 %v3016_v6, %v3447_v49  ;;  %v530_v35 = vmul.f32 %v3016_v6, %v3450_v51 }
  0x88   : > { %v531_v37 = vmul.f32 %v3016_v6, %v3470_v16  ;;  %v532_v38 = vmul.f32 %v3016_v6, %v3473_v17  ;;  %v533_v36 = vadd.f32 %v517_v23, %v496_v4  ;;  %v534_v48 = vadd.f32 %v518_v24, %v497_v5  ;;  %v3497_v5 = vld [vmem:[%s3364_s25 + $0x165] sm:$0xff]  ;;  %v3018_v24 = vld [vmem:[%s5380_s2 + $0x23] ss:$0 sm:$0xff] }
  0x89   : > { %v535_v52 = vadd.f32 %v519_v25, %v498_v7  ;;  %v536_v53 = vadd.f32 %v520_v26, %v499_v8  ;;  %v537_v54 = vadd.f32 %v521_v27, %v500_v9  ;;  %v538_v57 = vadd.f32 %v522_v28, %v501_v10  ;;  %v3500_v7 = vld [vmem:[%s3364_s25 + $0x16d] sm:$0xff] }
  0x8a   : > { %v539_v58 = vadd.f32 %v523_v29, %v502_v11  ;;  %v540_v59 = vadd.f32 %v524_v30, %v503_v12  ;;  %v541_v39 = vadd.f32 %v525_v31, %v504_v13  ;;  %v542_v40 = vadd.f32 %v526_v32, %v505_v14 }
  0x8b   : > { %v543_v60 = vadd.f32 %v527_v42, %v506_v18  ;;  %v544_v63 = vadd.f32 %v528_v33, %v507_v15  ;;  %v545_v0 = vadd.f32 %v529_v34, %v508_v19  ;;  %v546_v1 = vadd.f32 %v530_v35, %v509_v20 }
  0x8c   : > { %v547_v2 = vadd.f32 %v531_v37, %v510_v21  ;;  %v548_v3 = vadd.f32 %v532_v38, %v511_v22  ;;  %v554_v6 = vmul.f32 %v3017_v41, %v3386_v43  ;;  %v555_v4 = vmul.f32 %v3017_v41, %v3389_v44 }
  0x8d   : > { %v556_v8 = vmul.f32 %v3017_v41, %v3392_v45  ;;  %v557_v9 = vmul.f32 %v3017_v41, %v3395_v46  ;;  %v558_v10 = vmul.f32 %v3017_v41, %v3398_v47  ;;  %v559_v11 = vmul.f32 %v3017_v41, %v3401_v50 }
  0x8e   : > { %v560_v12 = vmul.f32 %v3017_v41, %v3405_v55  ;;  %v561_v13 = vmul.f32 %v3017_v41, %v3408_v56  ;;  %v562_v43 = vmul.f32 %v3017_v41, %v3414_v61  ;;  %v563_v44 = vmul.f32 %v3017_v41, %v3417_v62 }
  0x8f   : > { %v564_v14 = vmul.f32 %v3017_v41, %v3447_v49  ;;  %v565_v18 = vmul.f32 %v3017_v41, %v3450_v51  ;;  %v566_v15 = vmul.f32 %v3017_v41, %v3470_v16  ;;  %v567_v19 = vmul.f32 %v3017_v41, %v3473_v17 }
  0x90   : > { %v568_v20 = vmul.f32 %v3017_v41, %v3497_v5  ;;  %v569_v21 = vmul.f32 %v3017_v41, %v3500_v7  ;;  %v570_v22 = vadd.f32 %v554_v6, %v533_v36  ;;  %v571_v23 = vadd.f32 %v555_v4, %v534_v48  ;;  %v414_v48 = vld [vmem:[%s3364_s25 + $0x185] sm:$0xff] }
  0x91   : > { %v572_v25 = vadd.f32 %v556_v8, %v535_v52  ;;  %v573_v26 = vadd.f32 %v557_v9, %v536_v53  ;;  %v574_v27 = vadd.f32 %v558_v10, %v537_v54  ;;  %v575_v28 = vadd.f32 %v559_v11, %v538_v57  ;;  %v415_v52 = vld [vmem:[%s3364_s25 + $0x18d] sm:$0xff]  ;;  %v3019_v4 = vld [vmem:[%s5380_s2 + $0x2a] ss:$0 sm:$0xff] }
  0x92   : > { %v576_v29 = vadd.f32 %v560_v12, %v539_v58  ;;  %v577_v30 = vadd.f32 %v561_v13, %v540_v59  ;;  %v578_v31 = vadd.f32 %v562_v43, %v541_v39  ;;  %v579_v32 = vadd.f32 %v563_v44, %v542_v40 }
  0x93   : > { %v580_v42 = vadd.f32 %v564_v14, %v543_v60  ;;  %v581_v33 = vadd.f32 %v565_v18, %v544_v63  ;;  %v582_v34 = vadd.f32 %v566_v15, %v545_v0  ;;  %v583_v41 = vadd.f32 %v567_v19, %v546_v1 }
  0x94   : > { %v584_v35 = vadd.f32 %v568_v20, %v547_v2  ;;  %v585_v37 = vadd.f32 %v569_v21, %v548_v3  ;;  %v591_v38 = vmul.f32 %v3018_v24, %v3392_v45  ;;  %v592_v36 = vmul.f32 %v3018_v24, %v3395_v46 }
  0x95   : > { %v593_v53 = vmul.f32 %v3018_v24, %v3398_v47  ;;  %v594_v54 = vmul.f32 %v3018_v24, %v3401_v50  ;;  %v595_v57 = vmul.f32 %v3018_v24, %v3405_v55  ;;  %v596_v58 = vmul.f32 %v3018_v24, %v3408_v56 }
  0x96   : > { %v597_v59 = vmul.f32 %v3018_v24, %v3414_v61  ;;  %v598_v39 = vmul.f32 %v3018_v24, %v3417_v62  ;;  %v599_v40 = vmul.f32 %v3018_v24, %v3447_v49  ;;  %v600_v45 = vmul.f32 %v3018_v24, %v3450_v51 }
  0x97   : > { %v601_v46 = vmul.f32 %v3018_v24, %v3470_v16  ;;  %v602_v60 = vmul.f32 %v3018_v24, %v3473_v17  ;;  %v603_v63 = vmul.f32 %v3018_v24, %v3497_v5  ;;  %v604_v0 = vmul.f32 %v3018_v24, %v3500_v7 }
  0x98   : > { %v605_v1 = vmul.f32 %v3018_v24, %v414_v48  ;;  %v606_v2 = vmul.f32 %v3018_v24, %v415_v52  ;;  %v607_v3 = vadd.f32 %v591_v38, %v570_v22  ;;  %v608_v6 = vadd.f32 %v592_v36, %v571_v23  ;;  %v416_v24 = vld [vmem:[%s3364_s25 + $0x1a5] sm:$0xff] }
  0x99   : > { %v609_v8 = vadd.f32 %v593_v53, %v572_v25  ;;  %v610_v9 = vadd.f32 %v594_v54, %v573_v26  ;;  %v611_v10 = vadd.f32 %v595_v57, %v574_v27  ;;  %v612_v11 = vadd.f32 %v596_v58, %v575_v28  ;;  %v417_v25 = vld [vmem:[%s3364_s25 + $0x1ad] sm:$0xff] }
  0x9a   : > { %v613_v12 = vadd.f32 %v597_v59, %v576_v29  ;;  %v614_v13 = vadd.f32 %v598_v39, %v577_v30  ;;  %v615_v43 = vadd.f32 %v599_v40, %v578_v31  ;;  %v616_v44 = vadd.f32 %v600_v45, %v579_v32  ;;  %v3560_v38 = vld [vmem:[%s3364_s25 + $0x46] sm:$0xff]  ;;  %v3563_v54 = vld [vmem:[%s3364_s25 + $0x4e] sm:$0xff] }
  0x9b   : > { %v617_v14 = vadd.f32 %v601_v46, %v580_v42  ;;  %v618_v18 = vadd.f32 %v602_v60, %v581_v33  ;;  %v619_v15 = vadd.f32 %v603_v63, %v582_v34  ;;  %v620_v19 = vadd.f32 %v604_v0, %v583_v41  ;;  %v3566_v57 = vld [vmem:[%s3364_s25 + $0x66] sm:$0xff]  ;;  %v3569_v58 = vld [vmem:[%s3364_s25 + $0x6e] sm:$0xff] }
  0x9c   : > { %v621_v20 = vadd.f32 %v605_v1, %v584_v35  ;;  %v622_v21 = vadd.f32 %v606_v2, %v585_v37  ;;  %v628_v22 = vmul.f32 %v3019_v4, %v3398_v47  ;;  %v629_v23 = vmul.f32 %v3019_v4, %v3401_v50  ;;  %v662_v35 = vld [vmem:[%s3364_s25 + $0x26] sm:$0xff]  ;;  %v663_v37 = vld [vmem:[%s3364_s25 + $0x2e] sm:$0xff] }
  0x9d   : > { %v630_v26 = vmul.f32 %v3019_v4, %v3405_v55  ;;  %v631_v27 = vmul.f32 %v3019_v4, %v3408_v56  ;;  %v632_v28 = vmul.f32 %v3019_v4, %v3414_v61  ;;  %v633_v29 = vmul.f32 %v3019_v4, %v3417_v62  ;;  %v3572_v46 = vld [vmem:[%s3364_s25 + $0x86] sm:$0xff]  ;;  %v3575_v60 = vld [vmem:[%s3364_s25 + $0x8e] sm:$0xff] }
  0x9e   : > { %v634_v30 = vmul.f32 %v3019_v4, %v3447_v49  ;;  %v635_v31 = vmul.f32 %v3019_v4, %v3450_v51  ;;  %v636_v47 = vmul.f32 %v3019_v4, %v3470_v16  ;;  %v637_v50 = vmul.f32 %v3019_v4, %v3473_v17  ;;  %v660_v51 = vld [vmem:[%s3364_s25 + $0x6] sm:$0xff]  ;;  %v661_v16 = vld [vmem:[%s3364_s25 + $0xe] sm:$0xff]  ;;  %v3020_v17 = vld [vmem:[%s5380_s2 + $0x1] ss:$0 sm:$0xff] }
  0x9f   : > { %v638_v32 = vmul.f32 %v3019_v4, %v3497_v5  ;;  %v639_v55 = vmul.f32 %v3019_v4, %v3500_v7  ;;  %v640_v56 = vmul.f32 %v3019_v4, %v414_v48  ;;  %v641_v42 = vmul.f32 %v3019_v4, %v415_v52  ;;  %v3578_v63 = vld [vmem:[%s3364_s25 + $0xa6] sm:$0xff]  ;;  %v3581_v2 = vld [vmem:[%s3364_s25 + $0xae] sm:$0xff] }
  0xa0   : > { %v642_v61 = vmul.f32 %v3019_v4, %v416_v24  ;;  %v643_v33 = vmul.f32 %v3019_v4, %v417_v25  ;;  %v644_v62 = vadd.f32 %v628_v22, %v607_v3  ;;  %v645_v49 = vadd.f32 %v629_v23, %v608_v6  ;;  %v3584_v3 = vld [vmem:[%s3364_s25 + $0xc6] sm:$0xff]  ;;  %v3587_v6 = vld [vmem:[%s3364_s25 + $0xce] sm:$0xff] }
  0xa1   : > { %v646_v5 = vadd.f32 %v630_v26, %v609_v8  ;;  %v647_v34 = vadd.f32 %v631_v27, %v610_v9  ;;  %v648_v41 = vadd.f32 %v632_v28, %v611_v10  ;;  %v649_v7 = vadd.f32 %v633_v29, %v612_v11  ;;  %v3590_v9 = vld [vmem:[%s3364_s25 + $0xe6] sm:$0xff]  ;;  %v3593_v10 = vld [vmem:[%s3364_s25 + $0xee] sm:$0xff] }
  0xa2   : > { %v650_v36 = vadd.f32 %v634_v30, %v613_v12  ;;  %v651_v48 = vadd.f32 %v635_v31, %v614_v13  ;;  %v652_v52 = vadd.f32 %v636_v47, %v615_v43  ;;  %v653_v53 = vadd.f32 %v637_v50, %v616_v44  ;;  %v3021_v27 = vld [vmem:[%s5380_s2 + $0x8] ss:$0 sm:$0xff] }
  0xa3   : > { %v654_v59 = vadd.f32 %v638_v32, %v617_v14  ;;  %v655_v39 = vadd.f32 %v639_v55, %v618_v18  ;;  %v656_v40 = vadd.f32 %v640_v56, %v619_v15  ;;  %v657_v45 = vadd.f32 %v641_v42, %v620_v19 }
  0xa4   : > { %v658_v0 = vadd.f32 %v642_v61, %v621_v20  ;;  %v659_v1 = vadd.f32 %v643_v33, %v622_v21  ;;  %v693_v4 = vmul.f32 %v3020_v17, %v660_v51  ;;  %v694_v8 = vmul.f32 %v3020_v17, %v661_v16 }
  0xa5   : > { %v695_v11 = vmul.f32 %v3020_v17, %v662_v35  ;;  %v696_v12 = vmul.f32 %v3020_v17, %v663_v37  ;;  %v697_v13 = vmul.f32 %v3020_v17, %v3560_v38  ;;  %v698_v43 = vmul.f32 %v3020_v17, %v3563_v54 }
  0xa6   : > { %v699_v44 = vmul.f32 %v3020_v17, %v3566_v57  ;;  %v700_v14 = vmul.f32 %v3020_v17, %v3569_v58  ;;  %v701_v18 = vmul.f32 %v3020_v17, %v3572_v46  ;;  %v702_v15 = vmul.f32 %v3020_v17, %v3575_v60 }
  0xa7   : > { %v703_v19 = vmul.f32 %v3020_v17, %v3578_v63  ;;  %v704_v20 = vmul.f32 %v3020_v17, %v3581_v2  ;;  %v705_v21 = vmul.f32 %v3020_v17, %v3584_v3  ;;  %v706_v22 = vmul.f32 %v3020_v17, %v3587_v6 }
  0xa8   : > { %v707_v23 = vmul.f32 %v3020_v17, %v3590_v9  ;;  %v708_v24 = vmul.f32 %v3020_v17, %v3593_v10  ;;  %v709_v25 = vadd.f32 %v693_v4, %v644_v62  ;;  %v710_v26 = vadd.f32 %v694_v8, %v645_v49  ;;  %v3611_v17 = vld [vmem:[%s3364_s25 + $0x106] sm:$0xff]  ;;  %v3022_v8 = vld [vmem:[%s5380_s2 + $0xf] ss:$0 sm:$0xff] }
  0xa9   : > { %v711_v28 = vadd.f32 %v695_v11, %v646_v5  ;;  %v712_v29 = vadd.f32 %v696_v12, %v647_v34  ;;  %v713_v30 = vadd.f32 %v697_v13, %v648_v41  ;;  %v714_v31 = vadd.f32 %v698_v43, %v649_v7  ;;  %v3614_v5 = vld [vmem:[%s3364_s25 + $0x10e] sm:$0xff] }
  0xaa   : > { %v715_v47 = vadd.f32 %v699_v44, %v650_v36  ;;  %v716_v50 = vadd.f32 %v700_v14, %v651_v48  ;;  %v717_v32 = vadd.f32 %v701_v18, %v652_v52  ;;  %v718_v55 = vadd.f32 %v702_v15, %v653_v53 }
  0xab   : > { %v719_v56 = vadd.f32 %v703_v19, %v654_v59  ;;  %v720_v42 = vadd.f32 %v704_v20, %v655_v39  ;;  %v721_v61 = vadd.f32 %v705_v21, %v656_v40  ;;  %v722_v33 = vadd.f32 %v706_v22, %v657_v45 }
  0xac   : > { %v723_v62 = vadd.f32 %v707_v23, %v658_v0  ;;  %v724_v49 = vadd.f32 %v708_v24, %v659_v1  ;;  %v730_v51 = vmul.f32 %v3021_v27, %v662_v35  ;;  %v731_v16 = vmul.f32 %v3021_v27, %v663_v37 }
  0xad   : > { %v732_v34 = vmul.f32 %v3021_v27, %v3560_v38  ;;  %v733_v41 = vmul.f32 %v3021_v27, %v3563_v54  ;;  %v734_v7 = vmul.f32 %v3021_v27, %v3566_v57  ;;  %v735_v36 = vmul.f32 %v3021_v27, %v3569_v58 }
  0xae   : > { %v736_v48 = vmul.f32 %v3021_v27, %v3572_v46  ;;  %v737_v52 = vmul.f32 %v3021_v27, %v3575_v60  ;;  %v738_v53 = vmul.f32 %v3021_v27, %v3578_v63  ;;  %v739_v35 = vmul.f32 %v3021_v27, %v3581_v2 }
  0xaf   : > { %v740_v37 = vmul.f32 %v3021_v27, %v3584_v3  ;;  %v741_v59 = vmul.f32 %v3021_v27, %v3587_v6  ;;  %v742_v39 = vmul.f32 %v3021_v27, %v3590_v9  ;;  %v743_v40 = vmul.f32 %v3021_v27, %v3593_v10 }
  0xb0   : > { %v744_v45 = vmul.f32 %v3021_v27, %v3611_v17  ;;  %v745_v0 = vmul.f32 %v3021_v27, %v3614_v5  ;;  %v746_v1 = vadd.f32 %v730_v51, %v709_v25  ;;  %v747_v4 = vadd.f32 %v731_v16, %v710_v26  ;;  %v3636_v27 = vld [vmem:[%s3364_s25 + $0x126] sm:$0xff]  ;;  %v3023_v16 = vld [vmem:[%s5380_s2 + $0x16] ss:$0 sm:$0xff] }
  0xb1   : > { %v748_v11 = vadd.f32 %v732_v34, %v711_v28  ;;  %v749_v12 = vadd.f32 %v733_v41, %v712_v29  ;;  %v750_v13 = vadd.f32 %v734_v7, %v713_v30  ;;  %v751_v43 = vadd.f32 %v735_v36, %v714_v31  ;;  %v3639_v28 = vld [vmem:[%s3364_s25 + $0x12e] sm:$0xff] }
  0xb2   : > { %v752_v44 = vadd.f32 %v736_v48, %v715_v47  ;;  %v753_v14 = vadd.f32 %v737_v52, %v716_v50  ;;  %v754_v18 = vadd.f32 %v738_v53, %v717_v32  ;;  %v755_v15 = vadd.f32 %v739_v35, %v718_v55 }
  0xb3   : > { %v756_v19 = vadd.f32 %v740_v37, %v719_v56  ;;  %v757_v20 = vadd.f32 %v741_v59, %v720_v42  ;;  %v758_v21 = vadd.f32 %v742_v39, %v721_v61  ;;  %v759_v22 = vadd.f32 %v743_v40, %v722_v33 }
  0xb4   : > { %v760_v23 = vadd.f32 %v744_v45, %v723_v62  ;;  %v761_v24 = vadd.f32 %v745_v0, %v724_v49  ;;  %v767_v25 = vmul.f32 %v3022_v8, %v3560_v38  ;;  %v768_v26 = vmul.f32 %v3022_v8, %v3563_v54 }
  0xb5   : > { %v769_v29 = vmul.f32 %v3022_v8, %v3566_v57  ;;  %v770_v30 = vmul.f32 %v3022_v8, %v3569_v58  ;;  %v771_v31 = vmul.f32 %v3022_v8, %v3572_v46  ;;  %v772_v47 = vmul.f32 %v3022_v8, %v3575_v60 }
  0xb6   : > { %v773_v50 = vmul.f32 %v3022_v8, %v3578_v63  ;;  %v774_v32 = vmul.f32 %v3022_v8, %v3581_v2  ;;  %v775_v38 = vmul.f32 %v3022_v8, %v3584_v3  ;;  %v776_v54 = vmul.f32 %v3022_v8, %v3587_v6 }
  0xb7   : > { %v777_v55 = vmul.f32 %v3022_v8, %v3590_v9  ;;  %v778_v56 = vmul.f32 %v3022_v8, %v3593_v10  ;;  %v779_v42 = vmul.f32 %v3022_v8, %v3611_v17  ;;  %v780_v61 = vmul.f32 %v3022_v8, %v3614_v5 }
  0xb8   : > { %v781_v33 = vmul.f32 %v3022_v8, %v3636_v27  ;;  %v782_v62 = vmul.f32 %v3022_v8, %v3639_v28  ;;  %v783_v49 = vadd.f32 %v767_v25, %v746_v1  ;;  %v784_v51 = vadd.f32 %v768_v26, %v747_v4  ;;  %v3661_v8 = vld [vmem:[%s3364_s25 + $0x146] sm:$0xff]  ;;  %v3024_v26 = vld [vmem:[%s5380_s2 + $0x1d] ss:$0 sm:$0xff] }
  0xb9   : > { %v785_v34 = vadd.f32 %v769_v29, %v748_v11  ;;  %v786_v41 = vadd.f32 %v770_v30, %v749_v12  ;;  %v787_v7 = vadd.f32 %v771_v31, %v750_v13  ;;  %v788_v36 = vadd.f32 %v772_v47, %v751_v43  ;;  %v3664_v11 = vld [vmem:[%s3364_s25 + $0x14e] sm:$0xff] }
  0xba   : > { %v789_v48 = vadd.f32 %v773_v50, %v752_v44  ;;  %v790_v52 = vadd.f32 %v774_v32, %v753_v14  ;;  %v791_v53 = vadd.f32 %v775_v38, %v754_v18  ;;  %v792_v35 = vadd.f32 %v776_v54, %v755_v15 }
  0xbb   : > { %v793_v37 = vadd.f32 %v777_v55, %v756_v19  ;;  %v794_v59 = vadd.f32 %v778_v56, %v757_v20  ;;  %v795_v39 = vadd.f32 %v779_v42, %v758_v21  ;;  %v796_v40 = vadd.f32 %v780_v61, %v759_v22 }
  0xbc   : > { %v797_v45 = vadd.f32 %v781_v33, %v760_v23  ;;  %v798_v0 = vadd.f32 %v782_v62, %v761_v24  ;;  %v804_v1 = vmul.f32 %v3023_v16, %v3566_v57  ;;  %v805_v4 = vmul.f32 %v3023_v16, %v3569_v58 }
  0xbd   : > { %v806_v12 = vmul.f32 %v3023_v16, %v3572_v46  ;;  %v807_v13 = vmul.f32 %v3023_v16, %v3575_v60  ;;  %v808_v43 = vmul.f32 %v3023_v16, %v3578_v63  ;;  %v809_v44 = vmul.f32 %v3023_v16, %v3581_v2 }
  0xbe   : > { %v810_v14 = vmul.f32 %v3023_v16, %v3584_v3  ;;  %v811_v18 = vmul.f32 %v3023_v16, %v3587_v6  ;;  %v812_v57 = vmul.f32 %v3023_v16, %v3590_v9  ;;  %v813_v58 = vmul.f32 %v3023_v16, %v3593_v10 }
  0xbf   : > { %v814_v15 = vmul.f32 %v3023_v16, %v3611_v17  ;;  %v815_v19 = vmul.f32 %v3023_v16, %v3614_v5  ;;  %v816_v20 = vmul.f32 %v3023_v16, %v3636_v27  ;;  %v817_v21 = vmul.f32 %v3023_v16, %v3639_v28 }
  0xc0   : > { %v818_v22 = vmul.f32 %v3023_v16, %v3661_v8  ;;  %v819_v23 = vmul.f32 %v3023_v16, %v3664_v11  ;;  %v820_v24 = vadd.f32 %v804_v1, %v783_v49  ;;  %v821_v25 = vadd.f32 %v805_v4, %v784_v51  ;;  %v3686_v16 = vld [vmem:[%s3364_s25 + $0x166] sm:$0xff]  ;;  %v3025_v4 = vld [vmem:[%s5380_s2 + $0x24] ss:$0 sm:$0xff] }
  0xc1   : > { %v822_v29 = vadd.f32 %v806_v12, %v785_v34  ;;  %v823_v30 = vadd.f32 %v807_v13, %v786_v41  ;;  %v824_v31 = vadd.f32 %v808_v43, %v787_v7  ;;  %v825_v47 = vadd.f32 %v809_v44, %v788_v36  ;;  %v3689_v34 = vld [vmem:[%s3364_s25 + $0x16e] sm:$0xff] }
  0xc2   : > { %v826_v50 = vadd.f32 %v810_v14, %v789_v48  ;;  %v827_v32 = vadd.f32 %v811_v18, %v790_v52  ;;  %v828_v38 = vadd.f32 %v812_v57, %v791_v53  ;;  %v829_v54 = vadd.f32 %v813_v58, %v792_v35 }
  0xc3   : > { %v830_v55 = vadd.f32 %v814_v15, %v793_v37  ;;  %v831_v56 = vadd.f32 %v815_v19, %v794_v59  ;;  %v832_v42 = vadd.f32 %v816_v20, %v795_v39  ;;  %v833_v61 = vadd.f32 %v817_v21, %v796_v40 }
  0xc4   : > { %v834_v33 = vadd.f32 %v818_v22, %v797_v45  ;;  %v835_v62 = vadd.f32 %v819_v23, %v798_v0  ;;  %v841_v49 = vmul.f32 %v3024_v26, %v3572_v46  ;;  %v842_v51 = vmul.f32 %v3024_v26, %v3575_v60 }
  0xc5   : > { %v843_v41 = vmul.f32 %v3024_v26, %v3578_v63  ;;  %v844_v7 = vmul.f32 %v3024_v26, %v3581_v2  ;;  %v845_v36 = vmul.f32 %v3024_v26, %v3584_v3  ;;  %v846_v48 = vmul.f32 %v3024_v26, %v3587_v6 }
  0xc6   : > { %v847_v52 = vmul.f32 %v3024_v26, %v3590_v9  ;;  %v848_v53 = vmul.f32 %v3024_v26, %v3593_v10  ;;  %v849_v46 = vmul.f32 %v3024_v26, %v3611_v17  ;;  %v850_v60 = vmul.f32 %v3024_v26, %v3614_v5 }
  0xc7   : > { %v851_v35 = vmul.f32 %v3024_v26, %v3636_v27  ;;  %v852_v37 = vmul.f32 %v3024_v26, %v3639_v28  ;;  %v853_v59 = vmul.f32 %v3024_v26, %v3661_v8  ;;  %v854_v39 = vmul.f32 %v3024_v26, %v3664_v11 }
  0xc8   : > { %v855_v40 = vmul.f32 %v3024_v26, %v3686_v16  ;;  %v856_v45 = vmul.f32 %v3024_v26, %v3689_v34  ;;  %v857_v0 = vadd.f32 %v841_v49, %v820_v24  ;;  %v858_v1 = vadd.f32 %v842_v51, %v821_v25  ;;  %v684_v26 = vld [vmem:[%s3364_s25 + $0x186] sm:$0xff] }
  0xc9   : > { %v859_v12 = vadd.f32 %v843_v41, %v822_v29  ;;  %v860_v13 = vadd.f32 %v844_v7, %v823_v30  ;;  %v861_v43 = vadd.f32 %v845_v36, %v824_v31  ;;  %v862_v44 = vadd.f32 %v846_v48, %v825_v47  ;;  %v685_v29 = vld [vmem:[%s3364_s25 + $0x18e] sm:$0xff]  ;;  %v3026_v51 = vld [vmem:[%s5380_s2 + $0x2b] ss:$0 sm:$0xff] }
  0xca   : > { %v863_v14 = vadd.f32 %v847_v52, %v826_v50  ;;  %v864_v18 = vadd.f32 %v848_v53, %v827_v32  ;;  %v865_v57 = vadd.f32 %v849_v46, %v828_v38  ;;  %v866_v58 = vadd.f32 %v850_v60, %v829_v54 }
  0xcb   : > { %v867_v15 = vadd.f32 %v851_v35, %v830_v55  ;;  %v868_v19 = vadd.f32 %v852_v37, %v831_v56  ;;  %v869_v20 = vadd.f32 %v853_v59, %v832_v42  ;;  %v870_v21 = vadd.f32 %v854_v39, %v833_v61 }
  0xcc   : > { %v871_v22 = vadd.f32 %v855_v40, %v834_v33  ;;  %v872_v23 = vadd.f32 %v856_v45, %v835_v62  ;;  %v878_v24 = vmul.f32 %v3025_v4, %v3578_v63  ;;  %v879_v25 = vmul.f32 %v3025_v4, %v3581_v2 }
  0xcd   : > { %v880_v30 = vmul.f32 %v3025_v4, %v3584_v3  ;;  %v881_v31 = vmul.f32 %v3025_v4, %v3587_v6  ;;  %v882_v47 = vmul.f32 %v3025_v4, %v3590_v9  ;;  %v883_v50 = vmul.f32 %v3025_v4, %v3593_v10 }
  0xce   : > { %v884_v32 = vmul.f32 %v3025_v4, %v3611_v17  ;;  %v885_v38 = vmul.f32 %v3025_v4, %v3614_v5  ;;  %v886_v54 = vmul.f32 %v3025_v4, %v3636_v27  ;;  %v887_v63 = vmul.f32 %v3025_v4, %v3639_v28 }
  0xcf   : > { %v888_v2 = vmul.f32 %v3025_v4, %v3661_v8  ;;  %v889_v55 = vmul.f32 %v3025_v4, %v3664_v11  ;;  %v890_v56 = vmul.f32 %v3025_v4, %v3686_v16  ;;  %v891_v42 = vmul.f32 %v3025_v4, %v3689_v34 }
  0xd0   : > { %v892_v61 = vmul.f32 %v3025_v4, %v684_v26  ;;  %v893_v33 = vmul.f32 %v3025_v4, %v685_v29  ;;  %v894_v62 = vadd.f32 %v878_v24, %v857_v0  ;;  %v895_v49 = vadd.f32 %v879_v25, %v858_v1  ;;  %v686_v4 = vld [vmem:[%s3364_s25 + $0x1a6] sm:$0xff] }
  0xd1   : > { %v896_v41 = vadd.f32 %v880_v30, %v859_v12  ;;  %v897_v7 = vadd.f32 %v881_v31, %v860_v13  ;;  %v898_v36 = vadd.f32 %v882_v47, %v861_v43  ;;  %v899_v48 = vadd.f32 %v883_v50, %v862_v44  ;;  %v687_v12 = vld [vmem:[%s3364_s25 + $0x1ae] sm:$0xff] }
  0xd2   : > { %v900_v52 = vadd.f32 %v884_v32, %v863_v14  ;;  %v901_v53 = vadd.f32 %v885_v38, %v864_v18  ;;  %v902_v46 = vadd.f32 %v886_v54, %v865_v57  ;;  %v903_v60 = vadd.f32 %v887_v63, %v866_v58  ;;  %v3749_v24 = vld [vmem:[%s3364_s25 + $0x47] sm:$0xff]  ;;  %v3752_v31 = vld [vmem:[%s3364_s25 + $0x4f] sm:$0xff] }
  0xd3   : > { %v904_v35 = vadd.f32 %v888_v2, %v867_v15  ;;  %v905_v37 = vadd.f32 %v889_v55, %v868_v19  ;;  %v906_v59 = vadd.f32 %v890_v56, %v869_v20  ;;  %v907_v39 = vadd.f32 %v891_v42, %v870_v21  ;;  %v3755_v47 = vld [vmem:[%s3364_s25 + $0x67] sm:$0xff]  ;;  %v3758_v50 = vld [vmem:[%s3364_s25 + $0x6f] sm:$0xff] }
  0xd4   : > { %v908_v40 = vadd.f32 %v892_v61, %v871_v22  ;;  %v909_v45 = vadd.f32 %v893_v33, %v872_v23  ;;  %v915_v0 = vmul.f32 %v3026_v51, %v3584_v3  ;;  %v916_v1 = vmul.f32 %v3026_v51, %v3587_v6  ;;  %v949_v22 = vld [vmem:[%s3364_s25 + $0x27] sm:$0xff]  ;;  %v950_v23 = vld [vmem:[%s3364_s25 + $0x2f] sm:$0xff] }
  0xd5   : > { %v917_v13 = vmul.f32 %v3026_v51, %v3590_v9  ;;  %v918_v43 = vmul.f32 %v3026_v51, %v3593_v10  ;;  %v919_v44 = vmul.f32 %v3026_v51, %v3611_v17  ;;  %v920_v14 = vmul.f32 %v3026_v51, %v3614_v5  ;;  %v3761_v2 = vld [vmem:[%s3364_s25 + $0x87] sm:$0xff]  ;;  %v3764_v55 = vld [vmem:[%s3364_s25 + $0x8f] sm:$0xff] }
  0xd6   : > { %v921_v18 = vmul.f32 %v3026_v51, %v3636_v27  ;;  %v922_v57 = vmul.f32 %v3026_v51, %v3639_v28  ;;  %v923_v3 = vmul.f32 %v3026_v51, %v3661_v8  ;;  %v924_v6 = vmul.f32 %v3026_v51, %v3664_v11  ;;  %v947_v28 = vld [vmem:[%s3364_s25 + $0x7] sm:$0xff]  ;;  %v948_v8 = vld [vmem:[%s3364_s25 + $0xf] sm:$0xff]  ;;  %v3027_v11 = vld [vmem:[%s5380_s2 + $0x2] ss:$0 sm:$0xff] }
  0xd7   : > { %v925_v58 = vmul.f32 %v3026_v51, %v3686_v16  ;;  %v926_v9 = vmul.f32 %v3026_v51, %v3689_v34  ;;  %v927_v10 = vmul.f32 %v3026_v51, %v684_v26  ;;  %v928_v15 = vmul.f32 %v3026_v51, %v685_v29  ;;  %v3767_v56 = vld [vmem:[%s3364_s25 + $0xa7] sm:$0xff]  ;;  %v3770_v33 = vld [vmem:[%s3364_s25 + $0xaf] sm:$0xff] }
  0xd8   : > { %v929_v17 = vmul.f32 %v3026_v51, %v686_v4  ;;  %v930_v19 = vmul.f32 %v3026_v51, %v687_v12  ;;  %v931_v5 = vadd.f32 %v915_v0, %v894_v62  ;;  %v932_v27 = vadd.f32 %v916_v1, %v895_v49  ;;  %v3773_v62 = vld [vmem:[%s3364_s25 + $0xc7] sm:$0xff]  ;;  %v3776_v49 = vld [vmem:[%s3364_s25 + $0xcf] sm:$0xff] }
  0xd9   : > { %v933_v16 = vadd.f32 %v917_v13, %v896_v41  ;;  %v934_v20 = vadd.f32 %v918_v43, %v897_v7  ;;  %v935_v21 = vadd.f32 %v919_v44, %v898_v36  ;;  %v936_v34 = vadd.f32 %v920_v14, %v899_v48  ;;  %v3779_v7 = vld [vmem:[%s3364_s25 + $0xe7] sm:$0xff]  ;;  %v3782_v36 = vld [vmem:[%s3364_s25 + $0xef] sm:$0xff] }
  0xda   : > { %v937_v25 = vadd.f32 %v921_v18, %v900_v52  ;;  %v938_v26 = vadd.f32 %v922_v57, %v901_v53  ;;  %v939_v29 = vadd.f32 %v923_v3, %v902_v46  ;;  %v940_v30 = vadd.f32 %v924_v6, %v903_v60  ;;  %v3028_v43 = vld [vmem:[%s5380_s2 + $0x9] ss:$0 sm:$0xff] }
  0xdb   : > { %v941_v32 = vadd.f32 %v925_v58, %v904_v35  ;;  %v942_v38 = vadd.f32 %v926_v9, %v905_v37  ;;  %v943_v54 = vadd.f32 %v927_v10, %v906_v59  ;;  %v944_v63 = vadd.f32 %v928_v15, %v907_v39 }
  0xdc   : > { %v945_v42 = vadd.f32 %v929_v17, %v908_v40  ;;  %v946_v61 = vadd.f32 %v930_v19, %v909_v45  ;;  %v980_v51 = vmul.f32 %v3027_v11, %v947_v28  ;;  %v981_v41 = vmul.f32 %v3027_v11, %v948_v8 }
  0xdd   : > { %v982_v48 = vmul.f32 %v3027_v11, %v949_v22  ;;  %v983_v52 = vmul.f32 %v3027_v11, %v950_v23  ;;  %v984_v53 = vmul.f32 %v3027_v11, %v3749_v24  ;;  %v985_v46 = vmul.f32 %v3027_v11, %v3752_v31 }
  0xde   : > { %v986_v60 = vmul.f32 %v3027_v11, %v3755_v47  ;;  %v987_v35 = vmul.f32 %v3027_v11, %v3758_v50  ;;  %v988_v37 = vmul.f32 %v3027_v11, %v3761_v2  ;;  %v989_v59 = vmul.f32 %v3027_v11, %v3764_v55 }
  0xdf   : > { %v990_v39 = vmul.f32 %v3027_v11, %v3767_v56  ;;  %v991_v40 = vmul.f32 %v3027_v11, %v3770_v33  ;;  %v992_v45 = vmul.f32 %v3027_v11, %v3773_v62  ;;  %v993_v0 = vmul.f32 %v3027_v11, %v3776_v49 }
  0xe0   : > { %v994_v1 = vmul.f32 %v3027_v11, %v3779_v7  ;;  %v995_v4 = vmul.f32 %v3027_v11, %v3782_v36  ;;  %v996_v12 = vadd.f32 %v980_v51, %v931_v5  ;;  %v997_v13 = vadd.f32 %v981_v41, %v932_v27  ;;  %v3800_v11 = vld [vmem:[%s3364_s25 + $0x107] sm:$0xff]  ;;  %v3029_v41 = vld [vmem:[%s5380_s2 + $0x10] ss:$0 sm:$0xff] }
  0xe1   : > { %v998_v44 = vadd.f32 %v982_v48, %v933_v16  ;;  %v999_v14 = vadd.f32 %v983_v52, %v934_v20  ;;  %v1000_v18 = vadd.f32 %v984_v53, %v935_v21  ;;  %v1001_v57 = vadd.f32 %v985_v46, %v936_v34  ;;  %v3803_v16 = vld [vmem:[%s3364_s25 + $0x10f] sm:$0xff] }
  0xe2   : > { %v1002_v3 = vadd.f32 %v986_v60, %v937_v25  ;;  %v1003_v6 = vadd.f32 %v987_v35, %v938_v26  ;;  %v1004_v58 = vadd.f32 %v988_v37, %v939_v29  ;;  %v1005_v9 = vadd.f32 %v989_v59, %v940_v30 }
  0xe3   : > { %v1006_v10 = vadd.f32 %v990_v39, %v941_v32  ;;  %v1007_v15 = vadd.f32 %v991_v40, %v942_v38  ;;  %v1008_v17 = vadd.f32 %v992_v45, %v943_v54  ;;  %v1009_v19 = vadd.f32 %v993_v0, %v944_v63 }
  0xe4   : > { %v1010_v5 = vadd.f32 %v994_v1, %v945_v42  ;;  %v1011_v27 = vadd.f32 %v995_v4, %v946_v61  ;;  %v1017_v28 = vmul.f32 %v3028_v43, %v949_v22  ;;  %v1018_v8 = vmul.f32 %v3028_v43, %v950_v23 }
  0xe5   : > { %v1019_v20 = vmul.f32 %v3028_v43, %v3749_v24  ;;  %v1020_v21 = vmul.f32 %v3028_v43, %v3752_v31  ;;  %v1021_v34 = vmul.f32 %v3028_v43, %v3755_v47  ;;  %v1022_v25 = vmul.f32 %v3028_v43, %v3758_v50 }
  0xe6   : > { %v1023_v26 = vmul.f32 %v3028_v43, %v3761_v2  ;;  %v1024_v29 = vmul.f32 %v3028_v43, %v3764_v55  ;;  %v1025_v30 = vmul.f32 %v3028_v43, %v3767_v56  ;;  %v1026_v22 = vmul.f32 %v3028_v43, %v3770_v33 }
  0xe7   : > { %v1027_v23 = vmul.f32 %v3028_v43, %v3773_v62  ;;  %v1028_v32 = vmul.f32 %v3028_v43, %v3776_v49  ;;  %v1029_v38 = vmul.f32 %v3028_v43, %v3779_v7  ;;  %v1030_v54 = vmul.f32 %v3028_v43, %v3782_v36 }
  0xe8   : > { %v1031_v63 = vmul.f32 %v3028_v43, %v3800_v11  ;;  %v1032_v42 = vmul.f32 %v3028_v43, %v3803_v16  ;;  %v1033_v61 = vadd.f32 %v1017_v28, %v996_v12  ;;  %v1034_v51 = vadd.f32 %v1018_v8, %v997_v13  ;;  %v3825_v43 = vld [vmem:[%s3364_s25 + $0x127] sm:$0xff]  ;;  %v3030_v8 = vld [vmem:[%s5380_s2 + $0x17] ss:$0 sm:$0xff] }
  0xe9   : > { %v1035_v48 = vadd.f32 %v1019_v20, %v998_v44  ;;  %v1036_v52 = vadd.f32 %v1020_v21, %v999_v14  ;;  %v1037_v53 = vadd.f32 %v1021_v34, %v1000_v18  ;;  %v1038_v46 = vadd.f32 %v1022_v25, %v1001_v57  ;;  %v3828_v44 = vld [vmem:[%s3364_s25 + $0x12f] sm:$0xff] }
  0xea   : > { %v1039_v60 = vadd.f32 %v1023_v26, %v1002_v3  ;;  %v1040_v35 = vadd.f32 %v1024_v29, %v1003_v6  ;;  %v1041_v37 = vadd.f32 %v1025_v30, %v1004_v58  ;;  %v1042_v59 = vadd.f32 %v1026_v22, %v1005_v9 }
  0xeb   : > { %v1043_v39 = vadd.f32 %v1027_v23, %v1006_v10  ;;  %v1044_v40 = vadd.f32 %v1028_v32, %v1007_v15  ;;  %v1045_v45 = vadd.f32 %v1029_v38, %v1008_v17  ;;  %v1046_v0 = vadd.f32 %v1030_v54, %v1009_v19 }
  0xec   : > { %v1047_v1 = vadd.f32 %v1031_v63, %v1010_v5  ;;  %v1048_v4 = vadd.f32 %v1032_v42, %v1011_v27  ;;  %v1054_v12 = vmul.f32 %v3029_v41, %v3749_v24  ;;  %v1055_v13 = vmul.f32 %v3029_v41, %v3752_v31 }
  0xed   : > { %v1056_v14 = vmul.f32 %v3029_v41, %v3755_v47  ;;  %v1057_v18 = vmul.f32 %v3029_v41, %v3758_v50  ;;  %v1058_v57 = vmul.f32 %v3029_v41, %v3761_v2  ;;  %v1059_v3 = vmul.f32 %v3029_v41, %v3764_v55 }
  0xee   : > { %v1060_v6 = vmul.f32 %v3029_v41, %v3767_v56  ;;  %v1061_v58 = vmul.f32 %v3029_v41, %v3770_v33  ;;  %v1062_v24 = vmul.f32 %v3029_v41, %v3773_v62  ;;  %v1063_v31 = vmul.f32 %v3029_v41, %v3776_v49 }
  0xef   : > { %v1064_v9 = vmul.f32 %v3029_v41, %v3779_v7  ;;  %v1065_v10 = vmul.f32 %v3029_v41, %v3782_v36  ;;  %v1066_v15 = vmul.f32 %v3029_v41, %v3800_v11  ;;  %v1067_v17 = vmul.f32 %v3029_v41, %v3803_v16 }
  0xf0   : > { %v1068_v19 = vmul.f32 %v3029_v41, %v3825_v43  ;;  %v1069_v5 = vmul.f32 %v3029_v41, %v3828_v44  ;;  %v1070_v27 = vadd.f32 %v1054_v12, %v1033_v61  ;;  %v1071_v28 = vadd.f32 %v1055_v13, %v1034_v51  ;;  %v3850_v41 = vld [vmem:[%s3364_s25 + $0x147] sm:$0xff]  ;;  %v3031_v13 = vld [vmem:[%s5380_s2 + $0x1e] ss:$0 sm:$0xff] }
  0xf1   : > { %v1072_v20 = vadd.f32 %v1056_v14, %v1035_v48  ;;  %v1073_v21 = vadd.f32 %v1057_v18, %v1036_v52  ;;  %v1074_v34 = vadd.f32 %v1058_v57, %v1037_v53  ;;  %v1075_v25 = vadd.f32 %v1059_v3, %v1038_v46  ;;  %v3853_v48 = vld [vmem:[%s3364_s25 + $0x14f] sm:$0xff] }
  0xf2   : > { %v1076_v26 = vadd.f32 %v1060_v6, %v1039_v60  ;;  %v1077_v29 = vadd.f32 %v1061_v58, %v1040_v35  ;;  %v1078_v30 = vadd.f32 %v1062_v24, %v1041_v37  ;;  %v1079_v22 = vadd.f32 %v1063_v31, %v1042_v59 }
  0xf3   : > { %v1080_v23 = vadd.f32 %v1064_v9, %v1043_v39  ;;  %v1081_v32 = vadd.f32 %v1065_v10, %v1044_v40  ;;  %v1082_v38 = vadd.f32 %v1066_v15, %v1045_v45  ;;  %v1083_v54 = vadd.f32 %v1067_v17, %v1046_v0 }
  0xf4   : > { %v1084_v63 = vadd.f32 %v1068_v19, %v1047_v1  ;;  %v1085_v42 = vadd.f32 %v1069_v5, %v1048_v4  ;;  %v1091_v61 = vmul.f32 %v3030_v8, %v3755_v47  ;;  %v1092_v51 = vmul.f32 %v3030_v8, %v3758_v50 }
  0xf5   : > { %v1093_v52 = vmul.f32 %v3030_v8, %v3761_v2  ;;  %v1094_v53 = vmul.f32 %v3030_v8, %v3764_v55  ;;  %v1095_v46 = vmul.f32 %v3030_v8, %v3767_v56  ;;  %v1096_v60 = vmul.f32 %v3030_v8, %v3770_v33 }
  0xf6   : > { %v1097_v35 = vmul.f32 %v3030_v8, %v3773_v62  ;;  %v1098_v37 = vmul.f32 %v3030_v8, %v3776_v49  ;;  %v1099_v47 = vmul.f32 %v3030_v8, %v3779_v7  ;;  %v1100_v50 = vmul.f32 %v3030_v8, %v3782_v36 }
  0xf7   : > { %v1101_v59 = vmul.f32 %v3030_v8, %v3800_v11  ;;  %v1102_v39 = vmul.f32 %v3030_v8, %v3803_v16  ;;  %v1103_v40 = vmul.f32 %v3030_v8, %v3825_v43  ;;  %v1104_v45 = vmul.f32 %v3030_v8, %v3828_v44 }
  0xf8   : > { %v1105_v0 = vmul.f32 %v3030_v8, %v3850_v41  ;;  %v1106_v1 = vmul.f32 %v3030_v8, %v3853_v48  ;;  %v1107_v4 = vadd.f32 %v1091_v61, %v1070_v27  ;;  %v1108_v12 = vadd.f32 %v1092_v51, %v1071_v28  ;;  %v3875_v8 = vld [vmem:[%s3364_s25 + $0x167] sm:$0xff]  ;;  %v3032_v51 = vld [vmem:[%s5380_s2 + $0x25] ss:$0 sm:$0xff] }
  0xf9   : > { %v1109_v14 = vadd.f32 %v1093_v52, %v1072_v20  ;;  %v1110_v18 = vadd.f32 %v1094_v53, %v1073_v21  ;;  %v1111_v57 = vadd.f32 %v1095_v46, %v1074_v34  ;;  %v1112_v3 = vadd.f32 %v1096_v60, %v1075_v25  ;;  %v3878_v20 = vld [vmem:[%s3364_s25 + $0x16f] sm:$0xff] }
  0xfa   : > { %v1113_v6 = vadd.f32 %v1097_v35, %v1076_v26  ;;  %v1114_v58 = vadd.f32 %v1098_v37, %v1077_v29  ;;  %v1115_v24 = vadd.f32 %v1099_v47, %v1078_v30  ;;  %v1116_v31 = vadd.f32 %v1100_v50, %v1079_v22 }
  0xfb   : > { %v1117_v9 = vadd.f32 %v1101_v59, %v1080_v23  ;;  %v1118_v10 = vadd.f32 %v1102_v39, %v1081_v32  ;;  %v1119_v15 = vadd.f32 %v1103_v40, %v1082_v38  ;;  %v1120_v17 = vadd.f32 %v1104_v45, %v1083_v54 }
  0xfc   : > { %v1121_v19 = vadd.f32 %v1105_v0, %v1084_v63  ;;  %v1122_v5 = vadd.f32 %v1106_v1, %v1085_v42  ;;  %v1128_v27 = vmul.f32 %v3031_v13, %v3761_v2  ;;  %v1129_v28 = vmul.f32 %v3031_v13, %v3764_v55 }
  0xfd   : > { %v1130_v21 = vmul.f32 %v3031_v13, %v3767_v56  ;;  %v1131_v34 = vmul.f32 %v3031_v13, %v3770_v33  ;;  %v1132_v25 = vmul.f32 %v3031_v13, %v3773_v62  ;;  %v1133_v26 = vmul.f32 %v3031_v13, %v3776_v49 }
  0xfe   : > { %v1134_v29 = vmul.f32 %v3031_v13, %v3779_v7  ;;  %v1135_v30 = vmul.f32 %v3031_v13, %v3782_v36  ;;  %v1136_v2 = vmul.f32 %v3031_v13, %v3800_v11  ;;  %v1137_v55 = vmul.f32 %v3031_v13, %v3803_v16 }
  0xff   : > { %v1138_v22 = vmul.f32 %v3031_v13, %v3825_v43  ;;  %v1139_v23 = vmul.f32 %v3031_v13, %v3828_v44  ;;  %v1140_v32 = vmul.f32 %v3031_v13, %v3850_v41  ;;  %v1141_v38 = vmul.f32 %v3031_v13, %v3853_v48 }
 0x100   : > { %v1142_v54 = vmul.f32 %v3031_v13, %v3875_v8  ;;  %v1143_v63 = vmul.f32 %v3031_v13, %v3878_v20  ;;  %v1144_v42 = vadd.f32 %v1128_v27, %v1107_v4  ;;  %v1145_v61 = vadd.f32 %v1129_v28, %v1108_v12  ;;  %v971_v13 = vld [vmem:[%s3364_s25 + $0x187] sm:$0xff] }
 0x101   : > { %v1146_v52 = vadd.f32 %v1130_v21, %v1109_v14  ;;  %v1147_v53 = vadd.f32 %v1131_v34, %v1110_v18  ;;  %v1148_v46 = vadd.f32 %v1132_v25, %v1111_v57  ;;  %v1149_v60 = vadd.f32 %v1133_v26, %v1112_v3  ;;  %v972_v14 = vld [vmem:[%s3364_s25 + $0x18f] sm:$0xff]  ;;  %v3033_v28 = vld [vmem:[%s5380_s2 + $0x2c] ss:$0 sm:$0xff] }
 0x102   : > { %v1150_v35 = vadd.f32 %v1134_v29, %v1113_v6  ;;  %v1151_v37 = vadd.f32 %v1135_v30, %v1114_v58  ;;  %v1152_v47 = vadd.f32 %v1136_v2, %v1115_v24  ;;  %v1153_v50 = vadd.f32 %v1137_v55, %v1116_v31 }
 0x103   : > { %v1154_v59 = vadd.f32 %v1138_v22, %v1117_v9  ;;  %v1155_v39 = vadd.f32 %v1139_v23, %v1118_v10  ;;  %v1156_v40 = vadd.f32 %v1140_v32, %v1119_v15  ;;  %v1157_v45 = vadd.f32 %v1141_v38, %v1120_v17 }
 0x104   : > { %v1158_v0 = vadd.f32 %v1142_v54, %v1121_v19  ;;  %v1159_v1 = vadd.f32 %v1143_v63, %v1122_v5  ;;  %v1165_v4 = vmul.f32 %v3032_v51, %v3767_v56  ;;  %v1166_v12 = vmul.f32 %v3032_v51, %v3770_v33 }
 0x105   : > { %v1167_v18 = vmul.f32 %v3032_v51, %v3773_v62  ;;  %v1168_v57 = vmul.f32 %v3032_v51, %v3776_v49  ;;  %v1169_v3 = vmul.f32 %v3032_v51, %v3779_v7  ;;  %v1170_v6 = vmul.f32 %v3032_v51, %v3782_v36 }
 0x106   : > { %v1171_v58 = vmul.f32 %v3032_v51, %v3800_v11  ;;  %v1172_v24 = vmul.f32 %v3032_v51, %v3803_v16  ;;  %v1173_v31 = vmul.f32 %v3032_v51, %v3825_v43  ;;  %v1174_v56 = vmul.f32 %v3032_v51, %v3828_v44 }
 0x107   : > { %v1175_v33 = vmul.f32 %v3032_v51, %v3850_v41  ;;  %v1176_v9 = vmul.f32 %v3032_v51, %v3853_v48  ;;  %v1177_v10 = vmul.f32 %v3032_v51, %v3875_v8  ;;  %v1178_v15 = vmul.f32 %v3032_v51, %v3878_v20 }
 0x108   : > { %v1179_v17 = vmul.f32 %v3032_v51, %v971_v13  ;;  %v1180_v19 = vmul.f32 %v3032_v51, %v972_v14  ;;  %v1181_v5 = vadd.f32 %v1165_v4, %v1144_v42  ;;  %v1182_v27 = vadd.f32 %v1166_v12, %v1145_v61  ;;  %v973_v51 = vld [vmem:[%s3364_s25 + $0x1a7] sm:$0xff] }
 0x109   : > { %v1183_v21 = vadd.f32 %v1167_v18, %v1146_v52  ;;  %v1184_v34 = vadd.f32 %v1168_v57, %v1147_v53  ;;  %v1185_v25 = vadd.f32 %v1169_v3, %v1148_v46  ;;  %v1186_v26 = vadd.f32 %v1170_v6, %v1149_v60  ;;  %v974_v52 = vld [vmem:[%s3364_s25 + $0x1af] sm:$0xff] }
 0x10a   : > { %v1187_v29 = vadd.f32 %v1171_v58, %v1150_v35  ;;  %v1188_v30 = vadd.f32 %v1172_v24, %v1151_v37  ;;  %v1189_v2 = vadd.f32 %v1173_v31, %v1152_v47  ;;  %v1190_v55 = vadd.f32 %v1174_v56, %v1153_v50  ;;  %v3938_v4 = vld [vmem:[%s3364_s25 + $0x48] sm:$0xff]  ;;  %v3941_v57 = vld [vmem:[%s3364_s25 + $0x50] sm:$0xff] }
 0x10b   : > { %v1191_v22 = vadd.f32 %v1175_v33, %v1154_v59  ;;  %v1192_v23 = vadd.f32 %v1176_v9, %v1155_v39  ;;  %v1193_v32 = vadd.f32 %v1177_v10, %v1156_v40  ;;  %v1194_v38 = vadd.f32 %v1178_v15, %v1157_v45  ;;  %v3944_v3 = vld [vmem:[%s3364_s25 + $0x68] sm:$0xff]  ;;  %v3947_v6 = vld [vmem:[%s3364_s25 + $0x70] sm:$0xff] }
 0x10c   : > { %v1195_v54 = vadd.f32 %v1179_v17, %v1158_v0  ;;  %v1196_v63 = vadd.f32 %v1180_v19, %v1159_v1  ;;  %v1202_v42 = vmul.f32 %v3033_v28, %v3773_v62  ;;  %v1203_v61 = vmul.f32 %v3033_v28, %v3776_v49  ;;  %v1236_v0 = vld [vmem:[%s3364_s25 + $0x28] sm:$0xff]  ;;  %v1237_v1 = vld [vmem:[%s3364_s25 + $0x30] sm:$0xff] }
 0x10d   : > { %v1204_v53 = vmul.f32 %v3033_v28, %v3779_v7  ;;  %v1205_v46 = vmul.f32 %v3033_v28, %v3782_v36  ;;  %v1206_v60 = vmul.f32 %v3033_v28, %v3800_v11  ;;  %v1207_v35 = vmul.f32 %v3033_v28, %v3803_v16  ;;  %v3950_v33 = vld [vmem:[%s3364_s25 + $0x88] sm:$0xff]  ;;  %v3953_v9 = vld [vmem:[%s3364_s25 + $0x90] sm:$0xff] }
 0x10e   : > { %v1208_v37 = vmul.f32 %v3033_v28, %v3825_v43  ;;  %v1209_v47 = vmul.f32 %v3033_v28, %v3828_v44  ;;  %v1210_v62 = vmul.f32 %v3033_v28, %v3850_v41  ;;  %v1211_v49 = vmul.f32 %v3033_v28, %v3853_v48  ;;  %v1234_v44 = vld [vmem:[%s3364_s25 + $0x8] sm:$0xff]  ;;  %v1235_v41 = vld [vmem:[%s3364_s25 + $0x10] sm:$0xff]  ;;  %v3034_v48 = vld [vmem:[%s5380_s2 + $0x3] ss:$0 sm:$0xff] }
 0x10f   : > { %v1212_v50 = vmul.f32 %v3033_v28, %v3875_v8  ;;  %v1213_v7 = vmul.f32 %v3033_v28, %v3878_v20  ;;  %v1214_v36 = vmul.f32 %v3033_v28, %v971_v13  ;;  %v1215_v59 = vmul.f32 %v3033_v28, %v972_v14  ;;  %v3956_v10 = vld [vmem:[%s3364_s25 + $0xa8] sm:$0xff]  ;;  %v3959_v19 = vld [vmem:[%s3364_s25 + $0xb0] sm:$0xff] }
 0x110   : > { %v1216_v11 = vmul.f32 %v3033_v28, %v973_v51  ;;  %v1217_v39 = vmul.f32 %v3033_v28, %v974_v52  ;;  %v1218_v16 = vadd.f32 %v1202_v42, %v1181_v5  ;;  %v1219_v43 = vadd.f32 %v1203_v61, %v1182_v27  ;;  %v3962_v5 = vld [vmem:[%s3364_s25 + $0xc8] sm:$0xff]  ;;  %v3965_v27 = vld [vmem:[%s3364_s25 + $0xd0] sm:$0xff] }
 0x111   : > { %v1220_v8 = vadd.f32 %v1204_v53, %v1183_v21  ;;  %v1221_v40 = vadd.f32 %v1205_v46, %v1184_v34  ;;  %v1222_v45 = vadd.f32 %v1206_v60, %v1185_v25  ;;  %v1223_v20 = vadd.f32 %v1207_v35, %v1186_v26  ;;  %v3968_v34 = vld [vmem:[%s3364_s25 + $0xe8] sm:$0xff]  ;;  %v3971_v25 = vld [vmem:[%s3364_s25 + $0xf0] sm:$0xff] }
 0x112   : > { %v1224_v12 = vadd.f32 %v1208_v37, %v1187_v29  ;;  %v1225_v13 = vadd.f32 %v1209_v47, %v1188_v30  ;;  %v1226_v14 = vadd.f32 %v1210_v62, %v1189_v2  ;;  %v1227_v18 = vadd.f32 %v1211_v49, %v1190_v55  ;;  %v3035_v46 = vld [vmem:[%s5380_s2 + $0xa] ss:$0 sm:$0xff] }
 0x113   : > { %v1228_v58 = vadd.f32 %v1212_v50, %v1191_v22  ;;  %v1229_v24 = vadd.f32 %v1213_v7, %v1192_v23  ;;  %v1230_v31 = vadd.f32 %v1214_v36, %v1193_v32  ;;  %v1231_v56 = vadd.f32 %v1215_v59, %v1194_v38 }
 0x114   : > { %v1232_v15 = vadd.f32 %v1216_v11, %v1195_v54  ;;  %v1233_v17 = vadd.f32 %v1217_v39, %v1196_v63  ;;  %v1267_v28 = vmul.f32 %v3034_v48, %v1234_v44  ;;  %v1268_v21 = vmul.f32 %v3034_v48, %v1235_v41 }
 0x115   : > { %v1269_v26 = vmul.f32 %v3034_v48, %v1236_v0  ;;  %v1270_v29 = vmul.f32 %v3034_v48, %v1237_v1  ;;  %v1271_v30 = vmul.f32 %v3034_v48, %v3938_v4  ;;  %v1272_v2 = vmul.f32 %v3034_v48, %v3941_v57 }
 0x116   : > { %v1273_v55 = vmul.f32 %v3034_v48, %v3944_v3  ;;  %v1274_v22 = vmul.f32 %v3034_v48, %v3947_v6  ;;  %v1275_v23 = vmul.f32 %v3034_v48, %v3950_v33  ;;  %v1276_v32 = vmul.f32 %v3034_v48, %v3953_v9 }
 0x117   : > { %v1277_v38 = vmul.f32 %v3034_v48, %v3956_v10  ;;  %v1278_v54 = vmul.f32 %v3034_v48, %v3959_v19  ;;  %v1279_v63 = vmul.f32 %v3034_v48, %v3962_v5  ;;  %v1280_v42 = vmul.f32 %v3034_v48, %v3965_v27 }
 0x118   : > { %v1281_v61 = vmul.f32 %v3034_v48, %v3968_v34  ;;  %v1282_v51 = vmul.f32 %v3034_v48, %v3971_v25  ;;  %v1283_v52 = vadd.f32 %v1267_v28, %v1218_v16  ;;  %v1284_v53 = vadd.f32 %v1268_v21, %v1219_v43  ;;  %v3989_v48 = vld [vmem:[%s3364_s25 + $0x108] sm:$0xff]  ;;  %v3036_v21 = vld [vmem:[%s5380_s2 + $0x11] ss:$0 sm:$0xff] }
 0x119   : > { %v1285_v60 = vadd.f32 %v1269_v26, %v1220_v8  ;;  %v1286_v35 = vadd.f32 %v1270_v29, %v1221_v40  ;;  %v1287_v37 = vadd.f32 %v1271_v30, %v1222_v45  ;;  %v1288_v47 = vadd.f32 %v1272_v2, %v1223_v20  ;;  %v3992_v8 = vld [vmem:[%s3364_s25 + $0x110] sm:$0xff] }
 0x11a   : > { %v1289_v62 = vadd.f32 %v1273_v55, %v1224_v12  ;;  %v1290_v49 = vadd.f32 %v1274_v22, %v1225_v13  ;;  %v1291_v50 = vadd.f32 %v1275_v23, %v1226_v14  ;;  %v1292_v7 = vadd.f32 %v1276_v32, %v1227_v18 }
 0x11b   : > { %v1293_v36 = vadd.f32 %v1277_v38, %v1228_v58  ;;  %v1294_v59 = vadd.f32 %v1278_v54, %v1229_v24  ;;  %v1295_v11 = vadd.f32 %v1279_v63, %v1230_v31  ;;  %v1296_v39 = vadd.f32 %v1280_v42, %v1231_v56 }
 0x11c   : > { %v1297_v16 = vadd.f32 %v1281_v61, %v1232_v15  ;;  %v1298_v43 = vadd.f32 %v1282_v51, %v1233_v17  ;;  %v1304_v44 = vmul.f32 %v3035_v46, %v1236_v0  ;;  %v1305_v41 = vmul.f32 %v3035_v46, %v1237_v1 }
 0x11d   : > { %v1306_v40 = vmul.f32 %v3035_v46, %v3938_v4  ;;  %v1307_v45 = vmul.f32 %v3035_v46, %v3941_v57  ;;  %v1308_v20 = vmul.f32 %v3035_v46, %v3944_v3  ;;  %v1309_v12 = vmul.f32 %v3035_v46, %v3947_v6 }
 0x11e   : > { %v1310_v13 = vmul.f32 %v3035_v46, %v3950_v33  ;;  %v1311_v14 = vmul.f32 %v3035_v46, %v3953_v9  ;;  %v1312_v18 = vmul.f32 %v3035_v46, %v3956_v10  ;;  %v1313_v0 = vmul.f32 %v3035_v46, %v3959_v19 }
 0x11f   : > { %v1314_v1 = vmul.f32 %v3035_v46, %v3962_v5  ;;  %v1315_v58 = vmul.f32 %v3035_v46, %v3965_v27  ;;  %v1316_v24 = vmul.f32 %v3035_v46, %v3968_v34  ;;  %v1317_v31 = vmul.f32 %v3035_v46, %v3971_v25 }
 0x120   : > { %v1318_v56 = vmul.f32 %v3035_v46, %v3989_v48  ;;  %v1319_v15 = vmul.f32 %v3035_v46, %v3992_v8  ;;  %v1320_v17 = vadd.f32 %v1304_v44, %v1283_v52  ;;  %v1321_v28 = vadd.f32 %v1305_v41, %v1284_v53  ;;  %v4014_v46 = vld [vmem:[%s3364_s25 + $0x128] sm:$0xff]  ;;  %v3037_v41 = vld [vmem:[%s5380_s2 + $0x18] ss:$0 sm:$0xff] }
 0x121   : > { %v1322_v26 = vadd.f32 %v1306_v40, %v1285_v60  ;;  %v1323_v29 = vadd.f32 %v1307_v45, %v1286_v35  ;;  %v1324_v30 = vadd.f32 %v1308_v20, %v1287_v37  ;;  %v1325_v2 = vadd.f32 %v1309_v12, %v1288_v47  ;;  %v4017_v60 = vld [vmem:[%s3364_s25 + $0x130] sm:$0xff] }
 0x122   : > { %v1326_v55 = vadd.f32 %v1310_v13, %v1289_v62  ;;  %v1327_v22 = vadd.f32 %v1311_v14, %v1290_v49  ;;  %v1328_v23 = vadd.f32 %v1312_v18, %v1291_v50  ;;  %v1329_v32 = vadd.f32 %v1313_v0, %v1292_v7 }
 0x123   : > { %v1330_v38 = vadd.f32 %v1314_v1, %v1293_v36  ;;  %v1331_v54 = vadd.f32 %v1315_v58, %v1294_v59  ;;  %v1332_v63 = vadd.f32 %v1316_v24, %v1295_v11  ;;  %v1333_v42 = vadd.f32 %v1317_v31, %v1296_v39 }
 0x124   : > { %v1334_v61 = vadd.f32 %v1318_v56, %v1297_v16  ;;  %v1335_v51 = vadd.f32 %v1319_v15, %v1298_v43  ;;  %v1341_v52 = vmul.f32 %v3036_v21, %v3938_v4  ;;  %v1342_v53 = vmul.f32 %v3036_v21, %v3941_v57 }
 0x125   : > { %v1343_v35 = vmul.f32 %v3036_v21, %v3944_v3  ;;  %v1344_v37 = vmul.f32 %v3036_v21, %v3947_v6  ;;  %v1345_v47 = vmul.f32 %v3036_v21, %v3950_v33  ;;  %v1346_v62 = vmul.f32 %v3036_v21, %v3953_v9 }
 0x126   : > { %v1347_v49 = vmul.f32 %v3036_v21, %v3956_v10  ;;  %v1348_v50 = vmul.f32 %v3036_v21, %v3959_v19  ;;  %v1349_v4 = vmul.f32 %v3036_v21, %v3962_v5  ;;  %v1350_v57 = vmul.f32 %v3036_v21, %v3965_v27 }
 0x127   : > { %v1351_v7 = vmul.f32 %v3036_v21, %v3968_v34  ;;  %v1352_v36 = vmul.f32 %v3036_v21, %v3971_v25  ;;  %v1353_v59 = vmul.f32 %v3036_v21, %v3989_v48  ;;  %v1354_v11 = vmul.f32 %v3036_v21, %v3992_v8 }
 0x128   : > { %v1355_v39 = vmul.f32 %v3036_v21, %v4014_v46  ;;  %v1356_v16 = vmul.f32 %v3036_v21, %v4017_v60  ;;  %v1357_v43 = vadd.f32 %v1341_v52, %v1320_v17  ;;  %v1358_v44 = vadd.f32 %v1342_v53, %v1321_v28  ;;  %v4039_v21 = vld [vmem:[%s3364_s25 + $0x148] sm:$0xff]  ;;  %v3038_v53 = vld [vmem:[%s5380_s2 + $0x1f] ss:$0 sm:$0xff] }
 0x129   : > { %v1359_v40 = vadd.f32 %v1343_v35, %v1322_v26  ;;  %v1360_v45 = vadd.f32 %v1344_v37, %v1323_v29  ;;  %v1361_v20 = vadd.f32 %v1345_v47, %v1324_v30  ;;  %v1362_v12 = vadd.f32 %v1346_v62, %v1325_v2  ;;  %v4042_v26 = vld [vmem:[%s3364_s25 + $0x150] sm:$0xff] }
 0x12a   : > { %v1363_v13 = vadd.f32 %v1347_v49, %v1326_v55  ;;  %v1364_v14 = vadd.f32 %v1348_v50, %v1327_v22  ;;  %v1365_v18 = vadd.f32 %v1349_v4, %v1328_v23  ;;  %v1366_v0 = vadd.f32 %v1350_v57, %v1329_v32 }
 0x12b   : > { %v1367_v1 = vadd.f32 %v1351_v7, %v1330_v38  ;;  %v1368_v58 = vadd.f32 %v1352_v36, %v1331_v54  ;;  %v1369_v24 = vadd.f32 %v1353_v59, %v1332_v63  ;;  %v1370_v31 = vadd.f32 %v1354_v11, %v1333_v42 }
 0x12c   : > { %v1371_v56 = vadd.f32 %v1355_v39, %v1334_v61  ;;  %v1372_v15 = vadd.f32 %v1356_v16, %v1335_v51  ;;  %v1378_v17 = vmul.f32 %v3037_v41, %v3944_v3  ;;  %v1379_v28 = vmul.f32 %v3037_v41, %v3947_v6 }
 0x12d   : > { %v1380_v29 = vmul.f32 %v3037_v41, %v3950_v33  ;;  %v1381_v30 = vmul.f32 %v3037_v41, %v3953_v9  ;;  %v1382_v2 = vmul.f32 %v3037_v41, %v3956_v10  ;;  %v1383_v55 = vmul.f32 %v3037_v41, %v3959_v19 }
 0x12e   : > { %v1384_v22 = vmul.f32 %v3037_v41, %v3962_v5  ;;  %v1385_v23 = vmul.f32 %v3037_v41, %v3965_v27  ;;  %v1386_v3 = vmul.f32 %v3037_v41, %v3968_v34  ;;  %v1387_v6 = vmul.f32 %v3037_v41, %v3971_v25 }
 0x12f   : > { %v1388_v32 = vmul.f32 %v3037_v41, %v3989_v48  ;;  %v1389_v38 = vmul.f32 %v3037_v41, %v3992_v8  ;;  %v1390_v54 = vmul.f32 %v3037_v41, %v4014_v46  ;;  %v1391_v63 = vmul.f32 %v3037_v41, %v4017_v60 }
 0x130   : > { %v1392_v42 = vmul.f32 %v3037_v41, %v4039_v21  ;;  %v1393_v61 = vmul.f32 %v3037_v41, %v4042_v26  ;;  %v1394_v51 = vadd.f32 %v1378_v17, %v1357_v43  ;;  %v1395_v52 = vadd.f32 %v1379_v28, %v1358_v44  ;;  %v4064_v41 = vld [vmem:[%s3364_s25 + $0x168] sm:$0xff]  ;;  %v3039_v28 = vld [vmem:[%s5380_s2 + $0x26] ss:$0 sm:$0xff] }
 0x131   : > { %v1396_v35 = vadd.f32 %v1380_v29, %v1359_v40  ;;  %v1397_v37 = vadd.f32 %v1381_v30, %v1360_v45  ;;  %v1398_v47 = vadd.f32 %v1382_v2, %v1361_v20  ;;  %v1399_v62 = vadd.f32 %v1383_v55, %v1362_v12  ;;  %v4067_v40 = vld [vmem:[%s3364_s25 + $0x170] sm:$0xff] }
 0x132   : > { %v1400_v49 = vadd.f32 %v1384_v22, %v1363_v13  ;;  %v1401_v50 = vadd.f32 %v1385_v23, %v1364_v14  ;;  %v1402_v4 = vadd.f32 %v1386_v3, %v1365_v18  ;;  %v1403_v57 = vadd.f32 %v1387_v6, %v1366_v0 }
 0x133   : > { %v1404_v7 = vadd.f32 %v1388_v32, %v1367_v1  ;;  %v1405_v36 = vadd.f32 %v1389_v38, %v1368_v58  ;;  %v1406_v59 = vadd.f32 %v1390_v54, %v1369_v24  ;;  %v1407_v11 = vadd.f32 %v1391_v63, %v1370_v31 }
 0x134   : > { %v1408_v39 = vadd.f32 %v1392_v42, %v1371_v56  ;;  %v1409_v16 = vadd.f32 %v1393_v61, %v1372_v15  ;;  %v1415_v43 = vmul.f32 %v3038_v53, %v3950_v33  ;;  %v1416_v44 = vmul.f32 %v3038_v53, %v3953_v9 }
 0x135   : > { %v1417_v45 = vmul.f32 %v3038_v53, %v3956_v10  ;;  %v1418_v20 = vmul.f32 %v3038_v53, %v3959_v19  ;;  %v1419_v12 = vmul.f32 %v3038_v53, %v3962_v5  ;;  %v1420_v13 = vmul.f32 %v3038_v53, %v3965_v27 }
 0x136   : > { %v1421_v14 = vmul.f32 %v3038_v53, %v3968_v34  ;;  %v1422_v18 = vmul.f32 %v3038_v53, %v3971_v25  ;;  %v1423_v33 = vmul.f32 %v3038_v53, %v3989_v48  ;;  %v1424_v9 = vmul.f32 %v3038_v53, %v3992_v8 }
 0x137   : > { %v1425_v0 = vmul.f32 %v3038_v53, %v4014_v46  ;;  %v1426_v1 = vmul.f32 %v3038_v53, %v4017_v60  ;;  %v1427_v58 = vmul.f32 %v3038_v53, %v4039_v21  ;;  %v1428_v24 = vmul.f32 %v3038_v53, %v4042_v26 }
 0x138   : > { %v1429_v31 = vmul.f32 %v3038_v53, %v4064_v41  ;;  %v1430_v56 = vmul.f32 %v3038_v53, %v4067_v40  ;;  %v1431_v15 = vadd.f32 %v1415_v43, %v1394_v51  ;;  %v1432_v17 = vadd.f32 %v1416_v44, %v1395_v52  ;;  %v1258_v53 = vld [vmem:[%s3364_s25 + $0x188] sm:$0xff] }
 0x139   : > { %v1433_v29 = vadd.f32 %v1417_v45, %v1396_v35  ;;  %v1434_v30 = vadd.f32 %v1418_v20, %v1397_v37  ;;  %v1435_v2 = vadd.f32 %v1419_v12, %v1398_v47  ;;  %v1436_v55 = vadd.f32 %v1420_v13, %v1399_v62  ;;  %v1259_v35 = vld [vmem:[%s3364_s25 + $0x190] sm:$0xff]  ;;  %v3040_v44 = vld [vmem:[%s5380_s2 + $0x2d] ss:$0 sm:$0xff] }
 0x13a   : > { %v1437_v22 = vadd.f32 %v1421_v14, %v1400_v49  ;;  %v1438_v23 = vadd.f32 %v1422_v18, %v1401_v50  ;;  %v1439_v3 = vadd.f32 %v1423_v33, %v1402_v4  ;;  %v1440_v6 = vadd.f32 %v1424_v9, %v1403_v57 }
 0x13b   : > { %v1441_v32 = vadd.f32 %v1425_v0, %v1404_v7  ;;  %v1442_v38 = vadd.f32 %v1426_v1, %v1405_v36  ;;  %v1443_v54 = vadd.f32 %v1427_v58, %v1406_v59  ;;  %v1444_v63 = vadd.f32 %v1428_v24, %v1407_v11 }
 0x13c   : > { %v1445_v42 = vadd.f32 %v1429_v31, %v1408_v39  ;;  %v1446_v61 = vadd.f32 %v1430_v56, %v1409_v16  ;;  %v1452_v51 = vmul.f32 %v3039_v28, %v3956_v10  ;;  %v1453_v52 = vmul.f32 %v3039_v28, %v3959_v19 }
 0x13d   : > { %v1454_v37 = vmul.f32 %v3039_v28, %v3962_v5  ;;  %v1455_v47 = vmul.f32 %v3039_v28, %v3965_v27  ;;  %v1456_v62 = vmul.f32 %v3039_v28, %v3968_v34  ;;  %v1457_v49 = vmul.f32 %v3039_v28, %v3971_v25 }
 0x13e   : > { %v1458_v50 = vmul.f32 %v3039_v28, %v3989_v48  ;;  %v1459_v4 = vmul.f32 %v3039_v28, %v3992_v8  ;;  %v1460_v57 = vmul.f32 %v3039_v28, %v4014_v46  ;;  %v1461_v10 = vmul.f32 %v3039_v28, %v4017_v60 }
 0x13f   : > { %v1462_v19 = vmul.f32 %v3039_v28, %v4039_v21  ;;  %v1463_v7 = vmul.f32 %v3039_v28, %v4042_v26  ;;  %v1464_v36 = vmul.f32 %v3039_v28, %v4064_v41  ;;  %v1465_v59 = vmul.f32 %v3039_v28, %v4067_v40 }
 0x140   : > { %v1466_v11 = vmul.f32 %v3039_v28, %v1258_v53  ;;  %v1467_v39 = vmul.f32 %v3039_v28, %v1259_v35  ;;  %v1468_v16 = vadd.f32 %v1452_v51, %v1431_v15  ;;  %v1469_v43 = vadd.f32 %v1453_v52, %v1432_v17  ;;  %v1260_v28 = vld [vmem:[%s3364_s25 + $0x1a8] sm:$0xff] }
 0x141   : > { %v1470_v45 = vadd.f32 %v1454_v37, %v1433_v29  ;;  %v1471_v20 = vadd.f32 %v1455_v47, %v1434_v30  ;;  %v1472_v12 = vadd.f32 %v1456_v62, %v1435_v2  ;;  %v1473_v13 = vadd.f32 %v1457_v49, %v1436_v55  ;;  %v1261_v29 = vld [vmem:[%s3364_s25 + $0x1b0] sm:$0xff] }
 0x142   : > { %v1474_v14 = vadd.f32 %v1458_v50, %v1437_v22  ;;  %v1475_v18 = vadd.f32 %v1459_v4, %v1438_v23  ;;  %v1476_v33 = vadd.f32 %v1460_v57, %v1439_v3  ;;  %v1477_v9 = vadd.f32 %v1461_v10, %v1440_v6  ;;  %v4127_v51 = vld [vmem:[%s3364_s25 + $0x49] sm:$0xff]  ;;  %v4130_v47 = vld [vmem:[%s3364_s25 + $0x51] sm:$0xff] }
 0x143   : > { %v1478_v0 = vadd.f32 %v1462_v19, %v1441_v32  ;;  %v1479_v1 = vadd.f32 %v1463_v7, %v1442_v38  ;;  %v1480_v58 = vadd.f32 %v1464_v36, %v1443_v54  ;;  %v1481_v24 = vadd.f32 %v1465_v59, %v1444_v63  ;;  %v4133_v62 = vld [vmem:[%s3364_s25 + $0x69] sm:$0xff]  ;;  %v4136_v49 = vld [vmem:[%s3364_s25 + $0x71] sm:$0xff] }
 0x144   : > { %v1482_v31 = vadd.f32 %v1466_v11, %v1445_v42  ;;  %v1483_v56 = vadd.f32 %v1467_v39, %v1446_v61  ;;  %v1489_v15 = vmul.f32 %v3040_v44, %v3962_v5  ;;  %v1490_v17 = vmul.f32 %v3040_v44, %v3965_v27  ;;  %v1523_v42 = vld [vmem:[%s3364_s25 + $0x29] sm:$0xff]  ;;  %v1524_v61 = vld [vmem:[%s3364_s25 + $0x31] sm:$0xff] }
 0x145   : > { %v1491_v30 = vmul.f32 %v3040_v44, %v3968_v34  ;;  %v1492_v2 = vmul.f32 %v3040_v44, %v3971_v25  ;;  %v1493_v55 = vmul.f32 %v3040_v44, %v3989_v48  ;;  %v1494_v22 = vmul.f32 %v3040_v44, %v3992_v8  ;;  %v4139_v19 = vld [vmem:[%s3364_s25 + $0x89] sm:$0xff]  ;;  %v4142_v7 = vld [vmem:[%s3364_s25 + $0x91] sm:$0xff] }
 0x146   : > { %v1495_v23 = vmul.f32 %v3040_v44, %v4014_v46  ;;  %v1496_v3 = vmul.f32 %v3040_v44, %v4017_v60  ;;  %v1497_v5 = vmul.f32 %v3040_v44, %v4039_v21  ;;  %v1498_v27 = vmul.f32 %v3040_v44, %v4042_v26  ;;  %v1521_v60 = vld [vmem:[%s3364_s25 + $0x9] sm:$0xff]  ;;  %v1522_v21 = vld [vmem:[%s3364_s25 + $0x11] sm:$0xff]  ;;  %v3041_v26 = vld [vmem:[%s5380_s2 + $0x4] ss:$0 sm:$0xff] }
 0x147   : > { %v1499_v6 = vmul.f32 %v3040_v44, %v4064_v41  ;;  %v1500_v34 = vmul.f32 %v3040_v44, %v4067_v40  ;;  %v1501_v25 = vmul.f32 %v3040_v44, %v1258_v53  ;;  %v1502_v32 = vmul.f32 %v3040_v44, %v1259_v35  ;;  %v4145_v36 = vld [vmem:[%s3364_s25 + $0xa9] sm:$0xff]  ;;  %v4148_v39 = vld [vmem:[%s3364_s25 + $0xb1] sm:$0xff] }
 0x148   : > { %v1503_v48 = vmul.f32 %v3040_v44, %v1260_v28  ;;  %v1504_v38 = vmul.f32 %v3040_v44, %v1261_v29  ;;  %v1505_v8 = vadd.f32 %v1489_v15, %v1468_v16  ;;  %v1506_v46 = vadd.f32 %v1490_v17, %v1469_v43  ;;  %v4151_v16 = vld [vmem:[%s3364_s25 + $0xc9] sm:$0xff]  ;;  %v4154_v43 = vld [vmem:[%s3364_s25 + $0xd1] sm:$0xff] }
 0x149   : > { %v1507_v41 = vadd.f32 %v1491_v30, %v1470_v45  ;;  %v1508_v54 = vadd.f32 %v1492_v2, %v1471_v20  ;;  %v1509_v63 = vadd.f32 %v1493_v55, %v1472_v12  ;;  %v1510_v40 = vadd.f32 %v1494_v22, %v1473_v13  ;;  %v4157_v20 = vld [vmem:[%s3364_s25 + $0xe9] sm:$0xff]  ;;  %v4160_v12 = vld [vmem:[%s3364_s25 + $0xf1] sm:$0xff] }
 0x14a   : > { %v1511_v52 = vadd.f32 %v1495_v23, %v1474_v14  ;;  %v1512_v53 = vadd.f32 %v1496_v3, %v1475_v18  ;;  %v1513_v35 = vadd.f32 %v1497_v5, %v1476_v33  ;;  %v1514_v37 = vadd.f32 %v1498_v27, %v1477_v9  ;;  %v3042_v2 = vld [vmem:[%s5380_s2 + $0xb] ss:$0 sm:$0xff] }
 0x14b   : > { %v1515_v50 = vadd.f32 %v1499_v6, %v1478_v0  ;;  %v1516_v4 = vadd.f32 %v1500_v34, %v1479_v1  ;;  %v1517_v57 = vadd.f32 %v1501_v25, %v1480_v58  ;;  %v1518_v10 = vadd.f32 %v1502_v32, %v1481_v24 }
 0x14c   : > { %v1519_v59 = vadd.f32 %v1503_v48, %v1482_v31  ;;  %v1520_v11 = vadd.f32 %v1504_v38, %v1483_v56  ;;  %v1554_v44 = vmul.f32 %v3041_v26, %v1521_v60  ;;  %v1555_v45 = vmul.f32 %v3041_v26, %v1522_v21 }
 0x14d   : > { %v1556_v13 = vmul.f32 %v3041_v26, %v1523_v42  ;;  %v1557_v14 = vmul.f32 %v3041_v26, %v1524_v61  ;;  %v1558_v18 = vmul.f32 %v3041_v26, %v4127_v51  ;;  %v1559_v33 = vmul.f32 %v3041_v26, %v4130_v47 }
 0x14e   : > { %v1560_v9 = vmul.f32 %v3041_v26, %v4133_v62  ;;  %v1561_v0 = vmul.f32 %v3041_v26, %v4136_v49  ;;  %v1562_v1 = vmul.f32 %v3041_v26, %v4139_v19  ;;  %v1563_v58 = vmul.f32 %v3041_v26, %v4142_v7 }
 0x14f   : > { %v1564_v24 = vmul.f32 %v3041_v26, %v4145_v36  ;;  %v1565_v31 = vmul.f32 %v3041_v26, %v4148_v39  ;;  %v1566_v56 = vmul.f32 %v3041_v26, %v4151_v16  ;;  %v1567_v15 = vmul.f32 %v3041_v26, %v4154_v43 }
 0x150   : > { %v1568_v17 = vmul.f32 %v3041_v26, %v4157_v20  ;;  %v1569_v28 = vmul.f32 %v3041_v26, %v4160_v12  ;;  %v1570_v29 = vadd.f32 %v1554_v44, %v1505_v8  ;;  %v1571_v30 = vadd.f32 %v1555_v45, %v1506_v46  ;;  %v4178_v26 = vld [vmem:[%s3364_s25 + $0x109] sm:$0xff]  ;;  %v3043_v45 = vld [vmem:[%s5380_s2 + $0x12] ss:$0 sm:$0xff] }
 0x151   : > { %v1572_v55 = vadd.f32 %v1556_v13, %v1507_v41  ;;  %v1573_v22 = vadd.f32 %v1557_v14, %v1508_v54  ;;  %v1574_v23 = vadd.f32 %v1558_v18, %v1509_v63  ;;  %v1575_v3 = vadd.f32 %v1559_v33, %v1510_v40  ;;  %v4181_v41 = vld [vmem:[%s3364_s25 + $0x111] sm:$0xff] }
 0x152   : > { %v1576_v5 = vadd.f32 %v1560_v9, %v1511_v52  ;;  %v1577_v27 = vadd.f32 %v1561_v0, %v1512_v53  ;;  %v1578_v6 = vadd.f32 %v1562_v1, %v1513_v35  ;;  %v1579_v34 = vadd.f32 %v1563_v58, %v1514_v37 }
 0x153   : > { %v1580_v25 = vadd.f32 %v1564_v24, %v1515_v50  ;;  %v1581_v32 = vadd.f32 %v1565_v31, %v1516_v4  ;;  %v1582_v48 = vadd.f32 %v1566_v56, %v1517_v57  ;;  %v1583_v38 = vadd.f32 %v1567_v15, %v1518_v10 }
 0x154   : > { %v1584_v8 = vadd.f32 %v1568_v17, %v1519_v59  ;;  %v1585_v46 = vadd.f32 %v1569_v28, %v1520_v11  ;;  %v1591_v60 = vmul.f32 %v3042_v2, %v1523_v42  ;;  %v1592_v21 = vmul.f32 %v3042_v2, %v1524_v61 }
 0x155   : > { %v1593_v54 = vmul.f32 %v3042_v2, %v4127_v51  ;;  %v1594_v63 = vmul.f32 %v3042_v2, %v4130_v47  ;;  %v1595_v40 = vmul.f32 %v3042_v2, %v4133_v62  ;;  %v1596_v52 = vmul.f32 %v3042_v2, %v4136_v49 }
 0x156   : > { %v1597_v53 = vmul.f32 %v3042_v2, %v4139_v19  ;;  %v1598_v35 = vmul.f32 %v3042_v2, %v4142_v7  ;;  %v1599_v37 = vmul.f32 %v3042_v2, %v4145_v36  ;;  %v1600_v42 = vmul.f32 %v3042_v2, %v4148_v39 }
 0x157   : > { %v1601_v61 = vmul.f32 %v3042_v2, %v4151_v16  ;;  %v1602_v50 = vmul.f32 %v3042_v2, %v4154_v43  ;;  %v1603_v4 = vmul.f32 %v3042_v2, %v4157_v20  ;;  %v1604_v57 = vmul.f32 %v3042_v2, %v4160_v12 }
 0x158   : > { %v1605_v10 = vmul.f32 %v3042_v2, %v4178_v26  ;;  %v1606_v59 = vmul.f32 %v3042_v2, %v4181_v41  ;;  %v1607_v11 = vadd.f32 %v1591_v60, %v1570_v29  ;;  %v1608_v44 = vadd.f32 %v1592_v21, %v1571_v30  ;;  %v4203_v2 = vld [vmem:[%s3364_s25 + $0x129] sm:$0xff]  ;;  %v3044_v21 = vld [vmem:[%s5380_s2 + $0x19] ss:$0 sm:$0xff] }
 0x159   : > { %v1609_v13 = vadd.f32 %v1593_v54, %v1572_v55  ;;  %v1610_v14 = vadd.f32 %v1594_v63, %v1573_v22  ;;  %v1611_v18 = vadd.f32 %v1595_v40, %v1574_v23  ;;  %v1612_v33 = vadd.f32 %v1596_v52, %v1575_v3  ;;  %v4206_v55 = vld [vmem:[%s3364_s25 + $0x131] sm:$0xff] }
 0x15a   : > { %v1613_v9 = vadd.f32 %v1597_v53, %v1576_v5  ;;  %v1614_v0 = vadd.f32 %v1598_v35, %v1577_v27  ;;  %v1615_v1 = vadd.f32 %v1599_v37, %v1578_v6  ;;  %v1616_v58 = vadd.f32 %v1600_v42, %v1579_v34 }
 0x15b   : > { %v1617_v24 = vadd.f32 %v1601_v61, %v1580_v25  ;;  %v1618_v31 = vadd.f32 %v1602_v50, %v1581_v32  ;;  %v1619_v56 = vadd.f32 %v1603_v4, %v1582_v48  ;;  %v1620_v15 = vadd.f32 %v1604_v57, %v1583_v38 }
 0x15c   : > { %v1621_v17 = vadd.f32 %v1605_v10, %v1584_v8  ;;  %v1622_v28 = vadd.f32 %v1606_v59, %v1585_v46  ;;  %v1628_v29 = vmul.f32 %v3043_v45, %v4127_v51  ;;  %v1629_v30 = vmul.f32 %v3043_v45, %v4130_v47 }
 0x15d   : > { %v1630_v22 = vmul.f32 %v3043_v45, %v4133_v62  ;;  %v1631_v23 = vmul.f32 %v3043_v45, %v4136_v49  ;;  %v1632_v3 = vmul.f32 %v3043_v45, %v4139_v19  ;;  %v1633_v5 = vmul.f32 %v3043_v45, %v4142_v7 }
 0x15e   : > { %v1634_v27 = vmul.f32 %v3043_v45, %v4145_v36  ;;  %v1635_v6 = vmul.f32 %v3043_v45, %v4148_v39  ;;  %v1636_v51 = vmul.f32 %v3043_v45, %v4151_v16  ;;  %v1637_v47 = vmul.f32 %v3043_v45, %v4154_v43 }
 0x15f   : > { %v1638_v34 = vmul.f32 %v3043_v45, %v4157_v20  ;;  %v1639_v25 = vmul.f32 %v3043_v45, %v4160_v12  ;;  %v1640_v32 = vmul.f32 %v3043_v45, %v4178_v26  ;;  %v1641_v48 = vmul.f32 %v3043_v45, %v4181_v41 }
 0x160   : > { %v1642_v38 = vmul.f32 %v3043_v45, %v4203_v2  ;;  %v1643_v8 = vmul.f32 %v3043_v45, %v4206_v55  ;;  %v1644_v46 = vadd.f32 %v1628_v29, %v1607_v11  ;;  %v1645_v60 = vadd.f32 %v1629_v30, %v1608_v44  ;;  %v4228_v45 = vld [vmem:[%s3364_s25 + $0x149] sm:$0xff]  ;;  %v3045_v30 = vld [vmem:[%s5380_s2 + $0x20] ss:$0 sm:$0xff] }
 0x161   : > { %v1646_v54 = vadd.f32 %v1630_v22, %v1609_v13  ;;  %v1647_v63 = vadd.f32 %v1631_v23, %v1610_v14  ;;  %v1648_v40 = vadd.f32 %v1632_v3, %v1611_v18  ;;  %v1649_v52 = vadd.f32 %v1633_v5, %v1612_v33  ;;  %v4231_v13 = vld [vmem:[%s3364_s25 + $0x151] sm:$0xff] }
 0x162   : > { %v1650_v53 = vadd.f32 %v1634_v27, %v1613_v9  ;;  %v1651_v35 = vadd.f32 %v1635_v6, %v1614_v0  ;;  %v1652_v37 = vadd.f32 %v1636_v51, %v1615_v1  ;;  %v1653_v42 = vadd.f32 %v1637_v47, %v1616_v58 }
 0x163   : > { %v1654_v61 = vadd.f32 %v1638_v34, %v1617_v24  ;;  %v1655_v50 = vadd.f32 %v1639_v25, %v1618_v31  ;;  %v1656_v4 = vadd.f32 %v1640_v32, %v1619_v56  ;;  %v1657_v57 = vadd.f32 %v1641_v48, %v1620_v15 }
 0x164   : > { %v1658_v10 = vadd.f32 %v1642_v38, %v1621_v17  ;;  %v1659_v59 = vadd.f32 %v1643_v8, %v1622_v28  ;;  %v1665_v11 = vmul.f32 %v3044_v21, %v4133_v62  ;;  %v1666_v44 = vmul.f32 %v3044_v21, %v4136_v49 }
 0x165   : > { %v1667_v14 = vmul.f32 %v3044_v21, %v4139_v19  ;;  %v1668_v18 = vmul.f32 %v3044_v21, %v4142_v7  ;;  %v1669_v33 = vmul.f32 %v3044_v21, %v4145_v36  ;;  %v1670_v9 = vmul.f32 %v3044_v21, %v4148_v39 }
 0x166   : > { %v1671_v0 = vmul.f32 %v3044_v21, %v4151_v16  ;;  %v1672_v1 = vmul.f32 %v3044_v21, %v4154_v43  ;;  %v1673_v62 = vmul.f32 %v3044_v21, %v4157_v20  ;;  %v1674_v49 = vmul.f32 %v3044_v21, %v4160_v12 }
 0x167   : > { %v1675_v58 = vmul.f32 %v3044_v21, %v4178_v26  ;;  %v1676_v24 = vmul.f32 %v3044_v21, %v4181_v41  ;;  %v1677_v31 = vmul.f32 %v3044_v21, %v4203_v2  ;;  %v1678_v56 = vmul.f32 %v3044_v21, %v4206_v55 }
 0x168   : > { %v1679_v15 = vmul.f32 %v3044_v21, %v4228_v45  ;;  %v1680_v17 = vmul.f32 %v3044_v21, %v4231_v13  ;;  %v1681_v28 = vadd.f32 %v1665_v11, %v1644_v46  ;;  %v1682_v29 = vadd.f32 %v1666_v44, %v1645_v60  ;;  %v4253_v21 = vld [vmem:[%s3364_s25 + $0x169] sm:$0xff]  ;;  %v3046_v44 = vld [vmem:[%s5380_s2 + $0x27] ss:$0 sm:$0xff] }
 0x169   : > { %v1683_v22 = vadd.f32 %v1667_v14, %v1646_v54  ;;  %v1684_v23 = vadd.f32 %v1668_v18, %v1647_v63  ;;  %v1685_v3 = vadd.f32 %v1669_v33, %v1648_v40  ;;  %v1686_v5 = vadd.f32 %v1670_v9, %v1649_v52  ;;  %v4256_v54 = vld [vmem:[%s3364_s25 + $0x171] sm:$0xff] }
 0x16a   : > { %v1687_v27 = vadd.f32 %v1671_v0, %v1650_v53  ;;  %v1688_v6 = vadd.f32 %v1672_v1, %v1651_v35  ;;  %v1689_v51 = vadd.f32 %v1673_v62, %v1652_v37  ;;  %v1690_v47 = vadd.f32 %v1674_v49, %v1653_v42 }
 0x16b   : > { %v1691_v34 = vadd.f32 %v1675_v58, %v1654_v61  ;;  %v1692_v25 = vadd.f32 %v1676_v24, %v1655_v50  ;;  %v1693_v32 = vadd.f32 %v1677_v31, %v1656_v4  ;;  %v1694_v48 = vadd.f32 %v1678_v56, %v1657_v57 }
 0x16c   : > { %v1695_v38 = vadd.f32 %v1679_v15, %v1658_v10  ;;  %v1696_v8 = vadd.f32 %v1680_v17, %v1659_v59  ;;  %v1702_v46 = vmul.f32 %v3045_v30, %v4139_v19  ;;  %v1703_v60 = vmul.f32 %v3045_v30, %v4142_v7 }
 0x16d   : > { %v1704_v63 = vmul.f32 %v3045_v30, %v4145_v36  ;;  %v1705_v40 = vmul.f32 %v3045_v30, %v4148_v39  ;;  %v1706_v52 = vmul.f32 %v3045_v30, %v4151_v16  ;;  %v1707_v53 = vmul.f32 %v3045_v30, %v4154_v43 }
 0x16e   : > { %v1708_v35 = vmul.f32 %v3045_v30, %v4157_v20  ;;  %v1709_v37 = vmul.f32 %v3045_v30, %v4160_v12  ;;  %v1710_v19 = vmul.f32 %v3045_v30, %v4178_v26  ;;  %v1711_v7 = vmul.f32 %v3045_v30, %v4181_v41 }
 0x16f   : > { %v1712_v42 = vmul.f32 %v3045_v30, %v4203_v2  ;;  %v1713_v61 = vmul.f32 %v3045_v30, %v4206_v55  ;;  %v1714_v50 = vmul.f32 %v3045_v30, %v4228_v45  ;;  %v1715_v4 = vmul.f32 %v3045_v30, %v4231_v13 }
 0x170   : > { %v1716_v57 = vmul.f32 %v3045_v30, %v4253_v21  ;;  %v1717_v10 = vmul.f32 %v3045_v30, %v4256_v54  ;;  %v1718_v59 = vadd.f32 %v1702_v46, %v1681_v28  ;;  %v1719_v11 = vadd.f32 %v1703_v60, %v1682_v29  ;;  %v1545_v30 = vld [vmem:[%s3364_s25 + $0x189] sm:$0xff] }
 0x171   : > { %v1720_v14 = vadd.f32 %v1704_v63, %v1683_v22  ;;  %v1721_v18 = vadd.f32 %v1705_v40, %v1684_v23  ;;  %v1722_v33 = vadd.f32 %v1706_v52, %v1685_v3  ;;  %v1723_v9 = vadd.f32 %v1707_v53, %v1686_v5  ;;  %v1546_v22 = vld [vmem:[%s3364_s25 + $0x191] sm:$0xff]  ;;  %v3047_v60 = vld [vmem:[%s5380_s2 + $0x2e] ss:$0 sm:$0xff] }
 0x172   : > { %v1724_v0 = vadd.f32 %v1708_v35, %v1687_v27  ;;  %v1725_v1 = vadd.f32 %v1709_v37, %v1688_v6  ;;  %v1726_v62 = vadd.f32 %v1710_v19, %v1689_v51  ;;  %v1727_v49 = vadd.f32 %v1711_v7, %v1690_v47 }
 0x173   : > { %v1728_v58 = vadd.f32 %v1712_v42, %v1691_v34  ;;  %v1729_v24 = vadd.f32 %v1713_v61, %v1692_v25  ;;  %v1730_v31 = vadd.f32 %v1714_v50, %v1693_v32  ;;  %v1731_v56 = vadd.f32 %v1715_v4, %v1694_v48 }
 0x174   : > { %v1732_v15 = vadd.f32 %v1716_v57, %v1695_v38  ;;  %v1733_v17 = vadd.f32 %v1717_v10, %v1696_v8  ;;  %v1739_v28 = vmul.f32 %v3046_v44, %v4145_v36  ;;  %v1740_v29 = vmul.f32 %v3046_v44, %v4148_v39 }
 0x175   : > { %v1741_v23 = vmul.f32 %v3046_v44, %v4151_v16  ;;  %v1742_v3 = vmul.f32 %v3046_v44, %v4154_v43  ;;  %v1743_v5 = vmul.f32 %v3046_v44, %v4157_v20  ;;  %v1744_v27 = vmul.f32 %v3046_v44, %v4160_v12 }
 0x176   : > { %v1745_v6 = vmul.f32 %v3046_v44, %v4178_v26  ;;  %v1746_v51 = vmul.f32 %v3046_v44, %v4181_v41  ;;  %v1747_v47 = vmul.f32 %v3046_v44, %v4203_v2  ;;  %v1748_v36 = vmul.f32 %v3046_v44, %v4206_v55 }
 0x177   : > { %v1749_v39 = vmul.f32 %v3046_v44, %v4228_v45  ;;  %v1750_v34 = vmul.f32 %v3046_v44, %v4231_v13  ;;  %v1751_v25 = vmul.f32 %v3046_v44, %v4253_v21  ;;  %v1752_v32 = vmul.f32 %v3046_v44, %v4256_v54 }
 0x178   : > { %v1753_v48 = vmul.f32 %v3046_v44, %v1545_v30  ;;  %v1754_v38 = vmul.f32 %v3046_v44, %v1546_v22  ;;  %v1755_v8 = vadd.f32 %v1739_v28, %v1718_v59  ;;  %v1756_v46 = vadd.f32 %v1740_v29, %v1719_v11  ;;  %v1547_v44 = vld [vmem:[%s3364_s25 + $0x1a9] sm:$0xff] }
 0x179   : > { %v1757_v63 = vadd.f32 %v1741_v23, %v1720_v14  ;;  %v1758_v40 = vadd.f32 %v1742_v3, %v1721_v18  ;;  %v1759_v52 = vadd.f32 %v1743_v5, %v1722_v33  ;;  %v1760_v53 = vadd.f32 %v1744_v27, %v1723_v9  ;;  %v1548_v14 = vld [vmem:[%s3364_s25 + $0x1b1] sm:$0xff] }
 0x17a   : > { %v1761_v35 = vadd.f32 %v1745_v6, %v1724_v0  ;;  %v1762_v37 = vadd.f32 %v1746_v51, %v1725_v1  ;;  %v1763_v19 = vadd.f32 %v1747_v47, %v1726_v62  ;;  %v1764_v7 = vadd.f32 %v1748_v36, %v1727_v49  ;;  %v4316_v28 = vld [vmem:[%s3364_s25 + $0x4a] sm:$0xff]  ;;  %v4319_v3 = vld [vmem:[%s3364_s25 + $0x52] sm:$0xff] }
 0x17b   : > { %v1765_v42 = vadd.f32 %v1749_v39, %v1728_v58  ;;  %v1766_v61 = vadd.f32 %v1750_v34, %v1729_v24  ;;  %v1767_v50 = vadd.f32 %v1751_v25, %v1730_v31  ;;  %v1768_v4 = vadd.f32 %v1752_v32, %v1731_v56  ;;  %v4322_v5 = vld [vmem:[%s3364_s25 + $0x6a] sm:$0xff]  ;;  %v4325_v27 = vld [vmem:[%s3364_s25 + $0x72] sm:$0xff] }
 0x17c   : > { %v1769_v57 = vadd.f32 %v1753_v48, %v1732_v15  ;;  %v1770_v10 = vadd.f32 %v1754_v38, %v1733_v17  ;;  %v1776_v59 = vmul.f32 %v3047_v60, %v4151_v16  ;;  %v1777_v11 = vmul.f32 %v3047_v60, %v4154_v43  ;;  %v1810_v15 = vld [vmem:[%s3364_s25 + $0x2a] sm:$0xff]  ;;  %v1811_v17 = vld [vmem:[%s3364_s25 + $0x32] sm:$0xff] }
 0x17d   : > { %v1778_v18 = vmul.f32 %v3047_v60, %v4157_v20  ;;  %v1779_v33 = vmul.f32 %v3047_v60, %v4160_v12  ;;  %v1780_v9 = vmul.f32 %v3047_v60, %v4178_v26  ;;  %v1781_v0 = vmul.f32 %v3047_v60, %v4181_v41  ;;  %v4328_v39 = vld [vmem:[%s3364_s25 + $0x8a] sm:$0xff]  ;;  %v4331_v34 = vld [vmem:[%s3364_s25 + $0x92] sm:$0xff] }
 0x17e   : > { %v1782_v1 = vmul.f32 %v3047_v60, %v4203_v2  ;;  %v1783_v62 = vmul.f32 %v3047_v60, %v4206_v55  ;;  %v1784_v16 = vmul.f32 %v3047_v60, %v4228_v45  ;;  %v1785_v43 = vmul.f32 %v3047_v60, %v4231_v13  ;;  %v1808_v55 = vld [vmem:[%s3364_s25 + $0xa] sm:$0xff]  ;;  %v1809_v45 = vld [vmem:[%s3364_s25 + $0x12] sm:$0xff]  ;;  %v3048_v13 = vld [vmem:[%s5380_s2 + $0x5] ss:$0 sm:$0xff] }
 0x17f   : > { %v1786_v49 = vmul.f32 %v3047_v60, %v4253_v21  ;;  %v1787_v20 = vmul.f32 %v3047_v60, %v4256_v54  ;;  %v1788_v12 = vmul.f32 %v3047_v60, %v1545_v30  ;;  %v1789_v58 = vmul.f32 %v3047_v60, %v1546_v22  ;;  %v4334_v25 = vld [vmem:[%s3364_s25 + $0xaa] sm:$0xff]  ;;  %v4337_v38 = vld [vmem:[%s3364_s25 + $0xb2] sm:$0xff] }
 0x180   : > { %v1790_v26 = vmul.f32 %v3047_v60, %v1547_v44  ;;  %v1791_v24 = vmul.f32 %v3047_v60, %v1548_v14  ;;  %v1792_v41 = vadd.f32 %v1776_v59, %v1755_v8  ;;  %v1793_v2 = vadd.f32 %v1777_v11, %v1756_v46  ;;  %v4340_v8 = vld [vmem:[%s3364_s25 + $0xca] sm:$0xff]  ;;  %v4343_v46 = vld [vmem:[%s3364_s25 + $0xd2] sm:$0xff] }
 0x181   : > { %v1794_v21 = vadd.f32 %v1778_v18, %v1757_v63  ;;  %v1795_v31 = vadd.f32 %v1779_v33, %v1758_v40  ;;  %v1796_v56 = vadd.f32 %v1780_v9, %v1759_v52  ;;  %v1797_v54 = vadd.f32 %v1781_v0, %v1760_v53  ;;  %v4346_v40 = vld [vmem:[%s3364_s25 + $0xea] sm:$0xff]  ;;  %v4349_v52 = vld [vmem:[%s3364_s25 + $0xf2] sm:$0xff] }
 0x182   : > { %v1798_v29 = vadd.f32 %v1782_v1, %v1761_v35  ;;  %v1799_v30 = vadd.f32 %v1783_v62, %v1762_v37  ;;  %v1800_v22 = vadd.f32 %v1784_v16, %v1763_v19  ;;  %v1801_v23 = vadd.f32 %v1785_v43, %v1764_v7  ;;  %v3049_v33 = vld [vmem:[%s5380_s2 + $0xc] ss:$0 sm:$0xff] }
 0x183   : > { %v1802_v6 = vadd.f32 %v1786_v49, %v1765_v42  ;;  %v1803_v51 = vadd.f32 %v1787_v20, %v1766_v61  ;;  %v1804_v47 = vadd.f32 %v1788_v12, %v1767_v50  ;;  %v1805_v36 = vadd.f32 %v1789_v58, %v1768_v4 }
 0x184   : > { %v1806_v32 = vadd.f32 %v1790_v26, %v1769_v57  ;;  %v1807_v48 = vadd.f32 %v1791_v24, %v1770_v10  ;;  %v1841_v60 = vmul.f32 %v3048_v13, %v1808_v55  ;;  %v1842_v63 = vmul.f32 %v3048_v13, %v1809_v45 }
 0x185   : > { %v1843_v53 = vmul.f32 %v3048_v13, %v1810_v15  ;;  %v1844_v35 = vmul.f32 %v3048_v13, %v1811_v17  ;;  %v1845_v37 = vmul.f32 %v3048_v13, %v4316_v28  ;;  %v1846_v19 = vmul.f32 %v3048_v13, %v4319_v3 }
 0x186   : > { %v1847_v7 = vmul.f32 %v3048_v13, %v4322_v5  ;;  %v1848_v42 = vmul.f32 %v3048_v13, %v4325_v27  ;;  %v1849_v61 = vmul.f32 %v3048_v13, %v4328_v39  ;;  %v1850_v50 = vmul.f32 %v3048_v13, %v4331_v34 }
 0x187   : > { %v1851_v4 = vmul.f32 %v3048_v13, %v4334_v25  ;;  %v1852_v57 = vmul.f32 %v3048_v13, %v4337_v38  ;;  %v1853_v10 = vmul.f32 %v3048_v13, %v4340_v8  ;;  %v1854_v59 = vmul.f32 %v3048_v13, %v4343_v46 }
 0x188   : > { %v1855_v11 = vmul.f32 %v3048_v13, %v4346_v40  ;;  %v1856_v44 = vmul.f32 %v3048_v13, %v4349_v52  ;;  %v1857_v14 = vadd.f32 %v1841_v60, %v1792_v41  ;;  %v1858_v18 = vadd.f32 %v1842_v63, %v1793_v2  ;;  %v4367_v13 = vld [vmem:[%s3364_s25 + $0x10a] sm:$0xff]  ;;  %v3050_v63 = vld [vmem:[%s5380_s2 + $0x13] ss:$0 sm:$0xff] }
 0x189   : > { %v1859_v9 = vadd.f32 %v1843_v53, %v1794_v21  ;;  %v1860_v0 = vadd.f32 %v1844_v35, %v1795_v31  ;;  %v1861_v1 = vadd.f32 %v1845_v37, %v1796_v56  ;;  %v1862_v62 = vadd.f32 %v1846_v19, %v1797_v54  ;;  %v4370_v21 = vld [vmem:[%s3364_s25 + $0x112] sm:$0xff] }
 0x18a   : > { %v1863_v16 = vadd.f32 %v1847_v7, %v1798_v29  ;;  %v1864_v43 = vadd.f32 %v1848_v42, %v1799_v30  ;;  %v1865_v49 = vadd.f32 %v1849_v61, %v1800_v22  ;;  %v1866_v20 = vadd.f32 %v1850_v50, %v1801_v23 }
 0x18b   : > { %v1867_v12 = vadd.f32 %v1851_v4, %v1802_v6  ;;  %v1868_v58 = vadd.f32 %v1852_v57, %v1803_v51  ;;  %v1869_v26 = vadd.f32 %v1853_v10, %v1804_v47  ;;  %v1870_v24 = vadd.f32 %v1854_v59, %v1805_v36 }
 0x18c   : > { %v1871_v41 = vadd.f32 %v1855_v11, %v1806_v32  ;;  %v1872_v2 = vadd.f32 %v1856_v44, %v1807_v48  ;;  %v1878_v55 = vmul.f32 %v3049_v33, %v1810_v15  ;;  %v1879_v45 = vmul.f32 %v3049_v33, %v1811_v17 }
 0x18d   : > { %v1880_v31 = vmul.f32 %v3049_v33, %v4316_v28  ;;  %v1881_v56 = vmul.f32 %v3049_v33, %v4319_v3  ;;  %v1882_v54 = vmul.f32 %v3049_v33, %v4322_v5  ;;  %v1883_v29 = vmul.f32 %v3049_v33, %v4325_v27 }
 0x18e   : > { %v1884_v30 = vmul.f32 %v3049_v33, %v4328_v39  ;;  %v1885_v22 = vmul.f32 %v3049_v33, %v4331_v34  ;;  %v1886_v23 = vmul.f32 %v3049_v33, %v4334_v25  ;;  %v1887_v15 = vmul.f32 %v3049_v33, %v4337_v38 }
 0x18f   : > { %v1888_v17 = vmul.f32 %v3049_v33, %v4340_v8  ;;  %v1889_v6 = vmul.f32 %v3049_v33, %v4343_v46  ;;  %v1890_v51 = vmul.f32 %v3049_v33, %v4346_v40  ;;  %v1891_v47 = vmul.f32 %v3049_v33, %v4349_v52 }
 0x190   : > { %v1892_v36 = vmul.f32 %v3049_v33, %v4367_v13  ;;  %v1893_v32 = vmul.f32 %v3049_v33, %v4370_v21  ;;  %v1894_v48 = vadd.f32 %v1878_v55, %v1857_v14  ;;  %v1895_v60 = vadd.f32 %v1879_v45, %v1858_v18  ;;  %v4392_v33 = vld [vmem:[%s3364_s25 + $0x12a] sm:$0xff]  ;;  %v3051_v45 = vld [vmem:[%s5380_s2 + $0x1a] ss:$0 sm:$0xff] }
 0x191   : > { %v1896_v53 = vadd.f32 %v1880_v31, %v1859_v9  ;;  %v1897_v35 = vadd.f32 %v1881_v56, %v1860_v0  ;;  %v1898_v37 = vadd.f32 %v1882_v54, %v1861_v1  ;;  %v1899_v19 = vadd.f32 %v1883_v29, %v1862_v62  ;;  %v4395_v9 = vld [vmem:[%s3364_s25 + $0x132] sm:$0xff] }
 0x192   : > { %v1900_v7 = vadd.f32 %v1884_v30, %v1863_v16  ;;  %v1901_v42 = vadd.f32 %v1885_v22, %v1864_v43  ;;  %v1902_v61 = vadd.f32 %v1886_v23, %v1865_v49  ;;  %v1903_v50 = vadd.f32 %v1887_v15, %v1866_v20 }
 0x193   : > { %v1904_v4 = vadd.f32 %v1888_v17, %v1867_v12  ;;  %v1905_v57 = vadd.f32 %v1889_v6, %v1868_v58  ;;  %v1906_v10 = vadd.f32 %v1890_v51, %v1869_v26  ;;  %v1907_v59 = vadd.f32 %v1891_v47, %v1870_v24 }
 0x194   : > { %v1908_v11 = vadd.f32 %v1892_v36, %v1871_v41  ;;  %v1909_v44 = vadd.f32 %v1893_v32, %v1872_v2  ;;  %v1915_v14 = vmul.f32 %v3050_v63, %v4316_v28  ;;  %v1916_v18 = vmul.f32 %v3050_v63, %v4319_v3 }
 0x195   : > { %v1917_v0 = vmul.f32 %v3050_v63, %v4322_v5  ;;  %v1918_v1 = vmul.f32 %v3050_v63, %v4325_v27  ;;  %v1919_v62 = vmul.f32 %v3050_v63, %v4328_v39  ;;  %v1920_v16 = vmul.f32 %v3050_v63, %v4331_v34 }
 0x196   : > { %v1921_v43 = vmul.f32 %v3050_v63, %v4334_v25  ;;  %v1922_v49 = vmul.f32 %v3050_v63, %v4337_v38  ;;  %v1923_v28 = vmul.f32 %v3050_v63, %v4340_v8  ;;  %v1924_v3 = vmul.f32 %v3050_v63, %v4343_v46 }
 0x197   : > { %v1925_v20 = vmul.f32 %v3050_v63, %v4346_v40  ;;  %v1926_v12 = vmul.f32 %v3050_v63, %v4349_v52  ;;  %v1927_v58 = vmul.f32 %v3050_v63, %v4367_v13  ;;  %v1928_v26 = vmul.f32 %v3050_v63, %v4370_v21 }
 0x198   : > { %v1929_v24 = vmul.f32 %v3050_v63, %v4392_v33  ;;  %v1930_v41 = vmul.f32 %v3050_v63, %v4395_v9  ;;  %v1931_v2 = vadd.f32 %v1915_v14, %v1894_v48  ;;  %v1932_v55 = vadd.f32 %v1916_v18, %v1895_v60  ;;  %v4417_v63 = vld [vmem:[%s3364_s25 + $0x14a] sm:$0xff]  ;;  %v3052_v18 = vld [vmem:[%s5380_s2 + $0x21] ss:$0 sm:$0xff] }
 0x199   : > { %v1933_v31 = vadd.f32 %v1917_v0, %v1896_v53  ;;  %v1934_v56 = vadd.f32 %v1918_v1, %v1897_v35  ;;  %v1935_v54 = vadd.f32 %v1919_v62, %v1898_v37  ;;  %v1936_v29 = vadd.f32 %v1920_v16, %v1899_v19  ;;  %v4420_v53 = vld [vmem:[%s3364_s25 + $0x152] sm:$0xff] }
 0x19a   : > { %v1937_v30 = vadd.f32 %v1921_v43, %v1900_v7  ;;  %v1938_v22 = vadd.f32 %v1922_v49, %v1901_v42  ;;  %v1939_v23 = vadd.f32 %v1923_v28, %v1902_v61  ;;  %v1940_v15 = vadd.f32 %v1924_v3, %v1903_v50 }
 0x19b   : > { %v1941_v17 = vadd.f32 %v1925_v20, %v1904_v4  ;;  %v1942_v6 = vadd.f32 %v1926_v12, %v1905_v57  ;;  %v1943_v51 = vadd.f32 %v1927_v58, %v1906_v10  ;;  %v1944_v47 = vadd.f32 %v1928_v26, %v1907_v59 }
 0x19c   : > { %v1945_v36 = vadd.f32 %v1929_v24, %v1908_v11  ;;  %v1946_v32 = vadd.f32 %v1930_v41, %v1909_v44  ;;  %v1952_v48 = vmul.f32 %v3051_v45, %v4322_v5  ;;  %v1953_v60 = vmul.f32 %v3051_v45, %v4325_v27 }
 0x19d   : > { %v1954_v35 = vmul.f32 %v3051_v45, %v4328_v39  ;;  %v1955_v37 = vmul.f32 %v3051_v45, %v4331_v34  ;;  %v1956_v19 = vmul.f32 %v3051_v45, %v4334_v25  ;;  %v1957_v7 = vmul.f32 %v3051_v45, %v4337_v38 }
 0x19e   : > { %v1958_v42 = vmul.f32 %v3051_v45, %v4340_v8  ;;  %v1959_v61 = vmul.f32 %v3051_v45, %v4343_v46  ;;  %v1960_v5 = vmul.f32 %v3051_v45, %v4346_v40  ;;  %v1961_v27 = vmul.f32 %v3051_v45, %v4349_v52 }
 0x19f   : > { %v1962_v50 = vmul.f32 %v3051_v45, %v4367_v13  ;;  %v1963_v4 = vmul.f32 %v3051_v45, %v4370_v21  ;;  %v1964_v57 = vmul.f32 %v3051_v45, %v4392_v33  ;;  %v1965_v10 = vmul.f32 %v3051_v45, %v4395_v9 }
 0x1a0   : > { %v1966_v59 = vmul.f32 %v3051_v45, %v4417_v63  ;;  %v1967_v11 = vmul.f32 %v3051_v45, %v4420_v53  ;;  %v1968_v44 = vadd.f32 %v1952_v48, %v1931_v2  ;;  %v1969_v14 = vadd.f32 %v1953_v60, %v1932_v55  ;;  %v4442_v45 = vld [vmem:[%s3364_s25 + $0x16a] sm:$0xff]  ;;  %v3053_v60 = vld [vmem:[%s5380_s2 + $0x28] ss:$0 sm:$0xff] }
 0x1a1   : > { %v1970_v0 = vadd.f32 %v1954_v35, %v1933_v31  ;;  %v1971_v1 = vadd.f32 %v1955_v37, %v1934_v56  ;;  %v1972_v62 = vadd.f32 %v1956_v19, %v1935_v54  ;;  %v1973_v16 = vadd.f32 %v1957_v7, %v1936_v29  ;;  %v4445_v31 = vld [vmem:[%s3364_s25 + $0x172] sm:$0xff] }
 0x1a2   : > { %v1974_v43 = vadd.f32 %v1958_v42, %v1937_v30  ;;  %v1975_v49 = vadd.f32 %v1959_v61, %v1938_v22  ;;  %v1976_v28 = vadd.f32 %v1960_v5, %v1939_v23  ;;  %v1977_v3 = vadd.f32 %v1961_v27, %v1940_v15 }
 0x1a3   : > { %v1978_v20 = vadd.f32 %v1962_v50, %v1941_v17  ;;  %v1979_v12 = vadd.f32 %v1963_v4, %v1942_v6  ;;  %v1980_v58 = vadd.f32 %v1964_v57, %v1943_v51  ;;  %v1981_v26 = vadd.f32 %v1965_v10, %v1944_v47 }
 0x1a4   : > { %v1982_v24 = vadd.f32 %v1966_v59, %v1945_v36  ;;  %v1983_v41 = vadd.f32 %v1967_v11, %v1946_v32  ;;  %v1989_v2 = vmul.f32 %v3052_v18, %v4328_v39  ;;  %v1990_v55 = vmul.f32 %v3052_v18, %v4331_v34 }
 0x1a5   : > { %v1991_v56 = vmul.f32 %v3052_v18, %v4334_v25  ;;  %v1992_v54 = vmul.f32 %v3052_v18, %v4337_v38  ;;  %v1993_v29 = vmul.f32 %v3052_v18, %v4340_v8  ;;  %v1994_v30 = vmul.f32 %v3052_v18, %v4343_v46 }
 0x1a6   : > { %v1995_v22 = vmul.f32 %v3052_v18, %v4346_v40  ;;  %v1996_v23 = vmul.f32 %v3052_v18, %v4349_v52  ;;  %v1997_v39 = vmul.f32 %v3052_v18, %v4367_v13  ;;  %v1998_v34 = vmul.f32 %v3052_v18, %v4370_v21 }
 0x1a7   : > { %v1999_v15 = vmul.f32 %v3052_v18, %v4392_v33  ;;  %v2000_v17 = vmul.f32 %v3052_v18, %v4395_v9  ;;  %v2001_v6 = vmul.f32 %v3052_v18, %v4417_v63  ;;  %v2002_v51 = vmul.f32 %v3052_v18, %v4420_v53 }
 0x1a8   : > { %v2003_v47 = vmul.f32 %v3052_v18, %v4442_v45  ;;  %v2004_v36 = vmul.f32 %v3052_v18, %v4445_v31  ;;  %v2005_v32 = vadd.f32 %v1989_v2, %v1968_v44  ;;  %v2006_v48 = vadd.f32 %v1990_v55, %v1969_v14  ;;  %v1832_v18 = vld [vmem:[%s3364_s25 + $0x18a] sm:$0xff] }
 0x1a9   : > { %v2007_v35 = vadd.f32 %v1991_v56, %v1970_v0  ;;  %v2008_v37 = vadd.f32 %v1992_v54, %v1971_v1  ;;  %v2009_v19 = vadd.f32 %v1993_v29, %v1972_v62  ;;  %v2010_v7 = vadd.f32 %v1994_v30, %v1973_v16  ;;  %v1833_v0 = vld [vmem:[%s3364_s25 + $0x192] sm:$0xff]  ;;  %v3054_v55 = vld [vmem:[%s5380_s2 + $0x2f] ss:$0 sm:$0xff] }
 0x1aa   : > { %v2011_v42 = vadd.f32 %v1995_v22, %v1974_v43  ;;  %v2012_v61 = vadd.f32 %v1996_v23, %v1975_v49  ;;  %v2013_v5 = vadd.f32 %v1997_v39, %v1976_v28  ;;  %v2014_v27 = vadd.f32 %v1998_v34, %v1977_v3 }
 0x1ab   : > { %v2015_v50 = vadd.f32 %v1999_v15, %v1978_v20  ;;  %v2016_v4 = vadd.f32 %v2000_v17, %v1979_v12  ;;  %v2017_v57 = vadd.f32 %v2001_v6, %v1980_v58  ;;  %v2018_v10 = vadd.f32 %v2002_v51, %v1981_v26 }
 0x1ac   : > { %v2019_v59 = vadd.f32 %v2003_v47, %v1982_v24  ;;  %v2020_v11 = vadd.f32 %v2004_v36, %v1983_v41  ;;  %v2026_v44 = vmul.f32 %v3053_v60, %v4334_v25  ;;  %v2027_v14 = vmul.f32 %v3053_v60, %v4337_v38 }
 0x1ad   : > { %v2028_v1 = vmul.f32 %v3053_v60, %v4340_v8  ;;  %v2029_v62 = vmul.f32 %v3053_v60, %v4343_v46  ;;  %v2030_v16 = vmul.f32 %v3053_v60, %v4346_v40  ;;  %v2031_v43 = vmul.f32 %v3053_v60, %v4349_v52 }
 0x1ae   : > { %v2032_v49 = vmul.f32 %v3053_v60, %v4367_v13  ;;  %v2033_v28 = vmul.f32 %v3053_v60, %v4370_v21  ;;  %v2034_v3 = vmul.f32 %v3053_v60, %v4392_v33  ;;  %v2035_v25 = vmul.f32 %v3053_v60, %v4395_v9 }
 0x1af   : > { %v2036_v38 = vmul.f32 %v3053_v60, %v4417_v63  ;;  %v2037_v20 = vmul.f32 %v3053_v60, %v4420_v53  ;;  %v2038_v12 = vmul.f32 %v3053_v60, %v4442_v45  ;;  %v2039_v58 = vmul.f32 %v3053_v60, %v4445_v31 }
 0x1b0   : > { %v2040_v26 = vmul.f32 %v3053_v60, %v1832_v18  ;;  %v2041_v24 = vmul.f32 %v3053_v60, %v1833_v0  ;;  %v2042_v41 = vadd.f32 %v2026_v44, %v2005_v32  ;;  %v2043_v2 = vadd.f32 %v2027_v14, %v2006_v48  ;;  %v1834_v60 = vld [vmem:[%s3364_s25 + $0x1aa] sm:$0xff] }
 0x1b1   : > { %v2044_v56 = vadd.f32 %v2028_v1, %v2007_v35  ;;  %v2045_v54 = vadd.f32 %v2029_v62, %v2008_v37  ;;  %v2046_v29 = vadd.f32 %v2030_v16, %v2009_v19  ;;  %v2047_v30 = vadd.f32 %v2031_v43, %v2010_v7  ;;  %v1835_v35 = vld [vmem:[%s3364_s25 + $0x1b2] sm:$0xff] }
 0x1b2   : > { %v2048_v22 = vadd.f32 %v2032_v49, %v2011_v42  ;;  %v2049_v23 = vadd.f32 %v2033_v28, %v2012_v61  ;;  %v2050_v39 = vadd.f32 %v2034_v3, %v2013_v5  ;;  %v2051_v34 = vadd.f32 %v2035_v25, %v2014_v27  ;;  %v4505_v44 = vld [vmem:[%s3364_s25 + $0x4b] sm:$0xff]  ;;  %v4508_v62 = vld [vmem:[%s3364_s25 + $0x53] sm:$0xff] }
 0x1b3   : > { %v2052_v15 = vadd.f32 %v2036_v38, %v2015_v50  ;;  %v2053_v17 = vadd.f32 %v2037_v20, %v2016_v4  ;;  %v2054_v6 = vadd.f32 %v2038_v12, %v2017_v57  ;;  %v2055_v51 = vadd.f32 %v2039_v58, %v2018_v10  ;;  %v4511_v16 = vld [vmem:[%s3364_s25 + $0x6b] sm:$0xff]  ;;  %v4514_v43 = vld [vmem:[%s3364_s25 + $0x73] sm:$0xff] }
 0x1b4   : > { %v2056_v47 = vadd.f32 %v2040_v26, %v2019_v59  ;;  %v2057_v36 = vadd.f32 %v2041_v24, %v2020_v11  ;;  %v2063_v32 = vmul.f32 %v3054_v55, %v4340_v8  ;;  %v2064_v48 = vmul.f32 %v3054_v55, %v4343_v46  ;;  %v2097_v59 = vld [vmem:[%s3364_s25 + $0x2b] sm:$0xff]  ;;  %v2098_v11 = vld [vmem:[%s3364_s25 + $0x33] sm:$0xff] }
 0x1b5   : > { %v2065_v37 = vmul.f32 %v3054_v55, %v4346_v40  ;;  %v2066_v19 = vmul.f32 %v3054_v55, %v4349_v52  ;;  %v2067_v7 = vmul.f32 %v3054_v55, %v4367_v13  ;;  %v2068_v42 = vmul.f32 %v3054_v55, %v4370_v21  ;;  %v4517_v38 = vld [vmem:[%s3364_s25 + $0x8b] sm:$0xff]  ;;  %v4520_v20 = vld [vmem:[%s3364_s25 + $0x93] sm:$0xff] }
 0x1b6   : > { %v2069_v61 = vmul.f32 %v3054_v55, %v4392_v33  ;;  %v2070_v5 = vmul.f32 %v3054_v55, %v4395_v9  ;;  %v2071_v8 = vmul.f32 %v3054_v55, %v4417_v63  ;;  %v2072_v46 = vmul.f32 %v3054_v55, %v4420_v53  ;;  %v2095_v9 = vld [vmem:[%s3364_s25 + $0xb] sm:$0xff]  ;;  %v2096_v63 = vld [vmem:[%s3364_s25 + $0x13] sm:$0xff]  ;;  %v3055_v53 = vld [vmem:[%s5380_s2 + $0x6] ss:$0 sm:$0xff] }
 0x1b7   : > { %v2073_v27 = vmul.f32 %v3054_v55, %v4442_v45  ;;  %v2074_v40 = vmul.f32 %v3054_v55, %v4445_v31  ;;  %v2075_v52 = vmul.f32 %v3054_v55, %v1832_v18  ;;  %v2076_v50 = vmul.f32 %v3054_v55, %v1833_v0  ;;  %v4523_v12 = vld [vmem:[%s3364_s25 + $0xab] sm:$0xff]  ;;  %v4526_v24 = vld [vmem:[%s3364_s25 + $0xb3] sm:$0xff] }
 0x1b8   : > { %v2077_v13 = vmul.f32 %v3054_v55, %v1834_v60  ;;  %v2078_v4 = vmul.f32 %v3054_v55, %v1835_v35  ;;  %v2079_v21 = vadd.f32 %v2063_v32, %v2042_v41  ;;  %v2080_v33 = vadd.f32 %v2064_v48, %v2043_v2  ;;  %v4529_v41 = vld [vmem:[%s3364_s25 + $0xcb] sm:$0xff]  ;;  %v4532_v2 = vld [vmem:[%s3364_s25 + $0xd3] sm:$0xff] }
 0x1b9   : > { %v2081_v45 = vadd.f32 %v2065_v37, %v2044_v56  ;;  %v2082_v57 = vadd.f32 %v2066_v19, %v2045_v54  ;;  %v2083_v10 = vadd.f32 %v2067_v7, %v2046_v29  ;;  %v2084_v31 = vadd.f32 %v2068_v42, %v2047_v30  ;;  %v4535_v54 = vld [vmem:[%s3364_s25 + $0xeb] sm:$0xff]  ;;  %v4538_v29 = vld [vmem:[%s3364_s25 + $0xf3] sm:$0xff] }
 0x1ba   : > { %v2085_v14 = vadd.f32 %v2069_v61, %v2048_v22  ;;  %v2086_v18 = vadd.f32 %v2070_v5, %v2049_v23  ;;  %v2087_v0 = vadd.f32 %v2071_v8, %v2050_v39  ;;  %v2088_v1 = vadd.f32 %v2072_v46, %v2051_v34  ;;  %v3056_v19 = vld [vmem:[%s5380_s2 + $0xd] ss:$0 sm:$0xff] }
 0x1bb   : > { %v2089_v49 = vadd.f32 %v2073_v27, %v2052_v15  ;;  %v2090_v28 = vadd.f32 %v2074_v40, %v2053_v17  ;;  %v2091_v3 = vadd.f32 %v2075_v52, %v2054_v6  ;;  %v2092_v25 = vadd.f32 %v2076_v50, %v2055_v51 }
 0x1bc   : > { %v2093_v58 = vadd.f32 %v2077_v13, %v2056_v47  ;;  %v2094_v26 = vadd.f32 %v2078_v4, %v2057_v36  ;;  %v2128_v55 = vmul.f32 %v3055_v53, %v2095_v9  ;;  %v2129_v56 = vmul.f32 %v3055_v53, %v2096_v63 }
 0x1bd   : > { %v2130_v30 = vmul.f32 %v3055_v53, %v2097_v59  ;;  %v2131_v22 = vmul.f32 %v3055_v53, %v2098_v11  ;;  %v2132_v23 = vmul.f32 %v3055_v53, %v4505_v44  ;;  %v2133_v39 = vmul.f32 %v3055_v53, %v4508_v62 }
 0x1be   : > { %v2134_v34 = vmul.f32 %v3055_v53, %v4511_v16  ;;  %v2135_v15 = vmul.f32 %v3055_v53, %v4514_v43  ;;  %v2136_v17 = vmul.f32 %v3055_v53, %v4517_v38  ;;  %v2137_v6 = vmul.f32 %v3055_v53, %v4520_v20 }
 0x1bf   : > { %v2138_v51 = vmul.f32 %v3055_v53, %v4523_v12  ;;  %v2139_v47 = vmul.f32 %v3055_v53, %v4526_v24  ;;  %v2140_v36 = vmul.f32 %v3055_v53, %v4529_v41  ;;  %v2141_v32 = vmul.f32 %v3055_v53, %v4532_v2 }
 0x1c0   : > { %v2142_v48 = vmul.f32 %v3055_v53, %v4535_v54  ;;  %v2143_v60 = vmul.f32 %v3055_v53, %v4538_v29  ;;  %v2144_v35 = vadd.f32 %v2128_v55, %v2079_v21  ;;  %v2145_v37 = vadd.f32 %v2129_v56, %v2080_v33  ;;  %v4556_v53 = vld [vmem:[%s3364_s25 + $0x10b] sm:$0xff]  ;;  %v3057_v56 = vld [vmem:[%s5380_s2 + $0x14] ss:$0 sm:$0xff] }
 0x1c1   : > { %v2146_v7 = vadd.f32 %v2130_v30, %v2081_v45  ;;  %v2147_v42 = vadd.f32 %v2131_v22, %v2082_v57  ;;  %v2148_v61 = vadd.f32 %v2132_v23, %v2083_v10  ;;  %v2149_v5 = vadd.f32 %v2133_v39, %v2084_v31  ;;  %v4559_v45 = vld [vmem:[%s3364_s25 + $0x113] sm:$0xff] }
 0x1c2   : > { %v2150_v8 = vadd.f32 %v2134_v34, %v2085_v14  ;;  %v2151_v46 = vadd.f32 %v2135_v15, %v2086_v18  ;;  %v2152_v27 = vadd.f32 %v2136_v17, %v2087_v0  ;;  %v2153_v40 = vadd.f32 %v2137_v6, %v2088_v1 }
 0x1c3   : > { %v2154_v52 = vadd.f32 %v2138_v51, %v2089_v49  ;;  %v2155_v50 = vadd.f32 %v2139_v47, %v2090_v28  ;;  %v2156_v13 = vadd.f32 %v2140_v36, %v2091_v3  ;;  %v2157_v4 = vadd.f32 %v2141_v32, %v2092_v25 }
 0x1c4   : > { %v2158_v21 = vadd.f32 %v2142_v48, %v2093_v58  ;;  %v2159_v33 = vadd.f32 %v2143_v60, %v2094_v26  ;;  %v2165_v9 = vmul.f32 %v3056_v19, %v2097_v59  ;;  %v2166_v63 = vmul.f32 %v3056_v19, %v2098_v11 }
 0x1c5   : > { %v2167_v57 = vmul.f32 %v3056_v19, %v4505_v44  ;;  %v2168_v10 = vmul.f32 %v3056_v19, %v4508_v62  ;;  %v2169_v31 = vmul.f32 %v3056_v19, %v4511_v16  ;;  %v2170_v14 = vmul.f32 %v3056_v19, %v4514_v43 }
 0x1c6   : > { %v2171_v18 = vmul.f32 %v3056_v19, %v4517_v38  ;;  %v2172_v0 = vmul.f32 %v3056_v19, %v4520_v20  ;;  %v2173_v1 = vmul.f32 %v3056_v19, %v4523_v12  ;;  %v2174_v59 = vmul.f32 %v3056_v19, %v4526_v24 }
 0x1c7   : > { %v2175_v11 = vmul.f32 %v3056_v19, %v4529_v41  ;;  %v2176_v49 = vmul.f32 %v3056_v19, %v4532_v2  ;;  %v2177_v28 = vmul.f32 %v3056_v19, %v4535_v54  ;;  %v2178_v3 = vmul.f32 %v3056_v19, %v4538_v29 }
 0x1c8   : > { %v2179_v25 = vmul.f32 %v3056_v19, %v4556_v53  ;;  %v2180_v58 = vmul.f32 %v3056_v19, %v4559_v45  ;;  %v2181_v26 = vadd.f32 %v2165_v9, %v2144_v35  ;;  %v2182_v55 = vadd.f32 %v2166_v63, %v2145_v37  ;;  %v4581_v19 = vld [vmem:[%s3364_s25 + $0x12b] sm:$0xff]  ;;  %v3058_v63 = vld [vmem:[%s5380_s2 + $0x1b] ss:$0 sm:$0xff] }
 0x1c9   : > { %v2183_v30 = vadd.f32 %v2167_v57, %v2146_v7  ;;  %v2184_v22 = vadd.f32 %v2168_v10, %v2147_v42  ;;  %v2185_v23 = vadd.f32 %v2169_v31, %v2148_v61  ;;  %v2186_v39 = vadd.f32 %v2170_v14, %v2149_v5  ;;  %v4584_v7 = vld [vmem:[%s3364_s25 + $0x133] sm:$0xff] }
 0x1ca   : > { %v2187_v34 = vadd.f32 %v2171_v18, %v2150_v8  ;;  %v2188_v15 = vadd.f32 %v2172_v0, %v2151_v46  ;;  %v2189_v17 = vadd.f32 %v2173_v1, %v2152_v27  ;;  %v2190_v6 = vadd.f32 %v2174_v59, %v2153_v40 }
 0x1cb   : > { %v2191_v51 = vadd.f32 %v2175_v11, %v2154_v52  ;;  %v2192_v47 = vadd.f32 %v2176_v49, %v2155_v50  ;;  %v2193_v36 = vadd.f32 %v2177_v28, %v2156_v13  ;;  %v2194_v32 = vadd.f32 %v2178_v3, %v2157_v4 }
 0x1cc   : > { %v2195_v48 = vadd.f32 %v2179_v25, %v2158_v21  ;;  %v2196_v60 = vadd.f32 %v2180_v58, %v2159_v33  ;;  %v2202_v35 = vmul.f32 %v3057_v56, %v4505_v44  ;;  %v2203_v37 = vmul.f32 %v3057_v56, %v4508_v62 }
 0x1cd   : > { %v2204_v42 = vmul.f32 %v3057_v56, %v4511_v16  ;;  %v2205_v61 = vmul.f32 %v3057_v56, %v4514_v43  ;;  %v2206_v5 = vmul.f32 %v3057_v56, %v4517_v38  ;;  %v2207_v8 = vmul.f32 %v3057_v56, %v4520_v20 }
 0x1ce   : > { %v2208_v46 = vmul.f32 %v3057_v56, %v4523_v12  ;;  %v2209_v27 = vmul.f32 %v3057_v56, %v4526_v24  ;;  %v2210_v44 = vmul.f32 %v3057_v56, %v4529_v41  ;;  %v2211_v62 = vmul.f32 %v3057_v56, %v4532_v2 }
 0x1cf   : > { %v2212_v40 = vmul.f32 %v3057_v56, %v4535_v54  ;;  %v2213_v52 = vmul.f32 %v3057_v56, %v4538_v29  ;;  %v2214_v50 = vmul.f32 %v3057_v56, %v4556_v53  ;;  %v2215_v13 = vmul.f32 %v3057_v56, %v4559_v45 }
 0x1d0   : > { %v2216_v4 = vmul.f32 %v3057_v56, %v4581_v19  ;;  %v2217_v21 = vmul.f32 %v3057_v56, %v4584_v7  ;;  %v2218_v33 = vadd.f32 %v2202_v35, %v2181_v26  ;;  %v2219_v9 = vadd.f32 %v2203_v37, %v2182_v55  ;;  %v4606_v56 = vld [vmem:[%s3364_s25 + $0x14b] sm:$0xff]  ;;  %v3059_v37 = vld [vmem:[%s5380_s2 + $0x22] ss:$0 sm:$0xff] }
 0x1d1   : > { %v2220_v57 = vadd.f32 %v2204_v42, %v2183_v30  ;;  %v2221_v10 = vadd.f32 %v2205_v61, %v2184_v22  ;;  %v2222_v31 = vadd.f32 %v2206_v5, %v2185_v23  ;;  %v2223_v14 = vadd.f32 %v2207_v8, %v2186_v39  ;;  %v4609_v30 = vld [vmem:[%s3364_s25 + $0x153] sm:$0xff] }
 0x1d2   : > { %v2224_v18 = vadd.f32 %v2208_v46, %v2187_v34  ;;  %v2225_v0 = vadd.f32 %v2209_v27, %v2188_v15  ;;  %v2226_v1 = vadd.f32 %v2210_v44, %v2189_v17  ;;  %v2227_v59 = vadd.f32 %v2211_v62, %v2190_v6 }
 0x1d3   : > { %v2228_v11 = vadd.f32 %v2212_v40, %v2191_v51  ;;  %v2229_v49 = vadd.f32 %v2213_v52, %v2192_v47  ;;  %v2230_v28 = vadd.f32 %v2214_v50, %v2193_v36  ;;  %v2231_v3 = vadd.f32 %v2215_v13, %v2194_v32 }
 0x1d4   : > { %v2232_v25 = vadd.f32 %v2216_v4, %v2195_v48  ;;  %v2233_v58 = vadd.f32 %v2217_v21, %v2196_v60  ;;  %v2239_v26 = vmul.f32 %v3058_v63, %v4511_v16  ;;  %v2240_v55 = vmul.f32 %v3058_v63, %v4514_v43 }
 0x1d5   : > { %v2241_v22 = vmul.f32 %v3058_v63, %v4517_v38  ;;  %v2242_v23 = vmul.f32 %v3058_v63, %v4520_v20  ;;  %v2243_v39 = vmul.f32 %v3058_v63, %v4523_v12  ;;  %v2244_v34 = vmul.f32 %v3058_v63, %v4526_v24 }
 0x1d6   : > { %v2245_v15 = vmul.f32 %v3058_v63, %v4529_v41  ;;  %v2246_v17 = vmul.f32 %v3058_v63, %v4532_v2  ;;  %v2247_v16 = vmul.f32 %v3058_v63, %v4535_v54  ;;  %v2248_v43 = vmul.f32 %v3058_v63, %v4538_v29 }
 0x1d7   : > { %v2249_v6 = vmul.f32 %v3058_v63, %v4556_v53  ;;  %v2250_v51 = vmul.f32 %v3058_v63, %v4559_v45  ;;  %v2251_v47 = vmul.f32 %v3058_v63, %v4581_v19  ;;  %v2252_v36 = vmul.f32 %v3058_v63, %v4584_v7 }
 0x1d8   : > { %v2253_v32 = vmul.f32 %v3058_v63, %v4606_v56  ;;  %v2254_v48 = vmul.f32 %v3058_v63, %v4609_v30  ;;  %v2255_v60 = vadd.f32 %v2239_v26, %v2218_v33  ;;  %v2256_v35 = vadd.f32 %v2240_v55, %v2219_v9  ;;  %v4631_v63 = vld [vmem:[%s3364_s25 + $0x16b] sm:$0xff] }
 0x1d9   : > { %v2257_v42 = vadd.f32 %v2241_v22, %v2220_v57  ;;  %v2258_v61 = vadd.f32 %v2242_v23, %v2221_v10  ;;  %v2259_v5 = vadd.f32 %v2243_v39, %v2222_v31  ;;  %v2260_v8 = vadd.f32 %v2244_v34, %v2223_v14  ;;  %v4634_v57 = vld [vmem:[%s3364_s25 + $0x173] sm:$0xff] }
 0x1da   : > { %v2261_v46 = vadd.f32 %v2245_v15, %v2224_v18  ;;  %v2262_v27 = vadd.f32 %v2246_v17, %v2225_v0  ;;  %v2263_v44 = vadd.f32 %v2247_v16, %v2226_v1  ;;  %v2264_v62 = vadd.f32 %v2248_v43, %v2227_v59  ;;  %v4643_v0 = vld [vmem:[%s5380_s2 + $0x29] ss:$0 sm:$0xff]  ;;  %v4660_v15 = vld [vmem:[%s5380_s2 + $0x30] ss:$0 sm:$0xff] }
 0x1db   : > { %v2265_v40 = vadd.f32 %v2249_v6, %v2228_v11  ;;  %v2266_v52 = vadd.f32 %v2250_v51, %v2229_v49  ;;  %v2267_v50 = vadd.f32 %v2251_v47, %v2230_v28  ;;  %v2268_v13 = vadd.f32 %v2252_v36, %v2231_v3 }
 0x1dc   : > { %v2269_v4 = vadd.f32 %v2253_v32, %v2232_v25  ;;  %v2270_v21 = vadd.f32 %v2254_v48, %v2233_v58  ;;  %v2276_v33 = vmul.f32 %v3059_v37, %v4517_v38  ;;  %v2277_v9 = vmul.f32 %v3059_v37, %v4520_v20 }
 0x1dd   : > { %v2278_v10 = vmul.f32 %v3059_v37, %v4523_v12  ;;  %v2279_v31 = vmul.f32 %v3059_v37, %v4526_v24  ;;  %v2280_v14 = vmul.f32 %v3059_v37, %v4529_v41  ;;  %v2281_v18 = vmul.f32 %v3059_v37, %v4532_v2 }
 0x1de   : > { %v2282_v38 = vmul.f32 %v3059_v37, %v4535_v54  ;;  %v2283_v20 = vmul.f32 %v3059_v37, %v4538_v29  ;;  %v2284_v1 = vmul.f32 %v3059_v37, %v4556_v53  ;;  %v2285_v59 = vmul.f32 %v3059_v37, %v4559_v45 }
 0x1df   : > { %v2286_v11 = vmul.f32 %v3059_v37, %v4581_v19  ;;  %v2287_v49 = vmul.f32 %v3059_v37, %v4584_v7  ;;  %v2288_v28 = vmul.f32 %v3059_v37, %v4606_v56  ;;  %v2289_v3 = vmul.f32 %v3059_v37, %v4609_v30 }
 0x1e0   : > { %v2290_v25 = vmul.f32 %v3059_v37, %v4631_v63  ;;  %v2291_v58 = vmul.f32 %v3059_v37, %v4634_v57  ;;  %v2292_v26 = vadd.f32 %v2276_v33, %v2255_v60  ;;  %v2293_v55 = vadd.f32 %v2277_v9, %v2256_v35 }
 0x1e1   : > { %v2294_v22 = vadd.f32 %v2278_v10, %v2257_v42  ;;  %v2295_v23 = vadd.f32 %v2279_v31, %v2258_v61  ;;  %v2296_v39 = vadd.f32 %v2280_v14, %v2259_v5  ;;  %v2313_v34 = vmul.f32 %v4643_v0, %v4523_v12 }
 0x1e2   : > { %v2297_v17 = vadd.f32 %v2281_v18, %v2260_v8  ;;  %v2298_v16 = vadd.f32 %v2282_v38, %v2261_v46  ;;  %v2299_v43 = vadd.f32 %v2283_v20, %v2262_v27  ;;  %v2314_v6 = vmul.f32 %v4643_v0, %v4526_v24 }
 0x1e3   : > { %v2300_v51 = vadd.f32 %v2284_v1, %v2263_v44  ;;  %v2301_v47 = vadd.f32 %v2285_v59, %v2264_v62  ;;  %v2302_v36 = vadd.f32 %v2286_v11, %v2265_v40  ;;  %v2315_v32 = vmul.f32 %v4643_v0, %v4529_v41 }
 0x1e4   : > { %v2303_v48 = vadd.f32 %v2287_v49, %v2266_v52  ;;  %v2304_v60 = vadd.f32 %v2288_v28, %v2267_v50  ;;  %v4666_v12 = vadd.f32 %v2289_v3, %v2268_v13  ;;  %v2316_v35 = vmul.f32 %v4643_v0, %v4532_v2 }
 0x1e5   : > { %v4670_v37 = vadd.f32 %v2290_v25, %v2269_v4  ;;  %v2317_v42 = vmul.f32 %v4643_v0, %v4535_v54  ;;  %v2329_v61 = vadd.f32 %v2313_v34, %v2292_v26  ;;  %v2350_v24 = vmul.f32 %v4660_v15, %v4529_v41  ;;  %v2119_v34 = vld [vmem:[%s3364_s25 + $0x18b] sm:$0xff] }
 0x1e6   : > { %v4676_v5 = vadd.f32 %v2291_v58, %v2270_v21  ;;  %v2318_v8 = vmul.f32 %v4643_v0, %v4538_v29  ;;  %v2330_v46 = vadd.f32 %v2314_v6, %v2293_v55  ;;  %v2351_v27 = vmul.f32 %v4660_v15, %v4532_v2 }
 0x1e7   : > { %v2319_v44 = vmul.f32 %v4643_v0, %v4556_v53  ;;  %v2320_v62 = vmul.f32 %v4643_v0, %v4559_v45  ;;  %v2331_v40 = vadd.f32 %v2315_v32, %v2294_v22  ;;  %v2352_v52 = vmul.f32 %v4660_v15, %v4535_v54  ;;  %v4701_v54 = vld [vmem:[%s5381_s3] ss:$0 sm:$0xff] }
 0x1e8   : > { %v2321_v41 = vmul.f32 %v4643_v0, %v4581_v19  ;;  %v2322_v50 = vmul.f32 %v4643_v0, %v4584_v7  ;;  %v2332_v13 = vadd.f32 %v2316_v35, %v2295_v23  ;;  %v2353_v2 = vmul.f32 %v4660_v15, %v4538_v29 }
 0x1e9   : > { %v2323_v4 = vmul.f32 %v4643_v0, %v4606_v56  ;;  %v2333_v21 = vadd.f32 %v2317_v42, %v2296_v39  ;;  %v2354_v33 = vmul.f32 %v4660_v15, %v4556_v53  ;;  %v2366_v9 = vadd.f32 %v2350_v24, %v2329_v61 }
 0x1ea   : > { %v2324_v10 = vmul.f32 %v4643_v0, %v4609_v30  ;;  %v2334_v31 = vadd.f32 %v2318_v8, %v2297_v17  ;;  %v2355_v29 = vmul.f32 %v4660_v15, %v4559_v45  ;;  %v2367_v14 = vadd.f32 %v2351_v27, %v2330_v46 }
 0x1eb   : > { %v2325_v18 = vmul.f32 %v4643_v0, %v4631_v63  ;;  %v2335_v38 = vadd.f32 %v2319_v44, %v2298_v16  ;;  %v2356_v53 = vmul.f32 %v4660_v15, %v4581_v19  ;;  %v2368_v20 = vadd.f32 %v2352_v52, %v2331_v40  ;;  %v4719_v19 = vld [vmem:[%s5382_s4] ss:$0 sm:$0xff] }
 0x1ec   : > { %v2336_v1 = vadd.f32 %v2320_v62, %v2299_v43  ;;  %v2337_v59 = vadd.f32 %v2321_v41, %v2300_v51  ;;  %v2357_v11 = vmul.f32 %v4660_v15, %v4584_v7  ;;  %v2369_v49 = vadd.f32 %v2353_v2, %v2332_v13  ;;  %v2120_v51 = vld [vmem:[%s3364_s25 + $0x193] sm:$0xff] }
 0x1ed   : > { %v2338_v28 = vadd.f32 %v2322_v50, %v2301_v47  ;;  %v2358_v45 = vmul.f32 %v4660_v15, %v4606_v56  ;;  %v2370_v3 = vadd.f32 %v2354_v33, %v2333_v21  ;;  %v2386_v25 = vmul.f32 %v4701_v54, %v2366_v9 }
 0x1ee   : > { %v2339_v58 = vadd.f32 %v2323_v4, %v2302_v36  ;;  %v2359_v26 = vmul.f32 %v4660_v15, %v4609_v30  ;;  %v2371_v55 = vadd.f32 %v2355_v29, %v2334_v31  ;;  %v2387_v7 = vmul.f32 %v4701_v54, %v2367_v14 }
 0x1ef   : > { %v2340_v22 = vadd.f32 %v2324_v10, %v2303_v48  ;;  %v2360_v56 = vmul.f32 %v4660_v15, %v4631_v63  ;;  %v2372_v23 = vadd.f32 %v2356_v53, %v2335_v38  ;;  %v2388_v39 = vmul.f32 %v4701_v54, %v2368_v20  ;;  %v2121_v10 = vld [vmem:[%s3364_s25 + $0x1ab] sm:$0xff] }
 0x1f0   : > { %v2341_v17 = vadd.f32 %v2325_v18, %v2304_v60  ;;  %v2361_v16 = vmul.f32 %v4660_v15, %v4634_v57  ;;  %v2373_v43 = vadd.f32 %v2357_v11, %v2336_v1  ;;  %v2389_v6 = vmul.f32 %v4701_v54, %v2369_v49  ;;  %v2122_v18 = vld [vmem:[%s3364_s25 + $0x1b3] sm:$0xff] }
 0x1f1   : > { %v2362_v30 = vmul.f32 %v4660_v15, %v2119_v34  ;;  %v2374_v47 = vadd.f32 %v2358_v45, %v2337_v59  ;;  %v2390_v36 = vmul.f32 %v4701_v54, %v2370_v3  ;;  %v2406_v32 = vadd.f32 %v4719_v19, %v2386_v25 }
 0x1f2   : > { %v2326_v63 = vmul.f32 %v4643_v0, %v4634_v57  ;;  %v2375_v48 = vadd.f32 %v2359_v26, %v2338_v28  ;;  %v2391_v60 = vmul.f32 %v4701_v54, %v2371_v55  ;;  %v2407_v35 = vadd.f32 %v4719_v19, %v2387_v7 }
 0x1f3   : > { %v2327_v42 = vmul.f32 %v4643_v0, %v2119_v34  ;;  %v2376_v61 = vadd.f32 %v2360_v56, %v2339_v58  ;;  %v2392_v24 = vmul.f32 %v4701_v54, %v2372_v23  ;;  %v2408_v8 = vadd.f32 %v4719_v19, %v2388_v39 }
 0x1f4   : > { %v2328_v46 = vmul.f32 %v4643_v0, %v2120_v51  ;;  %v2377_v27 = vadd.f32 %v2361_v16, %v2340_v22  ;;  %v2393_v44 = vmul.f32 %v4701_v54, %v2373_v43  ;;  %v2409_v57 = vadd.f32 %v4719_v19, %v2389_v6 }
 0x1f5   : > { %v2378_v62 = vadd.f32 %v2362_v30, %v2341_v17  ;;  %v2394_v40 = vmul.f32 %v4701_v54, %v2374_v47  ;;  %v2410_v52 = vadd.f32 %v4719_v19, %v2390_v36  ;;  %v2422_v41 = vsub.f32 0.0, %v2406_v32 }
 0x1f6   : > { %v2342_v50 = vadd.f32 %v2326_v63, %v4666_v12  ;;  %v2395_v13 = vmul.f32 %v4701_v54, %v2375_v48  ;;  %v2411_v2 = vadd.f32 %v4719_v19, %v2391_v60  ;;  %v2423_v0 = vsub.f32 0.0, %v2407_v35 }
 0x1f7   : > { %v2343_v4 = vadd.f32 %v2327_v42, %v4670_v37  ;;  %v2396_v21 = vmul.f32 %v4701_v54, %v2376_v61  ;;  %v2412_v33 = vadd.f32 %v4719_v19, %v2392_v24  ;;  %v2424_v9 = vsub.f32 0.0, %v2408_v8 }
 0x1f8   : > { %v2344_v31 = vadd.f32 %v2328_v46, %v4676_v5  ;;  %v2397_v29 = vmul.f32 %v4701_v54, %v2377_v27  ;;  %v2413_v14 = vadd.f32 %v4719_v19, %v2393_v44  ;;  %v2425_v12 = vsub.f32 0.0, %v2409_v57 }
 0x1f9   : > { %v2398_v38 = vmul.f32 %v4701_v54, %v2378_v62  ;;  %v2414_v53 = vadd.f32 %v4719_v19, %v2394_v40  ;;  %v2426_v20 = vsub.f32 0.0, %v2410_v52  ;;  %v2438_v37 = vmul.f32 1.442695, %v2422_v41 }
 0x1fa   : > { %v2363_v1 = vmul.f32 %v4660_v15, %v2120_v51  ;;  %v2415_v59 = vadd.f32 %v4719_v19, %v2395_v13  ;;  %v2427_v11 = vsub.f32 0.0, %v2411_v2  ;;  %v2440_v49 = vmul.f32 1.442695, %v2423_v0 }
 0x1fb   : > { %v2364_v5 = vmul.f32 %v4660_v15, %v2121_v10  ;;  %v2416_v28 = vadd.f32 %v4719_v19, %v2396_v21  ;;  %v2428_v45 = vsub.f32 0.0, %v2412_v33  ;;  %v2442_v3 = vmul.f32 1.442695, %v2424_v9 }
 0x1fc   : > { %v2365_v25 = vmul.f32 %v4660_v15, %v2122_v18  ;;  %v2417_v58 = vadd.f32 %v4719_v19, %v2397_v29  ;;  %v2429_v26 = vsub.f32 0.0, %v2413_v14  ;;  %v2444_v55 = vmul.f32 1.442695, %v2425_v12 }
 0x1fd   : > { %v2418_v7 = vadd.f32 %v4719_v19, %v2398_v38  ;;  %v2430_v22 = vsub.f32 0.0, %v2414_v53  ;;  %3065 = vpow2.f32 %v2438_v37  ;;  %v2446_v56 = vmul.f32 1.442695, %v2426_v20 }
 0x1fe   : > { %v2379_v23 = vadd.f32 %v2363_v1, %v2342_v50  ;;  %v2431_v39 = vsub.f32 0.0, %v2415_v59  ;;  %3067 = vpow2.f32 %v2440_v49  ;;  %v2448_v34 = vmul.f32 1.442695, %v2427_v11 }
 0x1ff   : > { %v2432_v17 = vsub.f32 0.0, %v2416_v28  ;;  %3069 = vpow2.f32 %v2442_v3  ;;  %v2450_v16 = vmul.f32 1.442695, %v2428_v45  ;;  %v2380_v43 = vadd.f32 %v2364_v5, %v2343_v4 }
 0x200   : > { %v2433_v6 = vsub.f32 0.0, %v2417_v58  ;;  %3071 = vpow2.f32 %v2444_v55  ;;  %v2452_v15 = vmul.f32 1.442695, %v2429_v26  ;;  %v2381_v51 = vadd.f32 %v2365_v25, %v2344_v31 }
 0x201   : > { %v2434_v30 = vsub.f32 0.0, %v2418_v7  ;;  %3073 = vpow2.f32 %v2446_v56  ;;  %v2454_v47 = vmul.f32 1.442695, %v2430_v22  ;;  %v2399_v36 = vmul.f32 %v4701_v54, %v2379_v23 }
 0x202   : > { %3075 = vpow2.f32 %v2448_v34  ;;  %v2456_v32 = vmul.f32 1.442695, %v2431_v39  ;;  %v2458_v48 = vmul.f32 1.442695, %v2432_v17  ;;  %v2400_v35 = vmul.f32 %v4701_v54, %v2380_v43 }
 0x203   : > { %v3066_v63 = vpop.eup %3065  ;;  %3077 = vpow2.f32 %v2450_v16  ;;  %v2460_v42 = vmul.f32 1.442695, %v2433_v6  ;;  %v2401_v24 = vmul.f32 %v4701_v54, %v2381_v51  ;;  %v2462_v8 = vmul.f32 1.442695, %v2434_v30 }
 0x204   : > { %v3068_v60 = vpop.eup %3067  ;;  %3079 = vpow2.f32 %v2452_v15  ;;  %v2419_v27 = vadd.f32 %v4719_v19, %v2399_v36  ;;  %v4771_v44 = vadd.f32 1.0, %v3066_v63  ;;  %v2420_v52 = vadd.f32 %v4719_v19, %v2400_v35 }
 0x205   : > { %v3070_v61 = vpop.eup %3069  ;;  %3081 = vpow2.f32 %v2454_v47  ;;  %v4773_v62 = vadd.f32 1.0, %v3068_v60  ;;  %v2421_v54 = vadd.f32 %v4719_v19, %v2401_v24 }
 0x206   : > { %v3072_v46 = vpop.eup %3071  ;;  %3083 = vpow2.f32 %v2456_v32  ;;  %v4776_v41 = vadd.f32 1.0, %v3070_v61  ;;  %v2435_v0 = vsub.f32 0.0, %v2419_v27  ;;  %v2436_v10 = vsub.f32 0.0, %v2420_v52 }
 0x207   : > { %v3074_v57 = vpop.eup %3073  ;;  %3085 = vpow2.f32 %v2458_v48  ;;  %v4779_v13 = vadd.f32 1.0, %v3072_v46  ;;  %v2437_v29 = vsub.f32 0.0, %v2421_v54  ;;  %v2497_v20 = vand.u32 2147483648, %v4771_v44 }
 0x208   : > { %v3076_v40 = vpop.eup %3075  ;;  %3087 = vpow2.f32 %v2460_v42  ;;  %v4781_v4 = vadd.f32 1.0, %v3074_v57  ;;  %v2464_v12 = vmul.f32 1.442695, %v2435_v0  ;;  %v2466_v53 = vmul.f32 1.442695, %v2436_v10 }
 0x209   : > { %v3078_v50 = vpop.eup %3077  ;;  %3089 = vpow2.f32 %v2462_v8  ;;  %v4784_v33 = vadd.f32 1.0, %v3076_v40  ;;  %v2468_v1 = vmul.f32 1.442695, %v2437_v29  ;;  %v2511_v59 = vand.u32 2147483648, %v4773_v62 }
 0x20a   : > { %v3080_v2 = vpop.eup %3079  ;;  %3091 = vrcp.f32 %v4771_v44  ;;  %v4787_v31 = vadd.f32 1.0, %v3078_v50  ;;  %v2495_v28 = vand.u32 2147483647, %v4771_v44  ;;  %vm2491_vm3 = vweird.f32 %v4771_v44 }
 0x20b   : > { %v3082_v21 = vpop.eup %3081  ;;  %3093 = vrcp.f32 %v4773_v62  ;;  %v4812_v25 = vor.u32 1.1754944e-38, %v2497_v20  ;;  %v2509_v58 = vand.u32 2147483647, %v4773_v62  ;;  %v2525_v26 = vand.u32 2147483648, %v4776_v41 }
 0x20c   : > { %v3084_v9 = vpop.eup %3083  ;;  %3095 = vrcp.f32 %v4776_v41  ;;  %v4818_v7 = vadd.f32 1.0, %v3080_v2  ;;  %vm2505_vm4 = vweird.f32 %v4773_v62  ;;  %v4821_v22 = vor.u32 1.1754944e-38, %v2511_v59 }
 0x20d   : > { %v3086_v19 = vpop.eup %3085  ;;  %3097 = vrcp.f32 %v4779_v13  ;;  %v2523_v56 = vand.u32 2147483647, %v4776_v41  ;;  %v4826_v39 = vadd.f32 1.0, %v3082_v21  ;;  %v2539_v16 = vand.u32 2147483648, %v4779_v13 }
 0x20e   : > { %v3088_v14 = vpop.eup %3087  ;;  %3099 = vrcp.f32 %v4781_v4  ;;  %v4831_v43 = vadd.f32 1.0, %v3084_v9  ;;  %vm2519_vm5 = vweird.f32 %v4776_v41  ;;  %v4838_v47 = vadd.f32 1.0, %v3086_v19 }
 0x20f   : > { %v3090_v18 = vpop.eup %3089  ;;  %3101 = vrcp.f32 %v4784_v33  ;;  %v4840_v36 = vor.u32 1.1754944e-38, %v2525_v26  ;;  %vm2533_vm6 = vweird.f32 %v4779_v13  ;;  %v2537_v32 = vand.u32 2147483647, %v4779_v13 }
 0x210   : > { %v4793_v38 = vpop.eup %3091  ;;  %3103 = vrcp.f32 %v4787_v31  ;;  %v4846_v48 = vadd.f32 1.0, %v3088_v14  ;;  %v4848_v60 = vadd.f32 1.0, %v3090_v18  ;;  %vm2547_vm7 = vweird.f32 %v4781_v4 }
 0x211   : > { %v4797_v37 = vpop.eup %3093  ;;  %3105 = vpow2.f32 %v2464_v12  ;;  %v2487_v49 = vmul.f32 %v4793_v38, %v4771_v44  ;;  %v4854_v8 = vor.u32 1.1754944e-38, %v2539_v16  ;;  %v2551_v46 = vand.u32 2147483647, %v4781_v4 }
 0x212   : > { %v4800_v11 = vpop.eup %3095  ;;  %v2501_v45 = vmul.f32 %v4797_v37, %v4773_v62  ;;  %3107 = vpow2.f32 %v2466_v53  ;;  %vm4859_vm8 = vcmp.eq.f32.partialorder %v2495_v28, 8.507059e+37  ;;  %vm4864_vm9 = vcmp.eq.f32.partialorder %v2509_v58, 8.507059e+37 }
 0x213   : > { %v4804_v5 = vpop.eup %3097  ;;  %3109 = vpow2.f32 %v2468_v1  ;;  %v2488_v34 = vsub.f32 1.0, %v2487_v49  ;;  %v2515_v17 = vmul.f32 %v4800_v11, %v4776_v41  ;;  %vm2492_vm10 = vweird.f32 %v4793_v38 }
 0x214   : > { %v4809_v3 = vpop.eup %3099  ;;  %v2502_v6 = vsub.f32 1.0, %v2501_v45  ;;  %v2529_v15 = vmul.f32 %v4804_v5, %v4779_v13  ;;  %v2553_v0 = vand.u32 2147483648, %v4781_v4  ;;  %vm2506_vm12 = vweird.f32 %v4797_v37  ;;  %vm4885_vm15 = vmor %vm2491_vm3, %vm2492_vm10 }
 0x215   : > { %v4816_v55 = vpop.eup %3101  ;;  %v2543_v51 = vmul.f32 %v4809_v3, %v4781_v4  ;;  %v2489_v61 = vmul.f32 %v4793_v38, %v2488_v34  ;;  %v2516_v24 = vsub.f32 1.0, %v2515_v17  ;;  %v2565_v10 = vand.u32 2147483647, %v4784_v33  ;;  %vm4905_vm2 = vmor %vm2505_vm4, %vm2506_vm12 }
 0x216   : > { %v4824_v23 = vpop.eup %3103  ;;  %v2557_v63 = vmul.f32 %v4816_v55, %v4784_v33  ;;  %v2503_v52 = vmul.f32 %v4797_v37, %v2502_v6  ;;  %v2530_v54 = vsub.f32 1.0, %v2529_v15  ;;  %vm2520_vm13 = vweird.f32 %v4800_v11 }
 0x217   : > { %v3106_v30 = vpop.eup %3105  ;;  %v2571_v35 = vmul.f32 %v4824_v23, %v4787_v31  ;;  %v2544_v2 = vsub.f32 1.0, %v2543_v51  ;;  %v2490_v29 = vadd.f32 %v4793_v38, %v2489_v61  ;;  %v2517_v14 = vmul.f32 %v4800_v11, %v2516_v24  ;;  %vm4922_vm4 = vmor %vm2519_vm5, %vm2520_vm13 }
 0x218   : > { %v3108_v42 = vpop.eup %3107  ;;  %v4857_v57 = vadd.f32 1.0, %v3106_v30  ;;  %v2558_v21 = vsub.f32 1.0, %v2557_v63  ;;  %vm4878_vm14 = vcmp.eq.f32.partialorder %v2523_v56, 8.507059e+37  ;;  %3111 = vrcp.f32 %v4818_v7 }
 0x219   : > { %v3110_v27 = vpop.eup %3109  ;;  %v4871_v9 = vadd.f32 1.0, %v3108_v42  ;;  %v2572_v19 = vsub.f32 1.0, %v2571_v35  ;;  %v2504_v53 = vadd.f32 %v4797_v37, %v2503_v52  ;;  %v2531_v20 = vmul.f32 %v4804_v5, %v2530_v54 }
 0x21a   : > { %vm4891_vm0 = vcmp.eq.f32.partialorder %v2537_v32, 8.507059e+37  ;;  %v2545_v59 = vmul.f32 %v4809_v3, %v2544_v2  ;;  %vm4896_vm1 = vcmp.eq.f32.partialorder %v2551_v46, 8.507059e+37  ;;  %3113 = vrcp.f32 %v4826_v39 }
 0x21b   : > { %vm2534_vm3 = vweird.f32 %v4804_v5  ;;  %v2559_v28 = vmul.f32 %v4816_v55, %v2558_v21  ;;  %v2567_v45 = vand.u32 2147483648, %v4784_v33  ;;  %vm2548_vm11 = vweird.f32 %v4809_v3 }
 0x21c   : > { %v2573_v58 = vmul.f32 %v4824_v23, %v2572_v19  ;;  %v2579_v26 = vand.u32 2147483647, %v4787_v31  ;;  %3115 = vrcp.f32 %v4831_v43  ;;  %v2518_v62 = vadd.f32 %v4800_v11, %v2517_v14  ;;  %vm4940_vm5 = vmor %vm2533_vm6, %vm2534_vm3 }
 0x21d   : > { %vm2562_vm12 = vweird.f32 %v4816_v55  ;;  %vm2576_vm10 = vweird.f32 %v4824_v23  ;;  %3117 = vrcp.f32 %v4838_v47  ;;  %v2494_v34 = vsel %vm4885_vm15, %v4793_v38, %v2490_v29  ;;  %vm4953_vm13 = vmor %vm2547_vm7, %vm2548_vm11 }
 0x21e   : > { %v2508_v17 = vsel %vm4905_vm2, %v4797_v37, %v2504_v53  ;;  %v2532_v41 = vadd.f32 %v4804_v5, %v2531_v20  ;;  %v2546_v6 = vadd.f32 %v4809_v3, %v2545_v59  ;;  %v4945_v15 = vpop.eup %3111  ;;  %v4947_v51 = vadd.f32 1.0, %v3110_v27 }
 0x21f   : > { %v2554_v37 = vor.u32 1.1754944e-38, %v2553_v0  ;;  %v2560_v13 = vadd.f32 %v4816_v55, %v2559_v28  ;;  %v2581_v30 = vand.u32 2147483648, %v4787_v31  ;;  %vm5404_vm6 = vweird.f32 %v4784_v33 }
 0x220   : > { %v4959_v32 = vpop.eup %3113  ;;  %vm4965_vm15 = vmor %vm5404_vm6, %vm2562_vm12  ;;  %vm4969_vm2 = vcmp.eq.f32.partialorder %v2565_v10, 8.507059e+37  ;;  %v2568_v35 = vor.u32 1.1754944e-38, %v2567_v45  ;;  %v2574_v42 = vadd.f32 %v4824_v23, %v2573_v58  ;;  %3119 = vrcp.f32 %v4846_v48 }
 0x221   : > { %v4978_v61 = vsel %vm4859_vm8, %v4812_v25, %v2494_v34  ;;  %v4983_v33 = vsel %vm4864_vm9, %v4821_v22, %v2508_v17  ;;  %v2522_v24 = vsel %vm4922_vm4, %v4800_v11, %v2518_v62  ;;  %vm5409_vm7 = vweird.f32 %v4787_v31 }
 0x222   : > { %vm4992_vm11 = vmor %vm5409_vm7, %vm2576_vm10  ;;  %vm4996_vm3 = vcmp.eq.f32.partialorder %v2579_v26, 8.507059e+37  ;;  %v5000_v27 = vpop.eup %3115  ;;  %v2536_v22 = vsel %vm4940_vm5, %v4804_v5, %v2532_v41  ;;  %v2550_v11 = vsel %vm4953_vm13, %v4809_v3, %v2546_v6  ;;  %v2585_v31 = vmul.f32 %v4945_v15, %v4818_v7 }
 0x223   : > { %v2599_v40 = vmul.f32 %v4959_v32, %v4826_v39  ;;  %v5012_v52 = vpop.eup %3117  ;;  %v2564_v50 = vsel %vm4965_vm15, %v4816_v55, %v2560_v13  ;;  %v2582_v54 = vor.u32 1.1754944e-38, %v2581_v30  ;;  %v2613_v5 = vmul.f32 %v5000_v27, %v4831_v43  ;;  %v2955_v13 = vld [vmem:[%s3364_s25 + $0xa8] sm:$0xff] }
 0x224   : > { %3121 = vrcp.f32 %v4848_v60  ;;  %v5023_v3 = vsel %vm4878_vm14, %v4840_v36, %v2522_v24  ;;  %v2578_v2 = vsel %vm4992_vm11, %v4824_v23, %v2574_v42  ;;  %v2595_v0 = vand.u32 2147483648, %v4818_v7 }
 0x225   : > { %v2627_v55 = vmul.f32 %v5012_v52, %v4838_v47  ;;  %v5034_v21 = vsel %vm4891_vm0, %v4854_v8, %v2536_v22  ;;  %v5038_v10 = vsel %vm4896_vm1, %v2554_v37, %v2550_v11  ;;  %vm2589_vm8 = vweird.f32 %v4818_v7  ;;  %v2958_v11 = vld [vmem:[%s3364_s25 + $0xd0] sm:$0xff] }
 0x226   : > { %v2593_v36 = vand.u32 2147483647, %v4818_v7  ;;  %v5042_v19 = vpop.eup %3119  ;;  %v5046_v23 = vsel %vm4969_vm2, %v2568_v35, %v2564_v50  ;;  %v2586_v29 = vsub.f32 1.0, %v2585_v31  ;;  %v2600_v14 = vsub.f32 1.0, %v2599_v40  ;;  %v2956_v7 = vld [vmem:[%s3364_s25 + $0xb0] sm:$0xff] }
 0x227   : > { %v2607_v12 = vand.u32 2147483647, %v4826_v39  ;;  %v5051_v8 = vsel %vm4996_vm3, %v2582_v54, %v2578_v2  ;;  %v2614_v18 = vsub.f32 1.0, %v2613_v5  ;;  %v2628_v53 = vsub.f32 1.0, %v2627_v55 }
 0x228   : > { %v2641_v20 = vmul.f32 %v5042_v19, %v4846_v48  ;;  %v5055_v1 = vor.u32 1.1754944e-38, %v2595_v0  ;;  %vm2603_vm9 = vweird.f32 %v4826_v39  ;;  %v2609_v59 = vand.u32 2147483648, %v4826_v39 }
 0x229   : > { %3123 = vrcp.f32 %v4857_v57  ;;  %vm2617_vm14 = vweird.f32 %v4831_v43  ;;  %v2621_v44 = vand.u32 2147483647, %v4831_v43  ;;  %v2623_v28 = vand.u32 2147483648, %v4831_v43 }
 0x22a   : > { %v5060_v49 = vpop.eup %3121  ;;  %v2635_v45 = vand.u32 2147483647, %v4838_v47  ;;  %v2587_v58 = vmul.f32 %v4945_v15, %v2586_v29  ;;  %vm2590_vm0 = vweird.f32 %v4945_v15  ;;  %vm5068_vm1 = vcmp.eq.f32.partialorder %v2593_v36, 8.507059e+37 }
 0x22b   : > { %v2601_v62 = vmul.f32 %v4959_v32, %v2600_v14  ;;  %vm5073_vm10 = vcmp.eq.f32.partialorder %v2607_v12, 8.507059e+37  ;;  %v2637_v34 = vand.u32 2147483648, %v4838_v47  ;;  %vm2604_vm4 = vweird.f32 %v4959_v32  ;;  %vm5087_vm5 = vmor %vm2589_vm8, %vm2590_vm0  ;;  %v5164_v14 = vld [vmem:[%s252_s29] ss:$0 sm:$0xff] }
 0x22c   : > { %v2615_v17 = vmul.f32 %v5000_v27, %v2614_v18  ;;  %v2629_v41 = vmul.f32 %v5012_v52, %v2628_v53  ;;  %v2642_v16 = vsub.f32 1.0, %v2641_v20  ;;  %v2610_v6 = vor.u32 1.1754944e-38, %v2609_v59  ;;  %vm5105_vm2 = vmor %vm2603_vm9, %vm2604_vm4  ;;  %v2951_v53 = vld [vmem:[%s3364_s25 + $0x68] sm:$0xff] }
 0x22d   : > { %vm2618_vm12 = vweird.f32 %v5000_v27  ;;  %v2655_v38 = vmul.f32 %v5060_v49, %v4848_v60  ;;  %3125 = vrcp.f32 %v4871_v9  ;;  %vm5091_vm13 = vcmp.eq.f32.partialorder %v2621_v44, 8.507059e+37 }
 0x22e   : > { %v2624_v30 = vor.u32 1.1754944e-38, %v2623_v28  ;;  %vm2631_vm6 = vweird.f32 %v4838_v47  ;;  %vm2632_vm15 = vweird.f32 %v5012_v52  ;;  %v2588_v4 = vadd.f32 %v4945_v15, %v2587_v58  ;;  %vm5119_vm11 = vmor %vm2617_vm14, %vm2618_vm12  ;;  %v2952_v28 = vld [vmem:[%s3364_s25 + $0x70] sm:$0xff] }
 0x22f   : > { %v5097_v63 = vpop.eup %3123  ;;  %v2602_v35 = vadd.f32 %v4959_v32, %v2601_v62  ;;  %vm5109_vm7 = vcmp.eq.f32.partialorder %v2635_v45, 8.507059e+37  ;;  %v2649_v47 = vand.u32 2147483647, %v4846_v48  ;;  %v2616_v24 = vadd.f32 %v5000_v27, %v2615_v17  ;;  %vm5125_vm3 = vmor %vm2631_vm6, %vm2632_vm15  ;;  %v2953_v62 = vld [vmem:[%s3364_s25 + $0x88] sm:$0xff] }
 0x230   : > { %v2630_v39 = vadd.f32 %v5012_v52, %v2629_v41  ;;  %v2638_v25 = vor.u32 1.1754944e-38, %v2637_v34  ;;  %v2643_v22 = vmul.f32 %v5042_v19, %v2642_v16  ;;  %vm2645_vm8 = vweird.f32 %v4846_v48  ;;  %v2954_v16 = vld [vmem:[%s3364_s25 + $0x90] sm:$0xff] }
 0x231   : > { %v2651_v31 = vand.u32 2147483648, %v4846_v48  ;;  %v2656_v40 = vsub.f32 1.0, %v2655_v38  ;;  %3127 = vrcp.f32 %v4947_v51  ;;  %vm2646_vm9 = vweird.f32 %v5042_v19  ;;  %v2966_v34 = vld [vmem:[%s3364_s25 + $0x150] sm:$0xff] }
 0x232   : > { %vm2659_vm14 = vweird.f32 %v4848_v60  ;;  %v2665_v43 = vand.u32 2147483648, %v4848_v60  ;;  %v2669_v50 = vmul.f32 %v5097_v63, %v4857_v57  ;;  %v2592_v5 = vsel %vm5087_vm5, %v4945_v15, %v2588_v4  ;;  %vm5168_vm4 = vmor %vm2645_vm8, %vm2646_vm9 }
 0x233   : > { %v5137_v54 = vpop.eup %3125  ;;  %v2606_v2 = vsel %vm5105_vm2, %v4959_v32, %v2602_v35  ;;  %vm5145_vm0 = vcmp.eq.f32.partialorder %v2649_v47, 8.507059e+37  ;;  %v2663_v55 = vand.u32 2147483647, %v4848_v60  ;;  %v2620_v36 = vsel %vm5119_vm11, %v5000_v27, %v2616_v24 }
 0x234   : > { %v2634_v29 = vsel %vm5125_vm3, %v5012_v52, %v2630_v39  ;;  %v2644_v15 = vadd.f32 %v5042_v19, %v2643_v22  ;;  %v2683_v32 = vmul.f32 %v5137_v54, %v4871_v9  ;;  %v2652_v27 = vor.u32 1.1754944e-38, %v2651_v31  ;;  %v2957_v39 = vld [vmem:[%s3364_s25 + $0xc8] sm:$0xff] }
 0x235   : > { %v2657_v52 = vmul.f32 %v5060_v49, %v2656_v40  ;;  %vm2673_vm12 = vweird.f32 %v4857_v57  ;;  %v2679_v18 = vand.u32 2147483648, %v4857_v57  ;;  %v5179_v20 = vsel %vm5068_vm1, %v5055_v1, %v2592_v5  ;;  %v2959_v5 = vld [vmem:[%s3364_s25 + $0xe8] sm:$0xff] }
 0x236   : > { %v5183_v48 = vsel %vm5073_vm10, %v2610_v6, %v2606_v2  ;;  %v5185_v59 = vor.u32 1.1754944e-38, %v2665_v43  ;;  %v2670_v44 = vsub.f32 1.0, %v2669_v50  ;;  %v5192_v58 = vsel %vm5091_vm13, %v2624_v30, %v2620_v36  ;;  %v2960_v36 = vld [vmem:[%s3364_s25 + $0xf0] sm:$0xff] }
 0x237   : > { %v5188_v45 = vpop.eup %3127  ;;  %v5196_v26 = vsel %vm5109_vm7, %v2638_v25, %v2634_v29  ;;  %vm2660_vm1 = vweird.f32 %v5060_v49  ;;  %v2677_v1 = vand.u32 2147483647, %v4857_v57  ;;  %v2648_v56 = vsel %vm5168_vm4, %v5042_v19, %v2644_v15 }
 0x238   : > { %vm5204_vm10 = vcmp.eq.f32.partialorder %v2663_v55, 8.507059e+37  ;;  %v2684_v17 = vsub.f32 1.0, %v2683_v32  ;;  %v2697_v41 = vmul.f32 %v5188_v45, %v4947_v51  ;;  %v2733_v6 = vmul.f32 %v5164_v14, %v2951_v53  ;;  %vm5220_vm13 = vmor %vm2659_vm14, %vm2660_vm1 }
 0x239   : > { %v2658_v38 = vadd.f32 %v5060_v49, %v2657_v52  ;;  %vm2674_vm5 = vweird.f32 %v5097_v63  ;;  %v5214_v37 = vor.u32 1.1754944e-38, %v2679_v18  ;;  %v2734_v19 = vmul.f32 %v5164_v14, %v2952_v28 }
 0x23a   : > { %v2671_v4 = vmul.f32 %v5097_v63, %v2670_v44  ;;  %vm2687_vm6 = vweird.f32 %v4871_v9  ;;  %v2698_v35 = vsub.f32 1.0, %v2697_v41  ;;  %v2735_v42 = vmul.f32 %v5164_v14, %v2953_v62  ;;  %vm5265_vm8 = vmor %vm2673_vm12, %vm2674_vm5  ;;  %v2963_v44 = vld [vmem:[%s3364_s25 + $0x128] sm:$0xff] }
 0x23b   : > { %v5230_v47 = vsel %vm5145_vm0, %v2652_v27, %v2648_v56  ;;  %vm5232_vm15 = vcmp.eq.f32.partialorder %v2677_v1, 8.507059e+37  ;;  %v2691_v60 = vand.u32 2147483647, %v4871_v9  ;;  %v2693_v46 = vand.u32 2147483648, %v4871_v9  ;;  %v2962_v27 = vld [vmem:[%s3364_s25 + $0x110] sm:$0xff] }
 0x23c   : > { %v2736_v25 = vmul.f32 %v5164_v14, %v2954_v16  ;;  %v2685_v22 = vmul.f32 %v5137_v54, %v2684_v17  ;;  %vm2701_vm2 = vweird.f32 %v4947_v51  ;;  %v2737_v31 = vmul.f32 %v5164_v14, %v2955_v13  ;;  %v2964_v56 = vld [vmem:[%s3364_s25 + $0x130] sm:$0xff]  ;;  %v2965_v16 = vld [vmem:[%s3364_s25 + $0x148] sm:$0xff] }
 0x23d   : > { %v2749_v40 = vmul.f32 %v2733_v6, %v4978_v61  ;;  %v2662_v43 = vsel %vm5220_vm13, %v5060_v49, %v2658_v38  ;;  %v2699_v50 = vmul.f32 %v5188_v45, %v2698_v35  ;;  %v2738_v2 = vmul.f32 %v5164_v14, %v2956_v7  ;;  %v2961_v49 = vld [vmem:[%s3364_s25 + $0x108] sm:$0xff] }
 0x23e   : > { %v2750_v0 = vmul.f32 %v2734_v19, %v4983_v33  ;;  %v2672_v55 = vadd.f32 %v5097_v63, %v2671_v4  ;;  %vm2688_vm7 = vweird.f32 %v5137_v54  ;;  %v2739_v61 = vmul.f32 %v5164_v14, %v2957_v39 }
 0x23f   : > { %v2751_v29 = vmul.f32 %v2735_v42, %v5023_v3  ;;  %vm2702_vm11 = vweird.f32 %v5188_v45  ;;  %v2740_v15 = vmul.f32 %v5164_v14, %v2958_v11  ;;  %v2752_v32 = vmul.f32 %v2736_v25, %v5034_v21  ;;  %vm5280_vm9 = vmor %vm2687_vm6, %vm2688_vm7 }
 0x240   : > { %vm2765_vm3 = vcmask 31744   ;;  %v2686_v3 = vadd.f32 %v5137_v54, %v2685_v22  ;;  %v2707_v12 = vand.u32 2147483648, %v4947_v51  ;;  %v2741_v52 = vmul.f32 %v5164_v14, %v2959_v5  ;;  %vm5299_vm0 = vmor %vm2701_vm2, %vm2702_vm11 }
 0x241   : > { %v2753_v21 = vmul.f32 %v2737_v31, %v5038_v10  ;;  %2766 = vst.msk [vmem:[%s3249_s14] sm:$0xff] %vm2765_vm3, %v2749_v40  ;;  %v2700_v18 = vadd.f32 %v5188_v45, %v2699_v50  ;;  %v2705_v53 = vand.u32 2147483647, %v4947_v51  ;;  %v2742_v28 = vmul.f32 %v5164_v14, %v2960_v36 }
 0x242   : > { %v2754_v10 = vmul.f32 %v2738_v2, %v5046_v23  ;;  %2767 = vst.msk [vmem:[%s3249_s14 + $0x8] sm:$0xff] %vm2765_vm3, %v2750_v0  ;;  %vm5291_vm14 = vcmp.eq.f32.partialorder %v2691_v60, 8.507059e+37  ;;  %v2694_v1 = vor.u32 1.1754944e-38, %v2693_v46  ;;  %v2743_v23 = vmul.f32 %v5164_v14, %v2961_v49 }
 0x243   : > { %v2755_v17 = vmul.f32 %v2739_v61, %v5051_v8  ;;  %2768 = vst.msk [vmem:[%s3249_s14 + $0x10] sm:$0xff] %vm2765_vm3, %v2751_v29  ;;  %v2667_v41 = vsel %vm5204_vm10, %v5185_v59, %v2662_v43  ;;  %v2676_v51 = vsel %vm5265_vm8, %v5097_v63, %v2672_v55  ;;  %v2744_v6 = vmul.f32 %v5164_v14, %v2962_v27 }
 0x244   : > { %v2756_v38 = vmul.f32 %v2740_v15, %v5179_v20  ;;  %2769 = vst.msk [vmem:[%s3249_s14 + $0x18] sm:$0xff] %vm2765_vm3, %v2752_v32  ;;  %v2690_v8 = vsel %vm5280_vm9, %v5137_v54, %v2686_v3  ;;  %v2708_v13 = vor.u32 1.1754944e-38, %v2707_v12  ;;  %v2745_v59 = vmul.f32 %v5164_v14, %v2963_v44 }
 0x245   : > { %v2757_v19 = vmul.f32 %v2741_v52, %v5183_v48  ;;  %2770 = vst.msk [vmem:[%s3249_s14 + $0x20] sm:$0xff] %vm2765_vm3, %v2753_v21  ;;  %v2704_v63 = vsel %vm5299_vm0, %v5188_v45, %v2700_v18  ;;  %vm2706_vm4 = vcmp.eq.f32.partialorder %v2705_v53, 8.507059e+37  ;;  %v2746_v20 = vmul.f32 %v5164_v14, %v2964_v56 }
 0x246   : > { %v2758_v54 = vmul.f32 %v2742_v28, %v5192_v58  ;;  %2771 = vst.msk [vmem:[%s3249_s14 + $0x28] sm:$0xff] %vm2765_vm3, %v2754_v10  ;;  %v2681_v48 = vsel %vm5232_vm15, %v5214_v37, %v2676_v51  ;;  %v2747_v30 = vmul.f32 %v5164_v14, %v2965_v16  ;;  %v2759_v4 = vmul.f32 %v2743_v23, %v5196_v26 }
 0x247   : > { %2772 = vst.msk [vmem:[%s3249_s14 + $0x30] sm:$0xff] %vm2765_vm3, %v2755_v17  ;;  %v2695_v45 = vsel %vm5291_vm14, %v2694_v1, %v2690_v8  ;;  %v2748_v58 = vmul.f32 %v5164_v14, %v2966_v34  ;;  %v2760_v35 = vmul.f32 %v2744_v6, %v5230_v47  ;;  %v2709_v37 = vsel %vm2706_vm4, %v2708_v13, %v2704_v63 }
 0x248   : > { %2773 = vst.msk [vmem:[%s3249_s14 + $0x38] sm:$0xff] %vm2765_vm3, %v2756_v38  ;;  %v2761_v7 = vmul.f32 %v2745_v59, %v2667_v41  ;;  %v2762_v42 = vmul.f32 %v2746_v20, %v2681_v48  ;;  %v2763_v26 = vmul.f32 %v2747_v30, %v2695_v45 }
 0x249   : > { %2774 = vst.msk [vmem:[%s3249_s14 + $0x40] sm:$0xff] %vm2765_vm3, %v2757_v19  ;;  %v2764_v24 = vmul.f32 %v2748_v58, %v2709_v37 }
 0x24a   : > { %2775 = vst.msk [vmem:[%s3249_s14 + $0x48] sm:$0xff] %vm2765_vm3, %v2758_v54 }
 0x24b   : > { %2776 = vst.msk [vmem:[%s3249_s14 + $0x50] sm:$0xff] %vm2765_vm3, %v2759_v4 }
 0x24c   : > { %2777 = vst.msk [vmem:[%s3249_s14 + $0x58] sm:$0xff] %vm2765_vm3, %v2760_v35 }
 0x24d   : > { %2778 = vst.msk [vmem:[%s3249_s14 + $0x60] sm:$0xff] %vm2765_vm3, %v2761_v7 }
 0x24e   : > { %2779 = vst.msk [vmem:[%s3249_s14 + $0x68] sm:$0xff] %vm2765_vm3, %v2762_v42 }
 0x24f   : > { %2780 = vst.msk [vmem:[%s3249_s14 + $0x70] sm:$0xff] %vm2765_vm3, %v2763_v26 }
 0x250   : > { %2781 = vst.msk [vmem:[%s3249_s14 + $0x78] sm:$0xff] %vm2765_vm3, %v2764_v24 }
 0x251 PF: > { %s15_s22 = sadd.s32 1, %s3167_s22   ;;  %s5448_s18 = smov %s3159_s20 }
 0x252   : > { %p12_p8 = scmp.ge.s32.totalorder %s15_s22, 6   ;;  %s5449_s19 = smov %s3163_s21 }
 0x253   : > { %s5450_s20 = smov %s5453_s23  ;;  %s5451_s21 = smov %s5457_s24 }
 0x254   :  { %14 = sbr.rel (!%p12_p8) target bundleno = 3 (0x3), region = 129 }

</bundles_post_ra>
